<compile_context>
chip_gen: v7x
topology: tpu7x:2x2x1
jax: 0.10.0
libtpu: 0.0.40
codegen_flags: <defaults>
</compile_context>

<pallas_src>
import functools

import jax
import jax.numpy as jnp
from jax import lax
from jax.experimental import pallas as pl
from jax.experimental.pallas import tpu as pltpu

NUM_GROUPS = 32
EPS = 1e-6
_PARAM_ROWS = 16  # packed-parameter rows, padded to a multiple of 8 sublanes


# ------------------------------ fused kernel ----------------------------------
def _attn_global_kernel(qin_ref, g_ref, wqp_ref, wkv_ref, rowp_ref, oneh_ref,
                        o_ref, *, N, C, lpp, M, P, G, scale):
    f32, bf16 = jnp.float32, jnp.bfloat16
    C4 = C * lpp
    CP = C * P
    cpg = C // G

    # ---- packed per-channel / per-column parameters (one lane-dense slab) ----
    rowp = rowp_ref[...]                                # (_PARAM_ROWS, C4) f32
    gamma4, beta4 = rowp[0:1, :], rowp[1:2, :]          # GN affine, column res
    gamma_c, beta_c = rowp[2:3, :C], rowp[3:4, :C]      # GN affine, channel res
    bq, bk, bv = rowp[4:5, :C], rowp[5:6, :C], rowp[6:7, :C]
    wk_sum, wv_sum = rowp[7:8, :C], rowp[8:9, :C]       # sum_p of depthwise k/v
    bp_exp = rowp[9:10, :]                              # proj bias, lpp-expanded

    # ---- GroupNorm(x_patch) for this batch, folded into a per-column affine --
    qin = qin_ref[...]                                  # (N, C4) raw patch tokens
    A_q = oneh_ref[CP:CP + C4, :]                       # (C4, G) column -> group
    s1 = jnp.sum(qin, axis=0, keepdims=True)            # (1, C4)
    s2 = jnp.sum(qin * qin, axis=0, keepdims=True)
    inv_cnt = 1.0 / float(N * lpp * cpg)
    mean_g = jnp.dot(s1, A_q, preferred_element_type=f32) * inv_cnt   # (1, G)
    msq_g = jnp.dot(s2, A_q, preferred_element_type=f32) * inv_cnt
    rstd_g = lax.rsqrt(msq_g - mean_g * mean_g + EPS)
    # expand group stats back to column resolution (contract on the G axis)
    mean4 = lax.dot_general(mean_g, A_q, (((1,), (1,)), ((), ())),
                            preferred_element_type=f32)               # (1, C4)
    rstd4 = lax.dot_general(rstd_g, A_q, (((1,), (1,)), ((), ())),
                            preferred_element_type=f32)
    a4 = gamma4 * rstd4
    d4 = beta4 - mean4 * a4
    qn = qin * a4 + d4                                   # GroupNorm'd patch tokens

    # ---- q projection: (N, C4) @ (C, C4)^T on the MXU, f32 accumulation ------
    wq = wqp_ref[0:C, :]                                 # (C, C4) bf16
    q_b = lax.dot_general(qn.astype(bf16), wq, (((1,), (1,)), ((), ())),
                          preferred_element_type=f32) + bq            # (N, C)

    # ---- GroupNorm(x_global) stats (uses norm_patch's gamma/beta: the PyTorch
    #      forward applies norm_patch to BOTH inputs) --------------------------
    g = g_ref[0]                                         # (M, CP) lane-dense f32
    A_g = oneh_ref[0:CP, :]                              # (CP, G)
    E_c = oneh_ref[CP + C4:CP + C4 + C, :]               # (C, G)
    t1 = jnp.sum(g, axis=0, keepdims=True)               # (1, CP)
    t2 = jnp.sum(g * g, axis=0, keepdims=True)
    inv_cntg = 1.0 / float(M * P * cpg)
    mg = jnp.dot(t1, A_g, preferred_element_type=f32) * inv_cntg      # (1, G)
    qg = jnp.dot(t2, A_g, preferred_element_type=f32) * inv_cntg
    rg = lax.rsqrt(qg - mg * mg + EPS)
    mean_c = lax.dot_general(mg, E_c, (((1,), (1,)), ((), ())),
                             preferred_element_type=f32)              # (1, C)
    rstd_c = lax.dot_general(rg, E_c, (((1,), (1,)), ((), ())),
                             preferred_element_type=f32)
    a_c = gamma_c * rstd_c
    d_c = beta_c - mean_c * a_c

    # ---- depthwise k/v convs as ONE lane-dense MXU matmul with the block-diag
    #      [wk|wv] weight; GN affine folded through the weighted patch sums.
    raw_kv = jnp.dot(g.astype(bf16), wkv_ref[...],
                     preferred_element_type=f32)                      # (M, 2C)
    k_b = raw_kv[:, :C] * a_c + (d_c * wk_sum + bk)                   # (M, C)
    v_b = raw_kv[:, C:] * a_c + (d_c * wv_sum + bv)                   # (M, C)

    # ---- scaled dot-product attention over the M global tokens ---------------
    s = lax.dot_general(q_b.astype(bf16), k_b.astype(bf16),
                        (((1,), (1,)), ((), ())),
                        preferred_element_type=f32) * scale           # (N, M)
    s = s - jnp.max(s, axis=-1, keepdims=True)
    p = jnp.exp(s)
    p = p * pl.reciprocal(jnp.sum(p, axis=-1, keepdims=True), approx=True)
    attn = jnp.dot(p.astype(bf16), v_b.astype(bf16),
                   preferred_element_type=f32)                        # (N, C)

    # ---- 1x1 proj_out expanded across the local patch (== nearest upsample),
    #      fused with the residual add; store is fully lane dense.
    wp_exp = wqp_ref[C:2 * C, :]                                      # (C, C4) bf16
    proj = jnp.dot(attn.astype(bf16), wp_exp,
                   preferred_element_type=f32)                        # (N, C4)
    o_ref[...] = (qin + proj + bp_exp).astype(o_ref.dtype)


# --------------------------------- forward -----------------------------------
def attn_global_forward(x_patch, x_global, params, lp=2, gp=8):
    B, C, Hp, Wp = x_patch.shape
    _, _, Hg, Wg = x_global.shape
    hq, wq_ = Hp // lp, Wp // lp
    lpp = lp * lp
    N, C4 = hq * wq_, C * lpp
    hk, wk_ = Hg // gp, Wg // gp
    M, P = hk * wk_, gp * gp
    CP = C * P
    G = NUM_GROUPS
    cpg = C // G

    # patchified RAW inputs (both GroupNorms are fused into the kernel)
    qin = (x_patch.reshape(B, C, hq, lp, wq_, lp)
                  .transpose(0, 2, 4, 1, 3, 5)
                  .reshape(B * N, C4))                               # (B*N, C4)
    g = (x_global.reshape(B, C, hk, gp, wk_, gp)
                 .transpose(0, 2, 4, 1, 3, 5)
                 .reshape(B, M, CP))                                 # lane-dense

    # bf16 weights, pre-arranged so every in-kernel matmul is a plain jnp.dot
    wq_nat = params["wq"].reshape(C, C4)                             # (C, C4)
    wp_exp = jnp.repeat(params["wp"].reshape(C, C).T, lpp, axis=1)   # (C, C4)
    wqp = jnp.concatenate([wq_nat, wp_exp], axis=0).astype(jnp.bfloat16)

    wk_r = params["wk"].reshape(C, P)
    wv_r = params["wv"].reshape(C, P)
    eye = jnp.eye(C, dtype=jnp.float32)
    wkv = jnp.concatenate(
        [(wk_r[:, :, None] * eye[:, None, :]).reshape(CP, C),
         (wv_r[:, :, None] * eye[:, None, :]).reshape(CP, C)],
        axis=1).astype(jnp.bfloat16)                                 # (CP, 2C)

    gamma, beta = params["gn_gamma"], params["gn_beta"]

    def _pad(v):
        return jnp.pad(v, (0, C4 - v.shape[0]))

    rowp = jnp.stack([
        jnp.repeat(gamma, lpp), jnp.repeat(beta, lpp),
        _pad(gamma), _pad(beta),
        _pad(params["bq"]), _pad(params["bk"]), _pad(params["bv"]),
        _pad(wk_r.sum(axis=1)), _pad(wv_r.sum(axis=1)),
        jnp.repeat(params["bp"], lpp),
    ], axis=0)
    rowp = jnp.pad(rowp, ((0, _PARAM_ROWS - rowp.shape[0]), (0, 0))
                   ).astype(jnp.float32)                             # (16, C4)

    # group one-hot / expansion matrices, hoisted out of the per-step body
    def _onehot(n_items, reps):
        i = jnp.arange(n_items)[:, None] // reps
        grp = jnp.arange(G)[None, :]
        return (i == grp).astype(jnp.float32)

    oneh = jnp.concatenate([
        _onehot(CP, cpg * P),      # A_g: x_global column -> group   (CP, G)
        _onehot(C4, cpg * lpp),    # A_q: x_patch  column -> group   (C4, G)
        _onehot(C, cpg),           # E_c: channel -> group           (C,  G)
    ], axis=0)

    kernel = functools.partial(_attn_global_kernel, N=N, C=C, lpp=lpp,
                               M=M, P=P, G=G, scale=float(C) ** (-0.5))

    y = pl.pallas_call(
        kernel,
        out_shape=jax.ShapeDtypeStruct((B * N, C4), x_patch.dtype),
        grid=(B,),
        in_specs=[
            pl.BlockSpec((N, C4), lambda b: (b, 0)),            # qin (per batch)
            pl.BlockSpec((1, M, CP), lambda b: (b, 0, 0)),      # g   (per batch)
            pl.BlockSpec((2 * C, C4), lambda b: (0, 0)),        # wq | wp_exp
            pl.BlockSpec((CP, 2 * C), lambda b: (0, 0)),        # block-diag k|v
            pl.BlockSpec((_PARAM_ROWS, C4), lambda b: (0, 0)),  # packed params
            pl.BlockSpec((CP + C4 + C, G), lambda b: (0, 0)),   # one-hot mats
        ],
        out_specs=pl.BlockSpec((N, C4), lambda b: (b, 0)),
        input_output_aliases={0: 0},                            # write over qin
        compiler_params=pltpu.CompilerParams(
            dimension_semantics=("parallel",)),
    )(qin, g, wqp, wkv, rowp, oneh)

    # un-patchify only: nearest upsample + residual were fused into the kernel
    y = (y.reshape(B, hq, wq_, C, lp, lp)
          .transpose(0, 3, 1, 4, 2, 5)
          .reshape(B, C, Hp, Wp))
    return y


# ----------------------------- pure-JAX reference ------------------------------
def reference(x_patch, x_global, params, lp=2, gp=8):
    C = x_patch.shape[1]
    dn = ("NCHW", "OIHW", "NCHW")

    def gn(x):
        B, Cc, H, W = x.shape
        xg = x.reshape(B, NUM_GROUPS, -1)
        mean = xg.mean(-1, keepdims=True)
        var = ((xg - mean) ** 2).mean(-1, keepdims=True)
        xn = ((xg - mean) / jnp.sqrt(var + EPS)).reshape(B, Cc, H, W)
        return xn * params["gn_gamma"][None, :, None, None] + params["gn_beta"][None, :, None, None]

    h, hgl = gn(x_patch), gn(x_global)
    q = lax.conv_general_dilated(h, params["wq"], (lp, lp), "VALID",
                                 dimension_numbers=dn) + params["bq"][None, :, None, None]
    k = lax.conv_general_dilated(hgl, params["wk"], (gp, gp), "VALID", dimension_numbers=dn,
                                 feature_group_count=C) + params["bk"][None, :, None, None]
    v = lax.conv_general_dilated(hgl, params["wv"], (gp, gp), "VALID", dimension_numbers=dn,
                                 feature_group_count=C) + params["bv"][None, :, None, None]
    B, Cc, hq, wq_ = q.shape
    _, _, hk, wk_ = k.shape
    qf = q.reshape(B, Cc, hq * wq_).transpose(0, 2, 1)
    kf = k.reshape(B, Cc, hk * wk_)
    w_ = jnp.einsum("bnc,bcm->bnm", qf, kf) * float(Cc) ** (-0.5)
    w_ = jax.nn.softmax(w_, axis=2)
    vf = v.reshape(B, Cc, hk * wk_)
    hout = jnp.einsum("bcm,bnm->bcn", vf, w_).reshape(B, Cc, hq, wq_)
    hout = lax.conv_general_dilated(hout, params["wp"], (1, 1), "VALID",
                                    dimension_numbers=dn) + params["bp"][None, :, None, None]
    if lp > 1:
        hout = jnp.repeat(jnp.repeat(hout, lp, axis=2), lp, axis=3)
    return x_patch + hout


# ------------------------------------ main -------------------------------------
if __name__ == "__main__":
    B, C = 2, 32            # GroupNorm(32, C) requires C % 32 == 0
    Hp = Wp = 16            # x_patch spatial
    Hg = Wg = 16            # x_global spatial
    lp, gp = 2, 8

    key = jax.random.PRNGKey(0)
    ks = jax.random.split(key, 14)
    params = {
        "gn_gamma": 1.0 + 0.1 * jax.random.normal(ks[0], (C,), jnp.float32),
        "gn_beta": 0.1 * jax.random.normal(ks[1], (C,), jnp.float32),
        "wq": 0.05 * jax.random.normal(ks[2], (C, C, lp, lp), jnp.float32),
        "bq": 0.05 * jax.random.normal(ks[3], (C,), jnp.float32),
        "wk": 0.05 * jax.random.normal(ks[4], (C, 1, gp, gp), jnp.float32),
        "bk": 0.05 * jax.random.normal(ks[5], (C,), jnp.float32),
        "wv": 0.05 * jax.random.normal(ks[6], (C, 1, gp, gp), jnp.float32),
        "bv": 0.05 * jax.random.normal(ks[7], (C,), jnp.float32),
        "wp": 0.05 * jax.random.normal(ks[8], (C, C, 1, 1), jnp.float32),
        "bp": 0.05 * jax.random.normal(ks[9], (C,), jnp.float32),
        # TODO(synk): norm_global parameters exist in the PyTorch module but are
        # never used in forward(), so they are intentionally not materialized.
    }
    x_patch = jax.random.normal(ks[10], (B, C, Hp, Wp), jnp.float32)
    x_global = jax.random.normal(ks[11], (B, C, Hg, Wg), jnp.float32)

    fwd = jax.jit(functools.partial(attn_global_forward, lp=lp, gp=gp))
    out = jax.block_until_ready(fwd(x_patch, x_global, params))

    ref = jax.block_until_ready(reference(x_patch, x_global, params, lp=lp, gp=gp))
    err = float(jnp.max(jnp.abs(out - ref)))
    assert out.shape == x_patch.shape, (out.shape, x_patch.shape)
    assert err < 5e-2, f"max abs diff vs reference = {err}"
    print("KERNEL_OK")
</pallas_src>

<mosaic_0001>
module attributes {stable_mosaic.version = 11 : i64} {
  func.func @_attn_global_kernel(%arg0: i32, %arg1: memref<64x128xf32, #tpu.memory_space<vmem>>, %arg2: memref<1x4x2048xf32, #tpu.memory_space<vmem>>, %arg3: memref<64x128xbf16, #tpu.memory_space<vmem>>, %arg4: memref<2048x64xbf16, #tpu.memory_space<vmem>>, %arg5: memref<16x128xf32, #tpu.memory_space<vmem>>, %arg6: memref<2208x32xf32, #tpu.memory_space<vmem>>, %arg7: memref<64x128xf32, #tpu.memory_space<vmem>>) attributes {dimension_semantics = [#tpu.dimension_semantics<parallel>], iteration_bounds = array<i64: 2>, scalar_prefetch = 0 : i64, scratch_operands = 0 : i64, tpu.core_type = #tpu.core_type<tc>, window_params = [{transform_indices = @transform_0, window_bounds = array<i64: 64, 128>}, {transform_indices = @transform_1, window_bounds = array<i64: 1, 4, 2048>}, {pipeline_mode = #tpu.pipeline_mode<synchronous>, transform_indices = @transform_2, window_bounds = array<i64: 64, 128>}, {pipeline_mode = #tpu.pipeline_mode<synchronous>, transform_indices = @transform_3, window_bounds = array<i64: 2048, 64>}, {pipeline_mode = #tpu.pipeline_mode<synchronous>, transform_indices = @transform_4, window_bounds = array<i64: 16, 128>}, {pipeline_mode = #tpu.pipeline_mode<synchronous>, transform_indices = @transform_5, window_bounds = array<i64: 2208, 32>}, {transform_indices = @transform_6, window_bounds = array<i64: 64, 128>}]} {
    %c0 = arith.constant 0 : index
    %c0_0 = arith.constant 0 : index
    %0 = vector.load %arg5[%c0, %c0_0] : memref<16x128xf32, #tpu.memory_space<vmem>>, vector<16x128xf32>
    %1 = vector.extract_strided_slice %0 {offsets = [0, 0], sizes = [1, 128], strides = [1, 1]} : vector<16x128xf32> to vector<1x128xf32>
    %2 = vector.extract_strided_slice %0 {offsets = [1, 0], sizes = [1, 128], strides = [1, 1]} : vector<16x128xf32> to vector<1x128xf32>
    %3 = vector.extract_strided_slice %0 {offsets = [2, 0], sizes = [1, 32], strides = [1, 1]} : vector<16x128xf32> to vector<1x32xf32>
    %4 = vector.extract_strided_slice %0 {offsets = [3, 0], sizes = [1, 32], strides = [1, 1]} : vector<16x128xf32> to vector<1x32xf32>
    %5 = vector.extract_strided_slice %0 {offsets = [4, 0], sizes = [1, 32], strides = [1, 1]} : vector<16x128xf32> to vector<1x32xf32>
    %6 = vector.extract_strided_slice %0 {offsets = [5, 0], sizes = [1, 32], strides = [1, 1]} : vector<16x128xf32> to vector<1x32xf32>
    %7 = vector.extract_strided_slice %0 {offsets = [6, 0], sizes = [1, 32], strides = [1, 1]} : vector<16x128xf32> to vector<1x32xf32>
    %8 = vector.extract_strided_slice %0 {offsets = [7, 0], sizes = [1, 32], strides = [1, 1]} : vector<16x128xf32> to vector<1x32xf32>
    %9 = vector.extract_strided_slice %0 {offsets = [8, 0], sizes = [1, 32], strides = [1, 1]} : vector<16x128xf32> to vector<1x32xf32>
    %10 = vector.extract_strided_slice %0 {offsets = [9, 0], sizes = [1, 128], strides = [1, 1]} : vector<16x128xf32> to vector<1x128xf32>
    %c0_1 = arith.constant 0 : index
    %c0_2 = arith.constant 0 : index
    %11 = vector.load %arg1[%c0_1, %c0_2] : memref<64x128xf32, #tpu.memory_space<vmem>>, vector<64x128xf32>
    %c2048 = arith.constant 2048 : index
    %c0_3 = arith.constant 0 : index
    %12 = vector.load %arg6[%c2048, %c0_3] : memref<2208x32xf32, #tpu.memory_space<vmem>>, vector<128x32xf32>
    %cst = arith.constant dense<0.000000e+00> : vector<128xf32>
    %13 = vector.multi_reduction <add>, %11, %cst [0] : vector<64x128xf32> to vector<128xf32>
    %14 = vector.shape_cast %13 : vector<128xf32> to vector<1x128xf32>
    %15 = arith.mulf %11, %11 : vector<64x128xf32>
    %cst_4 = arith.constant dense<0.000000e+00> : vector<128xf32>
    %16 = vector.multi_reduction <add>, %15, %cst_4 [0] : vector<64x128xf32> to vector<128xf32>
    %17 = vector.shape_cast %16 : vector<128xf32> to vector<1x128xf32>
    %cst_5 = arith.constant dense<0.000000e+00> : vector<1x32xf32>
    %18 = tpu.matmul %14, %12, %cst_5 {dimension_numbers = #tpu.dot_dimension_numbers<[1], [0], [0], [1], [0, 0, 1, 1], [], []>} : vector<1x128xf32>, vector<128x32xf32>, vector<1x32xf32> -> vector<1x32xf32>
    %cst_6 = arith.constant 3.906250e-03 : f32
    %19 = vector.broadcast %cst_6 : f32 to vector<1x32xf32>
    %20 = arith.mulf %18, %19 : vector<1x32xf32>
    %cst_7 = arith.constant dense<0.000000e+00> : vector<1x32xf32>
    %21 = tpu.matmul %17, %12, %cst_7 {dimension_numbers = #tpu.dot_dimension_numbers<[1], [0], [0], [1], [0, 0, 1, 1], [], []>} : vector<1x128xf32>, vector<128x32xf32>, vector<1x32xf32> -> vector<1x32xf32>
    %cst_8 = arith.constant 3.906250e-03 : f32
    %22 = vector.broadcast %cst_8 : f32 to vector<1x32xf32>
    %23 = arith.mulf %21, %22 : vector<1x32xf32>
    %24 = arith.mulf %20, %20 : vector<1x32xf32>
    %25 = arith.subf %23, %24 : vector<1x32xf32>
    %cst_9 = arith.constant 9.99999997E-7 : f32
    %26 = vector.broadcast %cst_9 : f32 to vector<1x32xf32>
    %27 = arith.addf %25, %26 : vector<1x32xf32>
    %28 = math.rsqrt %27 : vector<1x32xf32>
    %cst_10 = arith.constant dense<0.000000e+00> : vector<1x128xf32>
    %29 = tpu.matmul %20, %12, %cst_10 {dimension_numbers = #tpu.dot_dimension_numbers<[1], [1], [0], [0], [0, 0, 1, 0], [], []>} : vector<1x32xf32>, vector<128x32xf32>, vector<1x128xf32> -> vector<1x128xf32>
    %cst_11 = arith.constant dense<0.000000e+00> : vector<1x128xf32>
    %30 = tpu.matmul %28, %12, %cst_11 {dimension_numbers = #tpu.dot_dimension_numbers<[1], [1], [0], [0], [0, 0, 1, 0], [], []>} : vector<1x32xf32>, vector<128x32xf32>, vector<1x128xf32> -> vector<1x128xf32>
    %31 = arith.mulf %1, %30 : vector<1x128xf32>
    %32 = arith.mulf %29, %31 : vector<1x128xf32>
    %33 = arith.subf %2, %32 : vector<1x128xf32>
    %34 = vector.broadcast %31 : vector<1x128xf32> to vector<64x128xf32>
    %35 = arith.mulf %11, %34 : vector<64x128xf32>
    %36 = vector.broadcast %33 : vector<1x128xf32> to vector<64x128xf32>
    %37 = arith.addf %35, %36 : vector<64x128xf32>
    %c0_12 = arith.constant 0 : index
    %c0_13 = arith.constant 0 : index
    %38 = vector.load %arg3[%c0_12, %c0_13] : memref<64x128xbf16, #tpu.memory_space<vmem>>, vector<32x128xbf16>
    %39 = arith.truncf %37 : vector<64x128xf32> to vector<64x128xbf16>
    %cst_14 = arith.constant dense<0.000000e+00> : vector<64x32xf32>
    %40 = tpu.matmul %39, %38, %cst_14 {dimension_numbers = #tpu.dot_dimension_numbers<[1], [1], [0], [0], [0, 0, 1, 0], [], []>} : vector<64x128xbf16>, vector<32x128xbf16>, vector<64x32xf32> -> vector<64x32xf32>
    %41 = vector.broadcast %5 : vector<1x32xf32> to vector<64x32xf32>
    %42 = arith.addf %40, %41 : vector<64x32xf32>
    %c0_15 = arith.constant 0 : index
    %c0_16 = arith.constant 0 : index
    %c0_17 = arith.constant 0 : index
    %43 = vector.load %arg2[%c0_15, %c0_16, %c0_17] : memref<1x4x2048xf32, #tpu.memory_space<vmem>>, vector<1x4x2048xf32>
    %44 = vector.shape_cast %43 : vector<1x4x2048xf32> to vector<4x2048xf32>
    %c0_18 = arith.constant 0 : index
    %c0_19 = arith.constant 0 : index
    %45 = vector.load %arg6[%c0_18, %c0_19] : memref<2208x32xf32, #tpu.memory_space<vmem>>, vector<2048x32xf32>
    %c2176 = arith.constant 2176 : index
    %c0_20 = arith.constant 0 : index
    %46 = vector.load %arg6[%c2176, %c0_20] : memref<2208x32xf32, #tpu.memory_space<vmem>>, vector<32x32xf32>
    %cst_21 = arith.constant dense<0.000000e+00> : vector<2048xf32>
    %47 = vector.multi_reduction <add>, %44, %cst_21 [0] : vector<4x2048xf32> to vector<2048xf32>
    %48 = vector.shape_cast %47 : vector<2048xf32> to vector<1x2048xf32>
    %49 = arith.mulf %44, %44 : vector<4x2048xf32>
    %cst_22 = arith.constant dense<0.000000e+00> : vector<2048xf32>
    %50 = vector.multi_reduction <add>, %49, %cst_22 [0] : vector<4x2048xf32> to vector<2048xf32>
    %51 = vector.shape_cast %50 : vector<2048xf32> to vector<1x2048xf32>
    %cst_23 = arith.constant dense<0.000000e+00> : vector<1x32xf32>
    %52 = tpu.matmul %48, %45, %cst_23 {dimension_numbers = #tpu.dot_dimension_numbers<[1], [0], [0], [1], [0, 0, 1, 1], [], []>} : vector<1x2048xf32>, vector<2048x32xf32>, vector<1x32xf32> -> vector<1x32xf32>
    %cst_24 = arith.constant 3.906250e-03 : f32
    %53 = vector.broadcast %cst_24 : f32 to vector<1x32xf32>
    %54 = arith.mulf %52, %53 : vector<1x32xf32>
    %cst_25 = arith.constant dense<0.000000e+00> : vector<1x32xf32>
    %55 = tpu.matmul %51, %45, %cst_25 {dimension_numbers = #tpu.dot_dimension_numbers<[1], [0], [0], [1], [0, 0, 1, 1], [], []>} : vector<1x2048xf32>, vector<2048x32xf32>, vector<1x32xf32> -> vector<1x32xf32>
    %cst_26 = arith.constant 3.906250e-03 : f32
    %56 = vector.broadcast %cst_26 : f32 to vector<1x32xf32>
    %57 = arith.mulf %55, %56 : vector<1x32xf32>
    %58 = arith.mulf %54, %54 : vector<1x32xf32>
    %59 = arith.subf %57, %58 : vector<1x32xf32>
    %cst_27 = arith.constant 9.99999997E-7 : f32
    %60 = vector.broadcast %cst_27 : f32 to vector<1x32xf32>
    %61 = arith.addf %59, %60 : vector<1x32xf32>
    %62 = math.rsqrt %61 : vector<1x32xf32>
    %cst_28 = arith.constant dense<0.000000e+00> : vector<1x32xf32>
    %63 = tpu.matmul %54, %46, %cst_28 {dimension_numbers = #tpu.dot_dimension_numbers<[1], [1], [0], [0], [0, 0, 1, 0], [], []>} : vector<1x32xf32>, vector<32x32xf32>, vector<1x32xf32> -> vector<1x32xf32>
    %cst_29 = arith.constant dense<0.000000e+00> : vector<1x32xf32>
    %64 = tpu.matmul %62, %46, %cst_29 {dimension_numbers = #tpu.dot_dimension_numbers<[1], [1], [0], [0], [0, 0, 1, 0], [], []>} : vector<1x32xf32>, vector<32x32xf32>, vector<1x32xf32> -> vector<1x32xf32>
    %65 = arith.mulf %3, %64 : vector<1x32xf32>
    %66 = arith.mulf %63, %65 : vector<1x32xf32>
    %67 = arith.subf %4, %66 : vector<1x32xf32>
    %68 = arith.truncf %44 : vector<4x2048xf32> to vector<4x2048xbf16>
    %c0_30 = arith.constant 0 : index
    %c0_31 = arith.constant 0 : index
    %69 = vector.load %arg4[%c0_30, %c0_31] : memref<2048x64xbf16, #tpu.memory_space<vmem>>, vector<2048x64xbf16>
    %cst_32 = arith.constant dense<0.000000e+00> : vector<4x64xf32>
    %70 = tpu.matmul %68, %69, %cst_32 {dimension_numbers = #tpu.dot_dimension_numbers<[1], [0], [0], [1], [0, 0, 1, 1], [], []>} : vector<4x2048xbf16>, vector<2048x64xbf16>, vector<4x64xf32> -> vector<4x64xf32>
    %71 = vector.extract_strided_slice %70 {offsets = [0, 0], sizes = [4, 32], strides = [1, 1]} : vector<4x64xf32> to vector<4x32xf32>
    %72 = vector.broadcast %65 : vector<1x32xf32> to vector<4x32xf32>
    %73 = arith.mulf %71, %72 : vector<4x32xf32>
    %74 = arith.mulf %67, %8 : vector<1x32xf32>
    %75 = arith.addf %74, %6 : vector<1x32xf32>
    %76 = vector.broadcast %75 : vector<1x32xf32> to vector<4x32xf32>
    %77 = arith.addf %73, %76 : vector<4x32xf32>
    %78 = vector.extract_strided_slice %70 {offsets = [0, 32], sizes = [4, 32], strides = [1, 1]} : vector<4x64xf32> to vector<4x32xf32>
    %79 = vector.broadcast %65 : vector<1x32xf32> to vector<4x32xf32>
    %80 = arith.mulf %78, %79 : vector<4x32xf32>
    %81 = arith.mulf %67, %9 : vector<1x32xf32>
    %82 = arith.addf %81, %7 : vector<1x32xf32>
    %83 = vector.broadcast %82 : vector<1x32xf32> to vector<4x32xf32>
    %84 = arith.addf %80, %83 : vector<4x32xf32>
    %85 = arith.truncf %42 : vector<64x32xf32> to vector<64x32xbf16>
    %86 = arith.truncf %77 : vector<4x32xf32> to vector<4x32xbf16>
    %cst_33 = arith.constant dense<0.000000e+00> : vector<64x4xf32>
    %87 = tpu.matmul %85, %86, %cst_33 {dimension_numbers = #tpu.dot_dimension_numbers<[1], [1], [0], [0], [0, 0, 1, 0], [], []>} : vector<64x32xbf16>, vector<4x32xbf16>, vector<64x4xf32> -> vector<64x4xf32>
    %cst_34 = arith.constant 0.176776692 : f32
    %88 = vector.broadcast %cst_34 : f32 to vector<64x4xf32>
    %89 = arith.mulf %87, %88 : vector<64x4xf32>
    %cst_35 = arith.constant dense<0xFF800000> : vector<64xf32>
    %90 = vector.multi_reduction <maximumf>, %89, %cst_35 [1] : vector<64x4xf32> to vector<64xf32>
    %91 = vector.shape_cast %90 : vector<64xf32> to vector<64x1xf32>
    %92 = vector.broadcast %91 : vector<64x1xf32> to vector<64x4xf32>
    %93 = arith.subf %89, %92 : vector<64x4xf32>
    %94 = math.exp %93 : vector<64x4xf32>
    %cst_36 = arith.constant dense<0.000000e+00> : vector<64xf32>
    %95 = vector.multi_reduction <add>, %94, %cst_36 [1] : vector<64x4xf32> to vector<64xf32>
    %96 = vector.shape_cast %95 : vector<64xf32> to vector<64x1xf32>
    %97 = tpu.reciprocal %96 {approx = true} : vector<64x1xf32> -> vector<64x1xf32>
    %98 = vector.broadcast %97 : vector<64x1xf32> to vector<64x4xf32>
    %99 = arith.mulf %94, %98 : vector<64x4xf32>
    %100 = arith.truncf %99 : vector<64x4xf32> to vector<64x4xbf16>
    %101 = arith.truncf %84 : vector<4x32xf32> to vector<4x32xbf16>
    %cst_37 = arith.constant dense<0.000000e+00> : vector<64x32xf32>
    %102 = tpu.matmul %100, %101, %cst_37 {dimension_numbers = #tpu.dot_dimension_numbers<[1], [0], [0], [1], [0, 0, 1, 1], [], []>} : vector<64x4xbf16>, vector<4x32xbf16>, vector<64x32xf32> -> vector<64x32xf32>
    %c32 = arith.constant 32 : index
    %c0_38 = arith.constant 0 : index
    %103 = vector.load %arg3[%c32, %c0_38] : memref<64x128xbf16, #tpu.memory_space<vmem>>, vector<32x128xbf16>
    %104 = arith.truncf %102 : vector<64x32xf32> to vector<64x32xbf16>
    %cst_39 = arith.constant dense<0.000000e+00> : vector<64x128xf32>
    %105 = tpu.matmul %104, %103, %cst_39 {dimension_numbers = #tpu.dot_dimension_numbers<[1], [0], [0], [1], [0, 0, 1, 1], [], []>} : vector<64x32xbf16>, vector<32x128xbf16>, vector<64x128xf32> -> vector<64x128xf32>
    %106 = arith.addf %11, %105 : vector<64x128xf32>
    %107 = vector.broadcast %10 : vector<1x128xf32> to vector<64x128xf32>
    %108 = arith.addf %106, %107 : vector<64x128xf32>
    %c0_40 = arith.constant 0 : index
    %c0_41 = arith.constant 0 : index
    %109 = vector.load %arg7[%c0_40, %c0_41] : memref<64x128xf32, #tpu.memory_space<vmem>>, vector<64x128xf32>
    tpu.vector_store %arg7[%c0_40, %c0_41], %108 {strides = array<i32>} : memref<64x128xf32, #tpu.memory_space<vmem>>, vector<64x128xf32>,
    return
  }
  func.func @transform_0(%arg0: i32) -> (i32, i32) {
    %c0_i32 = arith.constant 0 : i32
    %c0_i32_0 = arith.constant 0 : i32
    return %arg0, %c0_i32 : i32, i32
  }
  func.func @transform_1(%arg0: i32) -> (i32, i32, i32) {
    %c0_i32 = arith.constant 0 : i32
    %c0_i32_0 = arith.constant 0 : i32
    %c0_i32_1 = arith.constant 0 : i32
    return %arg0, %c0_i32, %c0_i32_0 : i32, i32, i32
  }
  func.func @transform_2(%arg0: i32) -> (i32, i32) {
    %c0_i32 = arith.constant 0 : i32
    %c0_i32_0 = arith.constant 0 : i32
    %c0_i32_1 = arith.constant 0 : i32
    return %c0_i32, %c0_i32_0 : i32, i32
  }
  func.func @transform_3(%arg0: i32) -> (i32, i32) {
    %c0_i32 = arith.constant 0 : i32
    %c0_i32_0 = arith.constant 0 : i32
    %c0_i32_1 = arith.constant 0 : i32
    return %c0_i32, %c0_i32_0 : i32, i32
  }
  func.func @transform_4(%arg0: i32) -> (i32, i32) {
    %c0_i32 = arith.constant 0 : i32
    %c0_i32_0 = arith.constant 0 : i32
    %c0_i32_1 = arith.constant 0 : i32
    return %c0_i32, %c0_i32_0 : i32, i32
  }
  func.func @transform_5(%arg0: i32) -> (i32, i32) {
    %c0_i32 = arith.constant 0 : i32
    %c0_i32_0 = arith.constant 0 : i32
    %c0_i32_1 = arith.constant 0 : i32
    return %c0_i32, %c0_i32_0 : i32, i32
  }
  func.func @transform_6(%arg0: i32) -> (i32, i32) {
    %c0_i32 = arith.constant 0 : i32
    %c0_i32_0 = arith.constant 0 : i32
    return %arg0, %c0_i32 : i32, i32
  }
}

</mosaic_0001>

<bundles_post_ra>
// kernel: attn_global_forward.1
= control target key start
LH: loop header
LB: loop body
LE: loop exit
PB: predicated region body
PF: predicated region fallthrough
CT: control target
= control target key end

     0   :  { %s6647_s21 = smov 0   ;;  %s8902_s0 = inlined_call_operand.vmem [shape: f32[128,128], index: 0, kind: input, shape index: {}, may-alias: {0,6}]   ;;  %s8903_s1 = inlined_call_operand.vmem [shape: f32[2,4,2048], index: 1, kind: input, shape index: {}]   ;;  %s8904_s2 = inlined_call_operand.vmem [shape: bf16[64,128], index: 2, kind: input, shape index: {}]   ;;  %s8905_s3 = inlined_call_operand.vmem [shape: bf16[2048,64], index: 3, kind: input, shape index: {}]   ;;  %s8906_s4 = inlined_call_operand.vmem [shape: f32[16,128], index: 4, kind: input, shape index: {}]   ;;  %s8907_s5 = inlined_call_operand.vmem [shape: f32[2208,32], index: 5, kind: input, shape index: {}]   ;;  %s8908_s6 = inlined_call_operand.vmem [shape: f32[128,128], index: 6, kind: output, shape index: {}, may-alias: {0,6}]  }
   0x1 LB: > { %s6653_s22 = sadd.s32 4294967295, %s6605_s21   ;;  %p4507_p0 = scmp.ge.s32.totalorder %s6605_s21, 1  ;;  %s6605_s21 = sphi %s6647_s21, %s16_s21  }
   0x2   : > { %p223_p1 = scmp.lt.s32.totalorder %s6605_s21, 3 }
   0x4   : > { %p224_p2 = pnand %p4507_p0, %p223_p1 }
   0x6   : > { %227 = sbr.rel (%p224_p2) target bundleno = 2340 (0x924), region = 44 }
   0xd   : > { %v286_v0 = vld [vmem:[%s8907_s5 + $0x800] sm:$0xff]  ;;  %v287_v1 = vld [vmem:[%s8907_s5 + $0x808] sm:$0xff]  ;;  %v288_v2 = vld [vmem:[%s8907_s5 + $0x810] sm:$0xff]  ;;  %v8911_v3 = vmov 0.0|0.0   ;;  %s4508_s7 = sshll.u32 %s6653_s22, 3  ;;  %vm6608_vm0 = vmmov 0  }
   0xe   : > { %5747 = vmatprep.subr.bf16.mxu0 %v8911_v3  ;;  %v6667_v4 = vpack.c.bf16 %v287_v1, %v286_v0  ;;  %5771 = vmatprep.subr.bf16.mxu1 %v8911_v3  ;;  %v289_v5 = vld [vmem:[%s8907_s5 + $0x818] sm:$0xff]  ;;  %v8909_v6 = vmov 0.0   ;;  %p259_p3 = scmp.lt.s32.totalorder %s4508_s7, 15  ;;  %v290_v8 = vld [vmem:[%s8907_s5 + $0x820] sm:$0xff]  ;;  %v291_v9 = vld [vmem:[%s8907_s5 + $0x828] sm:$0xff]  ;;  %vm482_vm1 = vcmask 261120  }
   0xf   : > { %5573 = vmatprep.mubr.msk.f32.mxu0 %vm6608_vm0, %v8909_v6  ;;  %5608 = vmatprep.mubr.msk.f32.mxu1 %vm6608_vm0, %v8909_v6  ;;  %v6680_v7 = vpack.c.bf16 %v289_v5, %v288_v2  ;;  %v292_v10 = vld [vmem:[%s8907_s5 + $0x830] sm:$0xff]  ;;  %v293_v11 = vld [vmem:[%s8907_s5 + $0x838] sm:$0xff]  ;;  %v6701_v12 = vpack.c.bf16 %v291_v9, %v290_v8  ;;  %v294_v20 = vld [vmem:[%s8907_s5 + $0x840] sm:$0xff]  ;;  %v8969_v5 = vmov 0  ;;  %p264_p4 = scmp.lt.s32.totalorder %s6653_s22, 1  ;;  %vm1088_vm3 = vcmask 1043456  }
  0x10   : > { %5749 = vmatpush3.bf16.msra.mxu0 %v6667_v4  ;;  %5773 = vmatpush3.bf16.msra.mxu1 %v6667_v4  ;;  %s9084_s7 = smov (!%p259_p3, %s4508_s7), 15  ;;  %v295_v21 = vld [vmem:[%s8907_s5 + $0x848] sm:$0xff]  ;;  %v6725_v24 = vpack.c.bf16 %v293_v11, %v292_v10  ;;  %v296_v31 = vld [vmem:[%s8907_s5 + $0x850] sm:$0xff]  ;;  %v297_v32 = vld [vmem:[%s8907_s5 + $0x858] sm:$0xff]  ;;  %vm4132_vm4 = vcmask 31744   ;;  %s6610_s29 = smov 32  }
  0x11   : > { %5750 = vmatprep.subr.bf16.mxu0 %v8911_v3  ;;  %5774 = vmatprep.subr.bf16.mxu1 %v8911_v3  ;;  %s4509_s16 = sshll.u32 %s9084_s7, 3  ;;  %v6739_v35 = vpack.c.bf16 %v295_v21, %v294_v20  ;;  %v298_v41 = vld [vmem:[%s8907_s5 + $0x860] sm:$0xff]  ;;  %v299_v42 = vld [vmem:[%s8907_s5 + $0x868] sm:$0xff]  ;;  %v6752_v45 = vpack.c.bf16 %v297_v32, %v296_v31  ;;  %v300_v50 = vld [vmem:[%s8907_s5 + $0x870] sm:$0xff]  ;;  %s9086_s22 = smov (!%p264_p4, %s6653_s22), 1  ;;  %vm4241_vm5 = vcmask 1041408  }
  0x12   : > { %s6708_s19 = scalar_lea.vmem %s8902_s0, %s4509_s16  ;;  %v5766_v52 = vpack.c.bf16 %v299_v42, %v298_v41  ;;  %v301_v53 = vld [vmem:[%s8907_s5 + $0x878] sm:$0xff]  ;;  %vm6772_vm2 = vmpackc.low %vm482_vm1, %vm482_vm1  ;;  %v804_v20 = vld [vmem:[%s8907_s5] sm:$0xff]  ;;  %s4704_s23 = sshll.u32 %s9086_s22, 6 }
  0x13   : > { %v278_v13 = vld [vmem:[%s6708_s19] sm:$0xff]  ;;  %v279_v14 = vld [vmem:[%s6708_s19 + $0x8] sm:$0xff]  ;;  %v280_v15 = vld [vmem:[%s6708_s19 + $0x10] sm:$0xff]  ;;  %v5769_v58 = vpack.c.bf16 %v301_v53, %v300_v50  ;;  %v8970_v5 = vsel %vm6772_vm2, 4294967295, %v8969_v5  ;;  %s6937_s26 = scalar_lea.vmem %s8903_s1, %s4704_s23  ;;  %s6611_s30 = smov 96  }
  0x14   : > { %5752 = vmatpush3.bf16.msra.mxu0 %v6680_v7  ;;  %5776 = vmatpush3.bf16.msra.mxu1 %v6680_v7  ;;  %v281_v16 = vld [vmem:[%s6708_s19 + $0x18] sm:$0xff]  ;;  %v302_v17 = vadd.f32 %v279_v14, %v278_v13  ;;  %v315_v18 = vmul.f32 %v278_v13, %v278_v13  ;;  %v316_v19 = vmul.f32 %v279_v14, %v279_v14  ;;  %v282_v22 = vld [vmem:[%s6708_s19 + $0x20] sm:$0xff]  ;;  %v283_v25 = vld [vmem:[%s6708_s19 + $0x28] sm:$0xff]  ;;  %s8882_s13 = scalar_lea.vmem %s8908_s6, %s4509_s16 }
  0x15   : > { %5753 = vmatprep.subr.bf16.mxu0 %v8911_v3  ;;  %5777 = vmatprep.subr.bf16.mxu1 %v8911_v3  ;;  %v317_v23 = vmul.f32 %v280_v15, %v280_v15  ;;  %v318_v27 = vmul.f32 %v281_v16, %v281_v16  ;;  %v284_v29 = vld [vmem:[%s6708_s19 + $0x30] sm:$0xff]  ;;  %v319_v33 = vmul.f32 %v282_v22, %v282_v22  ;;  %v285_v36 = vld [vmem:[%s6708_s19 + $0x38] sm:$0xff]  ;;  %v805_v21 = vld [vmem:[%s8907_s5 + $0x8] sm:$0xff] }
  0x16   : > { %v303_v26 = vadd.f32 %v302_v17, %v280_v15  ;;  %v323_v28 = vadd.f32 %v316_v19, %v315_v18  ;;  %v320_v38 = vmul.f32 %v283_v25, %v283_v25  ;;  %v321_v43 = vmul.f32 %v284_v29, %v284_v29  ;;  %8971 = vst [vmem:[#allocation2_spill] sm:$0xff] %v8970_v5  ;;  %v820_v17 = vld [vmem:[%s8907_s5 + $0x80] sm:$0xff]  ;;  %v821_v18 = vld [vmem:[%s8907_s5 + $0x88] sm:$0xff]  ;;  %v815_v53 = vld [vmem:[%s8907_s5 + $0x58] sm:$0xff] }
  0x17   : > { %v322_v47 = vmul.f32 %v285_v36, %v285_v36  ;;  %v6846_v19 = vpack.c.bf16 %v821_v18, %v820_v17  ;;  %v808_v32 = vld [vmem:[%s8907_s5 + $0x20] sm:$0xff]  ;;  %v853_v17 = vld [vmem:[%s8907_s5 + $0x188] sm:$0xff] }
  0x18   : > { %5755 = vmatpush3.bf16.msra.mxu0 %v6701_v12  ;;  %5779 = vmatpush3.bf16.msra.mxu1 %v6701_v12  ;;  %v304_v30 = vadd.f32 %v303_v26, %v281_v16  ;;  %v324_v34 = vadd.f32 %v323_v28, %v317_v23  ;;  %v6857_v23 = vpack.c.bf16 %v805_v21, %v804_v20  ;;  %v807_v26 = vld [vmem:[%s8907_s5 + $0x18] sm:$0xff]  ;;  %v824_v28 = vld [vmem:[%s8907_s5 + $0xa0] sm:$0xff] }
  0x19   : > { %5756 = vmatprep.subr.bf16.mxu0 %v8911_v3  ;;  %5780 = vmatprep.subr.bf16.mxu1 %v8911_v3  ;;  %v828_v42 = vld [vmem:[%s8907_s5 + $0xc0] sm:$0xff] }
  0x1a   : > { %v305_v37 = vadd.f32 %v304_v30, %v282_v22  ;;  %v325_v39 = vadd.f32 %v324_v34, %v318_v27  ;;  %v822_v22 = vld [vmem:[%s8907_s5 + $0x90] sm:$0xff]  ;;  %v6402_v34 = vld [vmem:[%s8904_s2] sm:$0xff]  }
  0x1b   : > { %v6947_v50 = vld [vmem:[%s6937_s26] sm:$0xff] }
  0x1c   : > { %5758 = vmatpush3.bf16.msra.mxu0 %v6725_v24  ;;  %5782 = vmatpush3.bf16.msra.mxu1 %v6725_v24  ;;  %v306_v40 = vadd.f32 %v305_v37, %v283_v25  ;;  %v326_v44 = vadd.f32 %v325_v39, %v319_v33  ;;  %v806_v25 = vld [vmem:[%s8907_s5 + $0x10] sm:$0xff]  ;;  %v809_v33 = vld [vmem:[%s8907_s5 + $0x28] sm:$0xff] }
  0x1d   : > { %5759 = vmatprep.subr.bf16.mxu0 %v8911_v3  ;;  %5783 = vmatprep.subr.bf16.mxu1 %v8911_v3  ;;  %v6878_v30 = vpack.c.bf16 %v807_v26, %v806_v25  ;;  %v6899_v37 = vpack.c.bf16 %v809_v33, %v808_v32  ;;  %v810_v39 = vld [vmem:[%s8907_s5 + $0x30] sm:$0xff]  ;;  %v885_v25 = vld [vmem:[%s8907_s5 + $0x288] sm:$0xff]  ;;  %v868_v32 = vld [vmem:[%s8907_s5 + $0x200] sm:$0xff] }
  0x1e   : > { %v307_v46 = vadd.f32 %v306_v40, %v284_v29  ;;  %v327_v48 = vadd.f32 %v326_v44, %v320_v38  ;;  %v825_v29 = vld [vmem:[%s8907_s5 + $0xa8] sm:$0xff]  ;;  %v811_v40 = vld [vmem:[%s8907_s5 + $0x38] sm:$0xff] }
  0x1f   : > { %v6881_v31 = vpack.c.bf16 %v825_v29, %v824_v28  ;;  %v6911_v41 = vpack.c.bf16 %v811_v40, %v810_v39  ;;  %v869_v33 = vld [vmem:[%s8907_s5 + $0x208] sm:$0xff]  ;;  %v887_v39 = vld [vmem:[%s8907_s5 + $0x298] sm:$0xff] }
  0x20   : > { %5761 = vmatpush3.bf16.msra.mxu0 %v6739_v35  ;;  %5785 = vmatpush3.bf16.msra.mxu1 %v6739_v35  ;;  %v308_v49 = vadd.f32 %v307_v46, %v285_v36  ;;  %v328_v51 = vadd.f32 %v327_v48, %v321_v43  ;;  %v827_v36 = vld [vmem:[%s8907_s5 + $0xb8] sm:$0xff]  ;;  %v829_v43 = vld [vmem:[%s8907_s5 + $0xc8] sm:$0xff]  ;;  %v830_v48 = vld [vmem:[%s8907_s5 + $0xd0] sm:$0xff] }
  0x21   : > { %5762 = vmatprep.subr.bf16.mxu0 %v8911_v3  ;;  %5786 = vmatprep.subr.bf16.mxu1 %v8911_v3  ;;  %v6923_v44 = vpack.c.bf16 %v829_v43, %v828_v42  ;;  %v813_v46 = vld [vmem:[%s8907_s5 + $0x48] sm:$0xff]  ;;  %v870_v42 = vld [vmem:[%s8907_s5 + $0x210] sm:$0xff]  ;;  %v871_v43 = vld [vmem:[%s8907_s5 + $0x218] sm:$0xff] }
  0x22   : > { %v309_v54 = vrot.slane %v308_v49, 4  ;;  %v329_v55 = vadd.f32 %v328_v51, %v322_v47 }
  0x24   : > { %5764 = vmatpush3.bf16.msra.mxu0 %v6752_v45  ;;  %5788 = vmatpush3.bf16.msra.mxu1 %v6752_v45  ;;  %v310_v56 = vadd.f32 %v309_v54, %v308_v49  ;;  %v330_v57 = vrot.slane %v329_v55, 4  ;;  %v831_v49 = vld [vmem:[%s8907_s5 + $0xd8] sm:$0xff]  ;;  %v6959_v54 = vcombine.high %v6947_v50, %v6947_v50 }
  0x25   : > { %5765 = vmatprep.subr.bf16.mxu0 %v8911_v3  ;;  %5789 = vmatprep.subr.bf16.mxu1 %v8911_v3  ;;  %v6949_v51 = vpack.c.bf16 %v831_v49, %v830_v48  ;;  %v889_v48 = vld [vmem:[%s8907_s5 + $0x2a8] sm:$0xff] }
  0x26   : > { %v311_v59 = vrot.slane %v310_v56, 2  ;;  %v331_v60 = vadd.f32 %v330_v57, %v329_v55  ;;  %8972 = vst [vmem:[#allocation3_spill] sm:$0xff] %v6959_v54  ;;  %v1096_v57 = vsel %vm1088_vm3, %v6959_v54, 0.0 }
  0x28   : > { %5767 = vmatpush3.bf16.msra.mxu0 %v5766_v52  ;;  %5791 = vmatpush3.bf16.msra.mxu1 %v5766_v52  ;;  %v312_v61 = vadd.f32 %v311_v59, %v310_v56  ;;  %v332_v62 = vrot.slane %v331_v60, 2  ;;  %v6403_v56 = vld [vmem:[%s8904_s2 + $0x8] sm:$0xff]  }
  0x29   : > { %5768 = vmatprep.subr.bf16.mxu0 %v8911_v3  ;;  %5792 = vmatprep.subr.bf16.mxu1 %v8911_v3  ;;  %v833_v59 = vld [vmem:[%s8907_s5 + $0xe8] sm:$0xff] }
  0x2a   : > { %v313_v63 = vrot.slane %v312_v61, 1  ;;  %v333_v0 = vadd.f32 %v332_v62, %v331_v60  ;;  %v1097_v60 = vrot.slane %v1096_v57, 4 }
  0x2c   : > { %5770 = vmatpush3.bf16.msra.mxu0 %v5769_v58  ;;  %5794 = vmatpush3.bf16.msra.mxu1 %v5769_v58  ;;  %v314_v1 = vadd.f32 %v313_v63, %v312_v61  ;;  %v334_v2 = vrot.slane %v333_v0, 1  ;;  %v1089_v61 = vsel %vm1088_vm3, %v6947_v50, 0.0  ;;  %v816_v63 = vld [vmem:[%s8907_s5 + $0x60] sm:$0xff] }
  0x2d   : > { %5795 = vmatprep.subr.bf16.mxu0 %v8911_v3  ;;  %5827 = vmatprep.subr.bf16.mxu1 %v8911_v3 }
  0x2e   : > { %v335_v8 = vadd.f32 %v334_v2, %v333_v0  ;;  %v817_v0 = vld [vmem:[%s8907_s5 + $0x68] sm:$0xff] }
  0x2f   : > { %5574 = vmatmul.mubr.f32.vlgmr.msra.gmra.mrb[0].mxu0 %v314_v1  ;;  %v1090_v1 = vrot.slane %v1089_v61, 4  ;;  %v6986_v2 = vpack.c.bf16 %v817_v0, %v816_v63  ;;  %v892_v0 = vld [vmem:[%s8907_s5 + $0x2c0] sm:$0xff] }
  0x30   : > { %5643 = vmatprep.mubr.msk.f32.mxu0 %vm6608_vm0, %v8909_v6  ;;  %5609 = vmatmul.mubr.f32.vlgmr.msra.gmra.mrb[0].mxu1 %v335_v8  ;;  %v1098_v8 = vadd.f32 %v1097_v60, %v1096_v57  ;;  %v890_v57 = vld [vmem:[%s8907_s5 + $0x2b0] sm:$0xff] }
  0x31   : > { %5678 = vmatprep.mubr.msk.f32.mxu1 %vm6608_vm0, %v8909_v6  ;;  %v874_v60 = vld [vmem:[%s8907_s5 + $0x230] sm:$0xff] }
  0x35   : > { %5798 = vmatpush3.bf16.xpose.msk.msra.mxu0 %vm6772_vm2, %v6667_v4  ;;  %5830 = vmatpush3.bf16.xpose.msk.msra.mxu1 %vm6772_vm2, %v6667_v4 }
  0x36   : > { %5799 = vmatprep.subr.bf16.mxu0 %v8911_v3  ;;  %5831 = vmatprep.subr.bf16.mxu1 %v8911_v3 }
  0x3d   : > { %5802 = vmatpush3.bf16.xpose.msk.msra.mxu0 %vm6772_vm2, %v6680_v7  ;;  %5834 = vmatpush3.bf16.xpose.msk.msra.mxu1 %vm6772_vm2, %v6680_v7 }
  0x3e   : > { %5803 = vmatprep.subr.bf16.mxu0 %v8911_v3  ;;  %5835 = vmatprep.subr.bf16.mxu1 %v8911_v3 }
  0x45   : > { %5806 = vmatpush3.bf16.xpose.msk.msra.mxu0 %vm6772_vm2, %v6701_v12  ;;  %5838 = vmatpush3.bf16.xpose.msk.msra.mxu1 %vm6772_vm2, %v6701_v12 }
  0x46   : > { %5807 = vmatprep.subr.bf16.mxu0 %v8911_v3  ;;  %5839 = vmatprep.subr.bf16.mxu1 %v8911_v3 }
  0x4d   : > { %5810 = vmatpush3.bf16.xpose.msk.msra.mxu0 %vm6772_vm2, %v6725_v24  ;;  %5842 = vmatpush3.bf16.xpose.msk.msra.mxu1 %vm6772_vm2, %v6725_v24  ;;  %v823_v24 = vld [vmem:[%s8907_s5 + $0x98] sm:$0xff] }
  0x4e   : > { %5811 = vmatprep.subr.bf16.mxu0 %v8911_v3  ;;  %5843 = vmatprep.subr.bf16.mxu1 %v8911_v3  ;;  %v6869_v27 = vpack.c.bf16 %v823_v24, %v822_v22  ;;  %v884_v24 = vld [vmem:[%s8907_s5 + $0x280] sm:$0xff] }
  0x4f   : > { %v7023_v29 = vpack.c.bf16 %v885_v25, %v884_v24 }
  0x55   : > { %5814 = vmatpush3.bf16.xpose.msk.msra.mxu0 %vm6772_vm2, %v6739_v35  ;;  %5846 = vmatpush3.bf16.xpose.msk.msra.mxu1 %vm6772_vm2, %v6739_v35  ;;  %v826_v35 = vld [vmem:[%s8907_s5 + $0xb0] sm:$0xff] }
  0x56   : > { %5815 = vmatprep.subr.bf16.mxu0 %v8911_v3  ;;  %5847 = vmatprep.subr.bf16.mxu1 %v8911_v3  ;;  %v6902_v38 = vpack.c.bf16 %v827_v36, %v826_v35  ;;  %v7031_v35 = vpack.c.bf16 %v869_v33, %v868_v32  ;;  %v886_v36 = vld [vmem:[%s8907_s5 + $0x290] sm:$0xff] }
  0x57   : > { %v7041_v40 = vpack.c.bf16 %v887_v39, %v886_v36  ;;  %v881_v36 = vld [vmem:[%s8907_s5 + $0x268] sm:$0xff] }
  0x5d   : > { %5818 = vmatpush3.bf16.xpose.msk.msra.mxu0 %vm6772_vm2, %v6752_v45  ;;  %5850 = vmatpush3.bf16.xpose.msk.msra.mxu1 %vm6772_vm2, %v6752_v45  ;;  %v812_v45 = vld [vmem:[%s8907_s5 + $0x40] sm:$0xff] }
  0x5e   : > { %5819 = vmatprep.subr.bf16.mxu0 %v8911_v3  ;;  %5851 = vmatprep.subr.bf16.mxu1 %v8911_v3  ;;  %v6931_v47 = vpack.c.bf16 %v813_v46, %v812_v45  ;;  %v7049_v45 = vpack.c.bf16 %v871_v43, %v870_v42  ;;  %v888_v46 = vld [vmem:[%s8907_s5 + $0x2a0] sm:$0xff] }
  0x5f   : > { %v7059_v49 = vpack.c.bf16 %v889_v48, %v888_v46  ;;  %v898_v48 = vld [vmem:[%s8907_s5 + $0x2f0] sm:$0xff] }
  0x65   : > { %5822 = vmatpush3.bf16.xpose.msk.msra.mxu0 %vm6772_vm2, %v5766_v52  ;;  %5854 = vmatpush3.bf16.xpose.msk.msra.mxu1 %vm6772_vm2, %v5766_v52  ;;  %v814_v52 = vld [vmem:[%s8907_s5 + $0x50] sm:$0xff] }
  0x66   : > { %5823 = vmatprep.subr.bf16.mxu0 %v8911_v3  ;;  %5855 = vmatprep.subr.bf16.mxu1 %v8911_v3  ;;  %v6961_v55 = vpack.c.bf16 %v815_v53, %v814_v52  ;;  %v872_v52 = vld [vmem:[%s8907_s5 + $0x220] sm:$0xff]  ;;  %v873_v53 = vld [vmem:[%s8907_s5 + $0x228] sm:$0xff] }
  0x6d   : > { %5826 = vmatpush3.bf16.xpose.msk.msra.mxu0 %vm6772_vm2, %v5769_v58  ;;  %5858 = vmatpush3.bf16.xpose.msk.msra.mxu1 %vm6772_vm2, %v5769_v58  ;;  %v832_v58 = vld [vmem:[%s8907_s5 + $0xe0] sm:$0xff] }
  0x6e   : > { %5860 = vmatprep.subr.bf16.mxu1 %v6846_v19  ;;  %5681 = vmatprep.subr.bf16.mxu0 %v6402_v34  ;;  %v6978_v62 = vpack.c.bf16 %v833_v59, %v832_v58  ;;  %v891_v58 = vld [vmem:[%s8907_s5 + $0x2b8] sm:$0xff] }
  0x6f   : > { %v7077_v59 = vpack.c.bf16 %v891_v58, %v890_v57  ;;  %v882_v58 = vld [vmem:[%s8907_s5 + $0x270] sm:$0xff] }
 0x102   : > { %v402_v4 = vpop.f32.mrb[0].mxu0 }
 0x103   : > { %v406_v7 = vmul.f32 0.00390625, %v402_v4  ;;  %v5575_v9 = vpop.f32.mrb[1].mxu0  ;;  %v473_v11 = vpop.f32.mrb[0].mxu1  ;;  %v834_v4 = vld [vmem:[%s8907_s5 + $0xf0] sm:$0xff] }
 0x104   : > { %v477_v12 = vmul.f32 0.00390625, %v473_v11  ;;  %v5610_v13 = vpop.f32.mrb[1].mxu1  ;;  %v818_v9 = vld [vmem:[%s8907_s5 + $0x70] sm:$0xff] }
 0x105   : > { %v478_v10 = vmul.f32 %v406_v7, %v406_v7  ;;  %5644 = vmatmul.mubr.msk.f32.vlgmr.msra.gmra.mrb[2].mxu0 %vm482_vm1, %v406_v7  ;;  %v835_v7 = vld [vmem:[%s8907_s5 + $0xf8] sm:$0xff]  ;;  %v1099_v13 = vrot.slane %v1098_v8, 2 }
 0x106   : > { %5682 = vmatpush3.bf16.xpose.msra.mxu0 %v6402_v34  ;;  %v6999_v11 = vpack.c.bf16 %v835_v7, %v834_v4  ;;  %v876_v4 = vld [vmem:[%s8907_s5 + $0x240] sm:$0xff]  ;;  %v877_v7 = vld [vmem:[%s8907_s5 + $0x248] sm:$0xff] }
 0x107   : > { %v479_v14 = vsub.f32 %v477_v12, %v478_v10  ;;  %5683 = vmatprep.subr.bf16.mxu0 %v6403_v56  ;;  %v1091_v10 = vadd.f32 %v1090_v1, %v1089_v61  ;;  %v819_v12 = vld [vmem:[%s8907_s5 + $0x78] sm:$0xff]  ;;  %v1100_v18 = vadd.f32 %v1099_v13, %v1098_v8  ;;  %v893_v1 = vld [vmem:[%s8907_s5 + $0x2c8] sm:$0xff] }
 0x108   : > { %v875_v61 = vld [vmem:[%s8907_s5 + $0x238] sm:$0xff]  ;;  %v7095_v8 = vpack.c.bf16 %v893_v1, %v892_v0 }
 0x109   : > { %v480_v15 = vadd.f32 1e-06, %v479_v14  ;;  %v7004_v14 = vpack.c.bf16 %v819_v12, %v818_v9  ;;  %v1101_v22 = vrot.slane %v1100_v18, 1  ;;  %v7085_v63 = vpack.c.bf16 %v875_v61, %v874_v60  ;;  %v894_v12 = vld [vmem:[%s8907_s5 + $0x2d0] sm:$0xff]  ;;  %v895_v13 = vld [vmem:[%s8907_s5 + $0x2d8] sm:$0xff] }
 0x10a   : > { %v7103_v9 = vpack.c.bf16 %v877_v7, %v876_v4  ;;  %v883_v60 = vld [vmem:[%s8907_s5 + $0x278] sm:$0xff] }
 0x10b   : > { %6542 = vrsqrt.f32 %v480_v15  ;;  %v1092_v15 = vrot.slane %v1091_v10, 2  ;;  %v1102_v28 = vadd.f32 %v1101_v22, %v1100_v18  ;;  %v879_v18 = vld [vmem:[%s8907_s5 + $0x258] sm:$0xff]  ;;  %v7168_v0 = vpack.c.bf16 %v883_v60, %v882_v58  ;;  %v937_v58 = vld [vmem:[%s8907_s5 + $0x428] sm:$0xff] }
 0x10d   : > { %v1093_v21 = vadd.f32 %v1092_v15, %v1091_v10  ;;  %v7107_v10 = vld [vmem:[%s6937_s26 + $0x10] sm:$0xff] }
 0x10e   : > { %5684 = vmatpush3.bf16.xpose.msra.mxu0 %v6403_v56  ;;  %v7067_v56 = vpack.c.bf16 %v873_v53, %v872_v52  ;;  %v7118_v15 = vcombine.high %v7107_v10, %v7107_v10  ;;  %v1117_v24 = vsel %vm1088_vm3, %v7107_v10, 0.0  ;;  %v899_v52 = vld [vmem:[%s8907_s5 + $0x2f8] sm:$0xff] }
 0x10f   : > { %v1094_v26 = vrot.slane %v1093_v21, 1  ;;  %v1118_v32 = vrot.slane %v1117_v24, 4  ;;  %v7160_v57 = vpack.c.bf16 %v899_v52, %v898_v48  ;;  %v953_v48 = vld [vmem:[%s8907_s5 + $0x4a8] sm:$0xff] }
 0x110   : > { %8974 = vst [vmem:[#allocation5_spill] sm:$0xff] %v7118_v15  ;;  %v1124_v22 = vsel %vm1088_vm3, %v7118_v15, 0.0 }
 0x111   : > { %v1095_v34 = vadd.f32 %v1094_v26, %v1093_v21  ;;  %v1125_v25 = vrot.slane %v1124_v22, 4  ;;  %v896_v26 = vld [vmem:[%s8907_s5 + $0x2e0] sm:$0xff]  ;;  %v1119_v43 = vadd.f32 %v1118_v32, %v1117_v24  ;;  %v933_v24 = vld [vmem:[%s8907_s5 + $0x408] sm:$0xff]  ;;  %v951_v32 = vld [vmem:[%s8907_s5 + $0x498] sm:$0xff] }
 0x113   : > { %v1126_v39 = vadd.f32 %v1125_v25, %v1124_v22  ;;  %v1120_v53 = vrot.slane %v1119_v43, 2  ;;  %v932_v22 = vld [vmem:[%s8907_s5 + $0x400] sm:$0xff] }
 0x115   : > { %v6543_v16 = vpop.eup %6542  ;;  %v1127_v46 = vrot.slane %v1126_v39, 2  ;;  %v1121_v1 = vadd.f32 %v1120_v53, %v1119_v43  ;;  %v936_v53 = vld [vmem:[%s8907_s5 + $0x420] sm:$0xff] }
 0x116   : > { %5679 = vmatmul.mubr.msk.f32.vlgmr.msra.gmra.mrb[2].mxu1 %vm482_vm1, %v6543_v16  ;;  %v852_v16 = vld [vmem:[%s8907_s5 + $0x180] sm:$0xff]  ;;  %v7222_v60 = vpack.c.bf16 %v937_v58, %v936_v53  ;;  %v942_v58 = vld [vmem:[%s8907_s5 + $0x450] sm:$0xff] }
 0x117   : > { %5862 = vmatpush3.bf16.msra.mxu1 %v6857_v23  ;;  %v7013_v20 = vpack.c.bf16 %v853_v17, %v852_v16  ;;  %1409 = vmatprep.mubr.f32.mxu1 %v1102_v28  ;;  %v7120_v16 = vpack.c.bf16 %v895_v13, %v894_v12  ;;  %v878_v17 = vld [vmem:[%s8907_s5 + $0x250] sm:$0xff]  ;;  %v897_v28 = vld [vmem:[%s8907_s5 + $0x2e8] sm:$0xff]  ;;  %v1128_v61 = vadd.f32 %v1127_v46, %v1126_v39  ;;  %v1122_v7 = vrot.slane %v1121_v1, 1  ;;  %v948_v12 = vld [vmem:[%s8907_s5 + $0x480] sm:$0xff] }
 0x118   : > { %5864 = vmatprep.subr.bf16.mxu1 %v6869_v27  ;;  %v7128_v21 = vpack.c.bf16 %v879_v18, %v878_v17  ;;  %v7142_v33 = vpack.c.bf16 %v897_v28, %v896_v26  ;;  %v949_v13 = vld [vmem:[%s8907_s5 + $0x488] sm:$0xff]  ;;  %v7186_v26 = vpack.c.bf16 %v933_v24, %v932_v22  ;;  %v950_v28 = vld [vmem:[%s8907_s5 + $0x490] sm:$0xff]  ;;  %v935_v39 = vld [vmem:[%s8907_s5 + $0x418] sm:$0xff] }
 0x119   : > { %8973 = vst [vmem:[#allocation4_spill] sm:$0xff] %v7013_v20  ;;  %5892 = vmatprep.subr.bf16.mxu0 %v7013_v20  ;;  %v1129_v4 = vrot.slane %v1128_v61, 1  ;;  %v7178_v18 = vpack.c.bf16 %v949_v13, %v948_v12  ;;  %v1123_v25 = vadd.f32 %v1122_v7, %v1121_v1  ;;  %v952_v46 = vld [vmem:[%s8907_s5 + $0x4a0] sm:$0xff]  ;;  %v955_v1 = vld [vmem:[%s8907_s5 + $0x4b8] sm:$0xff]  ;;  %v938_v7 = vld [vmem:[%s8907_s5 + $0x430] sm:$0xff] }
 0x11a   : > { %v7214_v52 = vpack.c.bf16 %v953_v48, %v952_v46  ;;  %v939_v12 = vld [vmem:[%s8907_s5 + $0x438] sm:$0xff]  ;;  %v957_v22 = vld [vmem:[%s8907_s5 + $0x4c8] sm:$0xff] }
 0x11b   : > { %5866 = vmatpush3.bf16.msra.mxu1 %v6878_v30  ;;  %v1130_v17 = vadd.f32 %v1129_v4, %v1128_v61  ;;  %v954_v61 = vld [vmem:[%s8907_s5 + $0x4b0] sm:$0xff]  ;;  %v7240_v13 = vpack.c.bf16 %v939_v12, %v938_v7  ;;  %v959_v46 = vld [vmem:[%s8907_s5 + $0x4d8] sm:$0xff] }
 0x11c   : > { %5868 = vmatprep.subr.bf16.mxu1 %v6881_v31  ;;  %v7232_v4 = vpack.c.bf16 %v955_v1, %v954_v61  ;;  %v943_v61 = vld [vmem:[%s8907_s5 + $0x458] sm:$0xff] }
 0x11d   : > { %v7283_v1 = vpack.c.bf16 %v943_v61, %v942_v58  ;;  %v945_v58 = vld [vmem:[%s8907_s5 + $0x468] sm:$0xff] }
 0x11f   : > { %5870 = vmatpush3.bf16.msra.mxu1 %v6899_v37 }
 0x120   : > { %5872 = vmatprep.subr.bf16.mxu1 %v6902_v38 }
 0x123   : > { %5874 = vmatpush3.bf16.msra.mxu1 %v6911_v41 }
 0x124   : > { %5876 = vmatprep.subr.bf16.mxu1 %v6923_v44 }
 0x127   : > { %5878 = vmatpush3.bf16.msra.mxu1 %v6931_v47 }
 0x128   : > { %5880 = vmatprep.subr.bf16.mxu1 %v6949_v51 }
 0x12b   : > { %5882 = vmatpush3.bf16.msra.mxu1 %v6961_v55 }
 0x12c   : > { %5884 = vmatprep.subr.bf16.mxu1 %v6978_v62 }
 0x12f   : > { %5886 = vmatpush3.bf16.msra.mxu1 %v6986_v2 }
 0x130   : > { %5888 = vmatprep.subr.bf16.mxu1 %v6999_v11 }
 0x133   : > { %5890 = vmatpush3.bf16.msra.mxu1 %v7004_v14 }
 0x134   : > { %5924 = vmatprep.subr.bf16.mxu1 %v7023_v29 }
 0x136   : > { %1410 = vmatmul.mubr.f32.vlgmr.msra.gmra.mrb[4].mxu1 %v1095_v34  ;;  %v880_v34 = vld [vmem:[%s8907_s5 + $0x260] sm:$0xff] }
 0x137   : > { %5926 = vmatpush3.bf16.msra.mxu1 %v7031_v35  ;;  %v7150_v42 = vpack.c.bf16 %v881_v36, %v880_v34  ;;  %1549 = vmatprep.mubr.f32.mxu1 %v1130_v17  ;;  %v7196_v34 = vpack.c.bf16 %v951_v32, %v950_v28  ;;  %v934_v36 = vld [vmem:[%s8907_s5 + $0x410] sm:$0xff]  ;;  %v956_v17 = vld [vmem:[%s8907_s5 + $0x4c0] sm:$0xff]  ;;  %v941_v28 = vld [vmem:[%s8907_s5 + $0x448] sm:$0xff] }
 0x138   : > { %5928 = vmatprep.subr.bf16.mxu1 %v7041_v40  ;;  %v7204_v43 = vpack.c.bf16 %v935_v39, %v934_v36  ;;  %v7250_v24 = vpack.c.bf16 %v957_v22, %v956_v17  ;;  %v7262_v36 = vld [vmem:[%s6937_s26 + $0x20] sm:$0xff]  ;;  %v958_v39 = vld [vmem:[%s8907_s5 + $0x4d0] sm:$0xff] }
 0x139   : > { %v7272_v48 = vcombine.high %v7262_v36, %v7262_v36  ;;  %v7275_v53 = vpack.c.bf16 %v959_v46, %v958_v39  ;;  %v1145_v12 = vsel %vm1088_vm3, %v7262_v36, 0.0  ;;  %v960_v22 = vld [vmem:[%s8907_s5 + $0x4e0] sm:$0xff] }
 0x13a   : > { %v944_v46 = vld [vmem:[%s8907_s5 + $0x460] sm:$0xff] }
 0x13b   : > { %5930 = vmatpush3.bf16.msra.mxu1 %v7049_v45  ;;  %8975 = vst [vmem:[#allocation6_spill] sm:$0xff] %v7272_v48  ;;  %v1152_v7 = vsel %vm1088_vm3, %v7272_v48, 0.0  ;;  %v7305_v6 = vpack.c.bf16 %v945_v58, %v944_v46 }
 0x13c   : > { %5932 = vmatprep.subr.bf16.mxu1 %v7059_v49  ;;  %v1153_v17 = vrot.slane %v1152_v7, 4 }
 0x13d   : > { %8977 = vst [vmem:[#allocation8_spill] sm:$0xff] %v7305_v6 }
 0x13e   : > { %v1154_v61 = vadd.f32 %v1153_v17, %v1152_v7  ;;  %v946_v7 = vld [vmem:[%s8907_s5 + $0x470] sm:$0xff] }
 0x13f   : > { %5934 = vmatpush3.bf16.msra.mxu1 %v7067_v56 }
 0x140   : > { %5936 = vmatprep.subr.bf16.mxu1 %v7077_v59  ;;  %v1155_v48 = vrot.slane %v1154_v61, 2 }
 0x142   : > { %v1156_v17 = vadd.f32 %v1155_v48, %v1154_v61 }
 0x143   : > { %5938 = vmatpush3.bf16.msra.mxu1 %v7085_v63 }
 0x144   : > { %5940 = vmatprep.subr.bf16.mxu1 %v7095_v8  ;;  %v1157_v58 = vrot.slane %v1156_v17, 1 }
 0x146   : > { %v1158_v20 = vadd.f32 %v1157_v58, %v1156_v17  ;;  %v1016_v58 = vld [vmem:[%s8907_s5 + $0x6a0] sm:$0xff] }
 0x147   : > { %5942 = vmatpush3.bf16.msra.mxu1 %v7103_v9 }
 0x148   : > { %5944 = vmatprep.subr.bf16.mxu1 %v7120_v16 }
 0x14b   : > { %5946 = vmatpush3.bf16.msra.mxu1 %v7128_v21 }
 0x14c   : > { %5948 = vmatprep.subr.bf16.mxu1 %v7142_v33 }
 0x14f   : > { %5950 = vmatpush3.bf16.msra.mxu1 %v7150_v42 }
 0x150   : > { %5952 = vmatprep.subr.bf16.mxu1 %v7160_v57 }
 0x153   : > { %5954 = vmatpush3.bf16.msra.mxu1 %v7168_v0 }
 0x154   : > { %5988 = vmatprep.subr.bf16.mxu1 %v7178_v18 }
 0x156   : > { %1550 = vmatmul.mubr.f32.vlgmr.msra.gmra.mrb[6].mxu1 %v1123_v25  ;;  %v940_v25 = vld [vmem:[%s8907_s5 + $0x440] sm:$0xff] }
 0x157   : > { %5990 = vmatpush3.bf16.msra.mxu1 %v7186_v26  ;;  %v7258_v32 = vpack.c.bf16 %v941_v28, %v940_v25  ;;  %v961_v25 = vld [vmem:[%s8907_s5 + $0x4e8] sm:$0xff]  ;;  %v1146_v28 = vrot.slane %v1145_v12, 4  ;;  %1689 = vmatprep.mubr.f32.mxu1 %v1158_v20  ;;  %v999_v20 = vld [vmem:[%s8907_s5 + $0x618] sm:$0xff] }
 0x158   : > { %5992 = vmatprep.subr.bf16.mxu1 %v7196_v34  ;;  %v7297_v39 = vpack.c.bf16 %v961_v25, %v960_v22  ;;  %v962_v22 = vld [vmem:[%s8907_s5 + $0x4f0] sm:$0xff]  ;;  %v963_v25 = vld [vmem:[%s8907_s5 + $0x4f8] sm:$0xff] }
 0x159   : > { %v1147_v3 = vadd.f32 %v1146_v28, %v1145_v12  ;;  %v7315_v54 = vpack.c.bf16 %v963_v25, %v962_v22  ;;  %v947_v12 = vld [vmem:[%s8907_s5 + $0x478] sm:$0xff]  ;;  %v1012_v22 = vld [vmem:[%s8907_s5 + $0x680] sm:$0xff]  ;;  %v1013_v25 = vld [vmem:[%s8907_s5 + $0x688] sm:$0xff] }
 0x15a   : > { %8976 = vst [vmem:[#allocation7_spill] sm:$0xff] %v7297_v39  ;;  %v7323_v28 = vpack.c.bf16 %v947_v12, %v946_v7  ;;  %v1014_v7 = vld [vmem:[%s8907_s5 + $0x690] sm:$0xff]  ;;  %v1015_v12 = vld [vmem:[%s8907_s5 + $0x698] sm:$0xff] }
 0x15b   : > { %5994 = vmatpush3.bf16.msra.mxu1 %v7204_v43  ;;  %v1148_v15 = vrot.slane %v1147_v3, 2  ;;  %8978 = vst [vmem:[#allocation9_spill] sm:$0xff] %v7315_v54  ;;  %v7351_v17 = vpack.c.bf16 %v1015_v12, %v1014_v7  ;;  %v1018_v7 = vld [vmem:[%s8907_s5 + $0x6b0] sm:$0xff]  ;;  %v1019_v12 = vld [vmem:[%s8907_s5 + $0x6b8] sm:$0xff] }
 0x15c   : > { %5996 = vmatprep.subr.bf16.mxu1 %v7214_v52  ;;  %8979 = vst [vmem:[#allocation10_spill] sm:$0xff] %v7323_v28 }
 0x15d   : > { %v1149_v46 = vadd.f32 %v1148_v15, %v1147_v3  ;;  %v996_v3 = vld [vmem:[%s8907_s5 + $0x600] sm:$0xff]  ;;  %v997_v15 = vld [vmem:[%s8907_s5 + $0x608] sm:$0xff]  ;;  %8982 = vst [vmem:[#allocation13_spill] sm:$0xff] %v7351_v17 }
 0x15e   : > { %v7341_v61 = vpack.c.bf16 %v997_v15, %v996_v3  ;;  %v1000_v3 = vld [vmem:[%s8907_s5 + $0x620] sm:$0xff]  ;;  %v1001_v15 = vld [vmem:[%s8907_s5 + $0x628] sm:$0xff] }
 0x15f   : > { %5998 = vmatpush3.bf16.msra.mxu1 %v7222_v60  ;;  %v1150_v5 = vrot.slane %v1149_v46, 1 }
 0x160   : > { %6000 = vmatprep.subr.bf16.mxu1 %v7232_v4  ;;  %8981 = vst [vmem:[#allocation12_spill] sm:$0xff] %v7341_v61 }
 0x161   : > { %v1151_v48 = vadd.f32 %v1150_v5, %v1149_v46  ;;  %v998_v5 = vld [vmem:[%s8907_s5 + $0x610] sm:$0xff] }
 0x162   : > { %v7359_v46 = vpack.c.bf16 %v999_v20, %v998_v5  ;;  %v7387_v5 = vpack.c.bf16 %v1019_v12, %v1018_v7  ;;  %v1002_v20 = vld [vmem:[%s8907_s5 + $0x630] sm:$0xff]  ;;  %v1004_v12 = vld [vmem:[%s8907_s5 + $0x640] sm:$0xff] }
 0x163   : > { %6002 = vmatpush3.bf16.msra.mxu1 %v7240_v13 }
 0x164   : > { %6004 = vmatprep.subr.bf16.mxu1 %v7250_v24  ;;  %8983 = vst [vmem:[#allocation14_spill] sm:$0xff] %v7359_v46  ;;  %8986 = vst [vmem:[#allocation17_spill] sm:$0xff] %v7387_v5 }
 0x167   : > { %6006 = vmatpush3.bf16.msra.mxu1 %v7258_v32 }
 0x168   : > { %6008 = vmatprep.subr.bf16.mxu1 %v7275_v53 }
 0x16b   : > { %6010 = vmatpush3.bf16.msra.mxu1 %v7283_v1 }
 0x16c   : > { %6012 = vmatprep.subr.bf16.mxu1 %v7297_v39  ;;  %v7484_v39 = vld [vmem:[%s6937_s26 + $0x8] sm:$0xff] }
 0x16f   : > { %6014 = vmatpush3.bf16.msra.mxu1 %v7305_v6  ;;  %v7333_v6 = vpack.c.bf16 %v1013_v25, %v1012_v22  ;;  %v1017_v22 = vld [vmem:[%s8907_s5 + $0x6a8] sm:$0xff] }
 0x170   : > { %6016 = vmatprep.subr.bf16.mxu1 %v7315_v54  ;;  %v7369_v25 = vpack.c.bf16 %v1017_v22, %v1016_v58  ;;  %v1003_v58 = vld [vmem:[%s8907_s5 + $0x638] sm:$0xff] }
 0x171   : > { %8980 = vst [vmem:[#allocation11_spill] sm:$0xff] %v7333_v6  ;;  %v7395_v22 = vpack.c.bf16 %v1003_v58, %v1002_v20  ;;  %v1005_v20 = vld [vmem:[%s8907_s5 + $0x648] sm:$0xff] }
 0x172   : > { %8984 = vst [vmem:[#allocation15_spill] sm:$0xff] %v7369_v25  ;;  %v7413_v58 = vpack.c.bf16 %v1005_v20, %v1004_v12  ;;  %v1006_v20 = vld [vmem:[%s8907_s5 + $0x650] sm:$0xff] }
 0x173   : > { %6018 = vmatpush3.bf16.msra.mxu1 %v7323_v28  ;;  %8987 = vst [vmem:[#allocation18_spill] sm:$0xff] %v7395_v22 }
 0x174   : > { %6052 = vmatprep.subr.bf16.mxu1 %v7333_v6  ;;  %8989 = vst [vmem:[#allocation20_spill] sm:$0xff] %v7413_v58 }
 0x176   : > { %1690 = vmatmul.mubr.f32.vlgmr.msra.gmra.mrb[8].mxu1 %v1151_v48  ;;  %v7377_v48 = vpack.c.bf16 %v1001_v15, %v1000_v3  ;;  %v1020_v3 = vld [vmem:[%s8907_s5 + $0x6c0] sm:$0xff]  ;;  %v1021_v15 = vld [vmem:[%s8907_s5 + $0x6c8] sm:$0xff] }
 0x177   : > { %6054 = vmatpush3.bf16.msra.mxu1 %v7341_v61  ;;  %v7405_v7 = vpack.c.bf16 %v1021_v15, %v1020_v3  ;;  %v1023_v3 = vld [vmem:[%s8907_s5 + $0x6d8] sm:$0xff] }
 0x178   : > { %6056 = vmatprep.subr.bf16.mxu1 %v7351_v17  ;;  %8985 = vst [vmem:[#allocation16_spill] sm:$0xff] %v7377_v48 }
 0x179   : > { %8988 = vst [vmem:[#allocation19_spill] sm:$0xff] %v7405_v7 }
 0x17b   : > { %6058 = vmatpush3.bf16.msra.mxu1 %v7359_v46 }
 0x17c   : > { %6060 = vmatprep.subr.bf16.mxu1 %v7369_v25 }
 0x17f   : > { %6062 = vmatpush3.bf16.msra.mxu1 %v7377_v48 }
 0x180   : > { %6064 = vmatprep.subr.bf16.mxu1 %v7387_v5  ;;  %v7417_v5 = vld [vmem:[%s6937_s26 + $0x30] sm:$0xff] }
 0x181   : > { %8990 = vst [vmem:[#allocation21_spill] sm:$0xff] %v7417_v5  ;;  %v7427_v15 = vcombine.high %v7417_v5, %v7417_v5  ;;  %v1173_v46 = vsel %vm1088_vm3, %v7417_v5, 0.0 }
 0x182   : > { %v1174_v17 = vrot.slane %v1173_v46, 4 }
 0x183   : > { %6066 = vmatpush3.bf16.msra.mxu1 %v7395_v22  ;;  %v1022_v22 = vld [vmem:[%s8907_s5 + $0x6d0] sm:$0xff]  ;;  %8991 = vst [vmem:[#allocation22_spill] sm:$0xff] %v7427_v15  ;;  %v1180_v25 = vsel %vm1088_vm3, %v7427_v15, 0.0  ;;  %v1009_v15 = vld [vmem:[%s8907_s5 + $0x668] sm:$0xff] }
 0x184   : > { %6068 = vmatprep.subr.bf16.mxu1 %v7405_v7  ;;  %v7430_v12 = vpack.c.bf16 %v1023_v3, %v1022_v22  ;;  %v1007_v7 = vld [vmem:[%s8907_s5 + $0x658] sm:$0xff]  ;;  %v1181_v22 = vrot.slane %v1180_v25, 4  ;;  %v1024_v3 = vld [vmem:[%s8907_s5 + $0x6e0] sm:$0xff]  ;;  %v1175_v61 = vadd.f32 %v1174_v17, %v1173_v46  ;;  %v1010_v17 = vld [vmem:[%s8907_s5 + $0x670] sm:$0xff] }
 0x185   : > { %v7438_v48 = vpack.c.bf16 %v1007_v7, %v1006_v20  ;;  %v1008_v20 = vld [vmem:[%s8907_s5 + $0x660] sm:$0xff]  ;;  %v1011_v46 = vld [vmem:[%s8907_s5 + $0x678] sm:$0xff] }
 0x186   : > { %8992 = vst [vmem:[#allocation23_spill] sm:$0xff] %v7430_v12  ;;  %v7460_v5 = vpack.c.bf16 %v1009_v15, %v1008_v20 }
 0x187   : > { %6070 = vmatpush3.bf16.msra.mxu1 %v7413_v58  ;;  %8993 = vst [vmem:[#allocation24_spill] sm:$0xff] %v7438_v48  ;;  %v1025_v58 = vld [vmem:[%s8907_s5 + $0x6e8] sm:$0xff] }
 0x188   : > { %6072 = vmatprep.subr.bf16.mxu1 %v7430_v12  ;;  %v7452_v7 = vpack.c.bf16 %v1025_v58, %v1024_v3  ;;  %v1182_v12 = vadd.f32 %v1181_v22, %v1180_v25  ;;  %8995 = vst [vmem:[#allocation26_spill] sm:$0xff] %v7460_v5  ;;  %v1026_v58 = vld [vmem:[%s8907_s5 + $0x6f0] sm:$0xff]  ;;  %v1027_v3 = vld [vmem:[%s8907_s5 + $0x6f8] sm:$0xff]  ;;  %v7478_v22 = vpack.c.bf16 %v1011_v46, %v1010_v17 }
 0x189   : > { %v7470_v28 = vpack.c.bf16 %v1027_v3, %v1026_v58 }
 0x18a   : > { %8994 = vst [vmem:[#allocation25_spill] sm:$0xff] %v7452_v7  ;;  %v1183_v6 = vrot.slane %v1182_v12, 2  ;;  %8997 = vst [vmem:[#allocation28_spill] sm:$0xff] %v7478_v22 }
 0x18b   : > { %6074 = vmatpush3.bf16.msra.mxu1 %v7438_v48  ;;  %v1176_v48 = vrot.slane %v1175_v61, 2  ;;  %8996 = vst [vmem:[#allocation27_spill] sm:$0xff] %v7470_v28 }
 0x18c   : > { %6076 = vmatprep.subr.bf16.mxu1 %v7452_v7  ;;  %v1184_v25 = vadd.f32 %v1183_v6, %v1182_v12  ;;  %v683_v6 = vlaneseq }
 0x18d   : > { %v1177_v20 = vadd.f32 %v1176_v48, %v1175_v61  ;;  %v7490_v61 = vcombine.high %v7484_v39, %v7484_v39 }
 0x18e   : > { %v7494_v48 = vshrl.u32 %v683_v6, 7 }
 0x18f   : > { %6078 = vmatpush3.bf16.msra.mxu1 %v7460_v5  ;;  %v1185_v5 = vrot.slane %v1184_v25, 1  ;;  %v1178_v58 = vrot.slane %v1177_v20, 1  ;;  %8998 = vst [vmem:[#allocation29_spill] sm:$0xff] %v7490_v61 }
 0x190   : > { %6080 = vmatprep.subr.bf16.mxu1 %v7470_v28  ;;  %8999 = vst [vmem:[#allocation30_spill] sm:$0xff] %v7494_v48 }
 0x191   : > { %v1186_v3 = vadd.f32 %v1185_v5, %v1184_v25  ;;  %v1179_v54 = vadd.f32 %v1178_v58, %v1177_v20  ;;  %v8939_v25 = vsub.s32 1, %v7494_v48 }
 0x193   : > { %6082 = vmatpush3.bf16.msra.mxu1 %v7478_v22  ;;  %1829 = vmatprep.mubr.f32.mxu1 %v1186_v3  ;;  %v6579_v3 = vld [vmem:[%s6708_s19 + $0x8] sm:$0xff] }
 0x194   : > { %6116 = vmatprep.subr.bf16.mxu1 %v6846_v19  ;;  %v1110_v19 = vsel %vm1088_vm3, %v7490_v61, 0.0 }
 0x196   : > { %1830 = vmatmul.mubr.f32.vlgmr.msra.gmra.mrb[10].mxu1 %v1179_v54  ;;  %v1111_v54 = vrot.slane %v1110_v19, 4 }
 0x197   : > { %6118 = vmatpush3.bf16.msra.mxu1 %v6857_v23  ;;  %v276_v23 = vld [vmem:[%s8906_s4] sm:$0xff] }
 0x198   : > { %6120 = vmatprep.subr.bf16.mxu1 %v6869_v27  ;;  %v685_v27 = vsub.s32 0, %v7494_v48  ;;  %v1112_v17 = vadd.f32 %v1111_v54, %v1110_v19  ;;  %v6581_v54 = vld [vmem:[%s6708_s19 + $0x18] sm:$0xff] }
 0x19a   : > { %v1113_v58 = vrot.slane %v1112_v17, 2 }
 0x19b   : > { %6122 = vmatpush3.bf16.msra.mxu1 %v6878_v30 }
 0x19c   : > { %6124 = vmatprep.subr.bf16.mxu1 %v6881_v31 }
 0x19f   : > { %6126 = vmatpush3.bf16.msra.mxu1 %v6899_v37  ;;  %v1201_v37 = vmul.f32 %v6947_v50, %v6947_v50 }
 0x1a0   : > { %6128 = vmatprep.subr.bf16.mxu1 %v6902_v38 }
 0x1a1   : > { %v1217_v38 = vcombine.high %v1201_v37, %v1201_v37 }
 0x1a3   : > { %6130 = vmatpush3.bf16.msra.mxu1 %v6911_v41  ;;  %v1240_v19 = vsel %vm1088_vm3, %v1217_v38, 0.0  ;;  %v7535_v38 = vld [vmem:[%s6708_s19 + $0x30] sm:$0xff] }
 0x1a4   : > { %6132 = vmatprep.subr.bf16.mxu1 %v6923_v44  ;;  %v6578_v44 = vld [vmem:[%s6708_s19] sm:$0xff]  ;;  %9002 = vst [vmem:[#allocation33_spill] sm:$0xff] %v7535_v38 }
 0x1a7   : > { %6134 = vmatpush3.bf16.msra.mxu1 %v6931_v47 }
 0x1a8   : > { %6136 = vmatprep.subr.bf16.mxu1 %v6949_v51 }
 0x1ab   : > { %6138 = vmatpush3.bf16.msra.mxu1 %v6961_v55 }
 0x1ac   : > { %6140 = vmatprep.subr.bf16.mxu1 %v6978_v62 }
 0x1af   : > { %6142 = vmatpush3.bf16.msra.mxu1 %v6986_v2  ;;  %v856_v2 = vld [vmem:[%s8907_s5 + $0x1a0] sm:$0xff] }
 0x1b0   : > { %6144 = vmatprep.subr.bf16.mxu1 %v6999_v11 }
 0x1b3   : > { %6146 = vmatpush3.bf16.msra.mxu1 %v7004_v14  ;;  %v1103_v14 = vsel %vm1088_vm3, %v7484_v39, 0.0 }
 0x1b4   : > { %6180 = vmatprep.subr.bf16.mxu1 %v7023_v29  ;;  %v843_v29 = vld [vmem:[%s8907_s5 + $0x138] sm:$0xff] }
 0x1d8   : > { %v600_v15 = vpop.f32.mrb[2].mxu0 }
 0x1d9   : > { %v5645_v7 = vpop.f32.mrb[3].mxu0 }
 0x1e9   : > { %v673_v30 = vpop.f32.mrb[2].mxu1 }
 0x1ea   : > { %v677_v5 = vmul.f32 %v673_v30, %v276_v23  ;;  %v5680_v31 = vpop.f32.mrb[3].mxu1  ;;  %v7520_v30 = vld [vmem:[%s6708_s19 + $0x20] sm:$0xff] }
 0x1eb   : > { %9000 = vst [vmem:[#allocation31_spill] sm:$0xff] %v7520_v30 }
 0x1ec   : > { %v678_v12 = vmul.f32 %v677_v5, %v600_v15  ;;  %v686_v7 = vrot.slane %v677_v5, %v685_v27  ;;  %v6580_v15 = vld [vmem:[%s6708_s19 + $0x10] sm:$0xff]  ;;  %v1233_v27 = vsel %vm1088_vm3, %v1201_v37, 0.0  ;;  %v7524_v5 = vld [vmem:[%s6708_s19 + $0x28] sm:$0xff] }
 0x1ed   : > { %9001 = vst [vmem:[#allocation32_spill] sm:$0xff] %v7524_v5  ;;  %v837_v37 = vld [vmem:[%s8907_s5 + $0x108] sm:$0xff]  ;;  %v1234_v55 = vrot.slane %v1233_v27, 4 }
 0x1ee   : > { %v680_v46 = vrot.slane %v678_v12, 7  ;;  %v687_v20 = vmul.f32 %v6578_v44, %v686_v7  ;;  %v688_v50 = vmul.f32 %v6579_v3, %v686_v7  ;;  %v689_v6 = vmul.f32 %v6580_v15, %v686_v7  ;;  %v836_v12 = vld [vmem:[%s8907_s5 + $0x100] sm:$0xff] }
 0x1ef   : > { %v690_v51 = vmul.f32 %v6581_v54, %v686_v7  ;;  %v692_v31 = vmul.f32 %v7524_v5, %v686_v7  ;;  %v1241_v3 = vrot.slane %v1240_v19, 4  ;;  %v7549_v28 = vpack.c.bf16 %v837_v37, %v836_v12  ;;  %v858_v37 = vld [vmem:[%s8907_s5 + $0x1b0] sm:$0xff] }
 0x1f0   : > { %v682_v41 = vsub.f32 %v276_v23, %v680_v46  ;;  %v691_v23 = vmul.f32 %v7520_v30, %v686_v7  ;;  %v693_v46 = vmul.f32 %v7535_v38, %v686_v7  ;;  %v854_v30 = vld [vmem:[%s8907_s5 + $0x190] sm:$0xff]  ;;  %v855_v38 = vld [vmem:[%s8907_s5 + $0x198] sm:$0xff] }
 0x1f2   : > { %v698_v47 = vrot.slane %v682_v41, %v8939_v25  ;;  %v7539_v41 = vld [vmem:[%s6708_s19 + $0x38] sm:$0xff] }
 0x1f3   : > { %9003 = vst [vmem:[#allocation34_spill] sm:$0xff] %v7539_v41  ;;  %v694_v44 = vmul.f32 %v7539_v41, %v686_v7 }
 0x1f4   : > { %v699_v15 = vadd.f32 %v698_v47, %v687_v20  ;;  %v700_v54 = vadd.f32 %v698_v47, %v688_v50  ;;  %v701_v25 = vadd.f32 %v698_v47, %v689_v6  ;;  %v702_v5 = vadd.f32 %v698_v47, %v690_v51  ;;  %v838_v51 = vld [vmem:[%s8907_s5 + $0x110] sm:$0xff] }
 0x1f5   : > { %v703_v61 = vadd.f32 %v698_v47, %v691_v23  ;;  %v704_v48 = vadd.f32 %v698_v47, %v692_v31  ;;  %v705_v22 = vadd.f32 %v698_v47, %v693_v46  ;;  %v706_v7 = vadd.f32 %v698_v47, %v694_v44  ;;  %v839_v23 = vld [vmem:[%s8907_s5 + $0x118] sm:$0xff] }
 0x1f6   : > { %v711_v62 = vpack.c.bf16 %v700_v54, %v699_v15  ;;  %v712_v41 = vpack.c.bf16 %v702_v5, %v701_v25  ;;  %v1114_v20 = vadd.f32 %v1113_v58, %v1112_v17  ;;  %v7552_v6 = vpack.c.bf16 %v855_v38, %v854_v30  ;;  %v840_v5 = vld [vmem:[%s8907_s5 + $0x120] sm:$0xff]  ;;  %v859_v38 = vld [vmem:[%s8907_s5 + $0x1b8] sm:$0xff]  ;;  %v842_v54 = vld [vmem:[%s8907_s5 + $0x130] sm:$0xff] }
 0x1f7   : > { %v713_v50 = vpack.c.bf16 %v704_v48, %v703_v61  ;;  %v714_v47 = vpack.c.bf16 %v706_v7, %v705_v22  ;;  %v1242_v25 = vadd.f32 %v1241_v3, %v1240_v19  ;;  %v857_v61 = vld [vmem:[%s8907_s5 + $0x1a8] sm:$0xff]  ;;  %v7568_v48 = vld [vmem:[%s6937_s26 + $0x18] sm:$0xff]  ;;  %v1235_v17 = vadd.f32 %v1234_v55, %v1233_v27 }
 0x1f8   : > { %5685 = vmatprep.mubr.bf16.mxu0 %v711_v62  ;;  %v7571_v22 = vpack.c.bf16 %v839_v23, %v838_v51  ;;  %v1115_v11 = vrot.slane %v1114_v20, 1  ;;  %v7574_v30 = vpack.c.bf16 %v857_v61, %v856_v2  ;;  %v841_v27 = vld [vmem:[%s8907_s5 + $0x128] sm:$0xff]  ;;  %v7584_v31 = vcombine.high %v7568_v48, %v7568_v48 }
 0x1f9   : > { %5686 = vmatmul.mubr.bf16.vlgmr.msra.gmra.mrb[4].mxu0 %v712_v41  ;;  %v1243_v58 = vrot.slane %v1242_v25, 2  ;;  %v1236_v19 = vrot.slane %v1235_v17, 2  ;;  %v7595_v44 = vpack.c.bf16 %v841_v27, %v840_v5  ;;  %v7600_v15 = vpack.c.bf16 %v859_v38, %v858_v37  ;;  %v846_v37 = vld [vmem:[%s8907_s5 + $0x150] sm:$0xff]  ;;  %v865_v38 = vld [vmem:[%s8907_s5 + $0x1e8] sm:$0xff] }
 0x1fa   : > { %5894 = vmatpush3.bf16.msra.mxu0 %v7549_v28  ;;  %5689 = vmatprep.mubr.bf16.mxu0 %v713_v50  ;;  %9004 = vst [vmem:[#allocation35_spill] sm:$0xff] %v7584_v31  ;;  %v1116_v3 = vadd.f32 %v1115_v11, %v1114_v20  ;;  %v1138_v7 = vsel %vm1088_vm3, %v7584_v31, 0.0  ;;  %v860_v20 = vld [vmem:[%s8907_s5 + $0x1c0] sm:$0xff]  ;;  %v861_v50 = vld [vmem:[%s8907_s5 + $0x1c8] sm:$0xff]  ;;  %v1104_v23 = vrot.slane %v1103_v14, 4  ;;  %v863_v11 = vld [vmem:[%s8907_s5 + $0x1d8] sm:$0xff] }
 0x1fb   : > { %5896 = vmatprep.subr.bf16.mxu0 %v7552_v6  ;;  %v1244_v12 = vadd.f32 %v1243_v58, %v1242_v25  ;;  %v1237_v46 = vadd.f32 %v1236_v19, %v1235_v17  ;;  %v7617_v25 = vpack.c.bf16 %v843_v29, %v842_v54  ;;  %v1139_v2 = vrot.slane %v1138_v7, 4  ;;  %v844_v17 = vld [vmem:[%s8907_s5 + $0x140] sm:$0xff]  ;;  %v862_v58 = vld [vmem:[%s8907_s5 + $0x1d0] sm:$0xff] }
 0x1fc   : > { %v7620_v61 = vpack.c.bf16 %v861_v50, %v860_v20  ;;  %v1105_v19 = vadd.f32 %v1104_v23, %v1103_v14  ;;  %v1203_v14 = vmul.f32 %v7107_v10, %v7107_v10  ;;  %v848_v54 = vld [vmem:[%s8907_s5 + $0x160] sm:$0xff]  ;;  %v867_v10 = vld [vmem:[%s8907_s5 + $0x1f8] sm:$0xff]  ;;  %v850_v23 = vld [vmem:[%s8907_s5 + $0x170] sm:$0xff] }
 0x1fd   : > { %v1245_v41 = vrot.slane %v1244_v12, 1  ;;  %v1238_v55 = vrot.slane %v1237_v46, 1  ;;  %v1140_v27 = vadd.f32 %v1139_v2, %v1138_v7 }
 0x1fe   : > { %5898 = vmatpush3.bf16.msra.mxu0 %v7571_v22  ;;  %v1219_v29 = vcombine.high %v1203_v14, %v1203_v14  ;;  %v1261_v2 = vsel %vm1088_vm3, %v1203_v14, 0.0 }
 0x1ff   : > { %5900 = vmatprep.subr.bf16.mxu0 %v7574_v30  ;;  %v1246_v62 = vadd.f32 %v1245_v41, %v1244_v12  ;;  %v1239_v51 = vadd.f32 %v1238_v55, %v1237_v46  ;;  %v7640_v12 = vpack.c.bf16 %v863_v11, %v862_v58  ;;  %v1106_v46 = vrot.slane %v1105_v19, 2 }
 0x200   : > { %v1268_v50 = vsel %vm1088_vm3, %v1219_v29, 0.0  ;;  %v1262_v58 = vrot.slane %v1261_v2, 4 }
 0x201   : > { %5690 = vmatmul.mubr.bf16.gmra.mrb[8].mxu0 %v714_v47  ;;  %1970 = vmatprep.mubr.f32.mxu1 %v1246_v62  ;;  %v845_v47 = vld [vmem:[%s8907_s5 + $0x148] sm:$0xff]  ;;  %v1107_v7 = vadd.f32 %v1106_v46, %v1105_v19  ;;  %v918_v46 = vld [vmem:[%s8907_s5 + $0x390] sm:$0xff] }
 0x202   : > { %5902 = vmatpush3.bf16.msra.mxu0 %v7595_v44  ;;  %1479 = vmatprep.mubr.f32.mxu0 %v1116_v3  ;;  %v7637_v5 = vpack.c.bf16 %v845_v47, %v844_v17  ;;  %v1141_v3 = vrot.slane %v1140_v27, 2  ;;  %v916_v17 = vld [vmem:[%s8907_s5 + $0x380] sm:$0xff]  ;;  %v917_v47 = vld [vmem:[%s8907_s5 + $0x388] sm:$0xff] }
 0x203   : > { %5904 = vmatprep.subr.bf16.mxu0 %v7600_v15  ;;  %1971 = vmatmul.mubr.f32.vlgmr.msra.gmra.mrb[12].mxu1 %v1239_v51  ;;  %v1108_v11 = vrot.slane %v1107_v7, 1 }
 0x204   : > { %6182 = vmatpush3.bf16.msra.mxu1 %v7031_v35  ;;  %v847_v35 = vld [vmem:[%s8907_s5 + $0x158] sm:$0xff]  ;;  %v1142_v20 = vadd.f32 %v1141_v3, %v1140_v27 }
 0x205   : > { %6184 = vmatprep.subr.bf16.mxu1 %v7041_v40  ;;  %v864_v40 = vld [vmem:[%s8907_s5 + $0x1e0] sm:$0xff]  ;;  %v7657_v41 = vpack.c.bf16 %v847_v35, %v846_v37  ;;  %v1263_v35 = vadd.f32 %v1262_v58, %v1261_v2  ;;  %v919_v3 = vld [vmem:[%s8907_s5 + $0x398] sm:$0xff] }
 0x206   : > { %5906 = vmatpush3.bf16.msra.mxu0 %v7617_v25  ;;  %v7662_v55 = vpack.c.bf16 %v865_v38, %v864_v40  ;;  %v1143_v37 = vrot.slane %v1142_v20, 1  ;;  %v7704_v40 = vpack.c.bf16 %v917_v47, %v916_v17  ;;  %v900_v38 = vld [vmem:[%s8907_s5 + $0x300] sm:$0xff]  ;;  %v7724_v29 = vpack.c.bf16 %v919_v3, %v918_v46  ;;  %v925_v3 = vld [vmem:[%s8907_s5 + $0x3c8] sm:$0xff] }
 0x207   : > { %5908 = vmatprep.subr.bf16.mxu0 %v7620_v61  ;;  %v1264_v14 = vrot.slane %v1263_v35, 2  ;;  %v904_v47 = vld [vmem:[%s8907_s5 + $0x320] sm:$0xff] }
 0x208   : > { %6186 = vmatpush3.bf16.msra.mxu1 %v7049_v45  ;;  %v849_v45 = vld [vmem:[%s8907_s5 + $0x168] sm:$0xff]  ;;  %v924_v46 = vld [vmem:[%s8907_s5 + $0x3c0] sm:$0xff] }
 0x209   : > { %6188 = vmatprep.subr.bf16.mxu1 %v7059_v49  ;;  %v866_v49 = vld [vmem:[%s8907_s5 + $0x1f0] sm:$0xff]  ;;  %v7679_v62 = vpack.c.bf16 %v849_v45, %v848_v54  ;;  %v1109_v54 = vadd.f32 %v1108_v11, %v1107_v7 }
 0x20a   : > { %5910 = vmatpush3.bf16.msra.mxu0 %v7637_v5  ;;  %v7683_v51 = vpack.c.bf16 %v867_v10, %v866_v49  ;;  %v1144_v10 = vadd.f32 %v1143_v37, %v1142_v20  ;;  %v921_v20 = vld [vmem:[%s8907_s5 + $0x3a8] sm:$0xff]  ;;  %v922_v11 = vld [vmem:[%s8907_s5 + $0x3b0] sm:$0xff] }
 0x20b   : > { %5912 = vmatprep.subr.bf16.mxu0 %v7640_v12 }
 0x20c   : > { %6190 = vmatpush3.bf16.msra.mxu1 %v7067_v56  ;;  %v851_v56 = vld [vmem:[%s8907_s5 + $0x178] sm:$0xff] }
 0x20d   : > { %6192 = vmatprep.subr.bf16.mxu1 %v7077_v59  ;;  %v1269_v59 = vrot.slane %v1268_v50, 4  ;;  %v7701_v27 = vpack.c.bf16 %v851_v56, %v850_v23  ;;  %v920_v23 = vld [vmem:[%s8907_s5 + $0x3a0] sm:$0xff]  ;;  %v7739_v56 = vld [vmem:[%s6937_s26 + $0x28] sm:$0xff] }
 0x20e   : > { %5914 = vmatpush3.bf16.msra.mxu0 %v7657_v41  ;;  %v7747_v17 = vpack.c.bf16 %v921_v20, %v920_v23 }
 0x20f   : > { %5916 = vmatprep.subr.bf16.mxu0 %v7662_v55  ;;  %v1270_v19 = vadd.f32 %v1269_v59, %v1268_v50  ;;  %v902_v50 = vld [vmem:[%s8907_s5 + $0x310] sm:$0xff] }
 0x210   : > { %6194 = vmatpush3.bf16.msra.mxu1 %v7085_v63  ;;  %v901_v63 = vld [vmem:[%s8907_s5 + $0x308] sm:$0xff] }
 0x211   : > { %6196 = vmatprep.subr.bf16.mxu1 %v7095_v8  ;;  %v1271_v8 = vrot.slane %v1270_v19, 2  ;;  %v7721_v49 = vpack.c.bf16 %v901_v63, %v900_v38  ;;  %v906_v63 = vld [vmem:[%s8907_s5 + $0x330] sm:$0xff] }
 0x212   : > { %5918 = vmatpush3.bf16.msra.mxu0 %v7679_v62 }
 0x213   : > { %5920 = vmatprep.subr.bf16.mxu0 %v7683_v51  ;;  %v1272_v45 = vadd.f32 %v1271_v8, %v1270_v19  ;;  %v923_v19 = vld [vmem:[%s8907_s5 + $0x3b8] sm:$0xff] }
 0x214   : > { %6198 = vmatpush3.bf16.msra.mxu1 %v7103_v9  ;;  %v903_v9 = vld [vmem:[%s8907_s5 + $0x318] sm:$0xff]  ;;  %v7773_v38 = vpack.c.bf16 %v923_v19, %v922_v11  ;;  %v1205_v19 = vmul.f32 %v7262_v36, %v7262_v36 }
 0x215   : > { %6200 = vmatprep.subr.bf16.mxu1 %v7120_v16  ;;  %v1273_v7 = vrot.slane %v1272_v45, 1  ;;  %v1265_v16 = vadd.f32 %v1264_v14, %v1263_v35  ;;  %v7744_v2 = vpack.c.bf16 %v903_v9, %v902_v50  ;;  %v1131_v35 = vsel %vm1088_vm3, %v7568_v48, 0.0  ;;  %v908_v50 = vld [vmem:[%s8907_s5 + $0x340] sm:$0xff]  ;;  %v927_v9 = vld [vmem:[%s8907_s5 + $0x3d8] sm:$0xff] }
 0x216   : > { %5922 = vmatpush3.bf16.msra.mxu0 %v7701_v27  ;;  %v1132_v14 = vrot.slane %v1131_v35, 4  ;;  %v931_v36 = vld [vmem:[%s8907_s5 + $0x3f8] sm:$0xff] }
 0x217   : > { %5956 = vmatprep.subr.bf16.mxu0 %v7704_v40  ;;  %v1274_v59 = vadd.f32 %v1273_v7, %v1272_v45  ;;  %v1266_v58 = vrot.slane %v1265_v16, 1 }
 0x218   : > { %6202 = vmatpush3.bf16.msra.mxu1 %v7128_v21  ;;  %v905_v21 = vld [vmem:[%s8907_s5 + $0x328] sm:$0xff]  ;;  %v1133_v7 = vadd.f32 %v1132_v14, %v1131_v35 }
 0x219   : > { %1480 = vmatmul.mubr.f32.vlgmr.msra.gmra.mrb[12].mxu0 %v1109_v54  ;;  %6204 = vmatprep.subr.bf16.mxu1 %v7142_v33  ;;  %v7757_v33 = vcombine.high %v7739_v56, %v7739_v56  ;;  %v7768_v37 = vpack.c.bf16 %v905_v21, %v904_v47  ;;  %v1267_v8 = vadd.f32 %v1266_v58, %v1265_v16  ;;  %v929_v47 = vld [vmem:[%s8907_s5 + $0x3e8] sm:$0xff] }
 0x21a   : > { %5958 = vmatpush3.bf16.msra.mxu0 %v7721_v49  ;;  %1619 = vmatprep.mubr.f32.mxu0 %v1144_v10  ;;  %v7795_v10 = vpack.c.bf16 %v925_v3, %v924_v46  ;;  %v1134_v21 = vrot.slane %v1133_v7, 2 }
 0x21b   : > { %5960 = vmatprep.subr.bf16.mxu0 %v7724_v29  ;;  %9005 = vst [vmem:[#allocation36_spill] sm:$0xff] %v7757_v33  ;;  %2110 = vmatprep.mubr.f32.mxu1 %v1274_v59  ;;  %v910_v59 = vld [vmem:[%s8907_s5 + $0x350] sm:$0xff] }
 0x21c   : > { %6206 = vmatpush3.bf16.msra.mxu1 %v7150_v42  ;;  %v907_v42 = vld [vmem:[%s8907_s5 + $0x338] sm:$0xff] }
 0x21d   : > { %6208 = vmatprep.subr.bf16.mxu1 %v7160_v57  ;;  %v1166_v57 = vsel %vm1088_vm3, %v7757_v33, 0.0  ;;  %v7792_v54 = vpack.c.bf16 %v907_v42, %v906_v63  ;;  %v912_v63 = vld [vmem:[%s8907_s5 + $0x360] sm:$0xff]  ;;  %v1221_v42 = vcombine.high %v1205_v19, %v1205_v19 }
 0x21e   : > { %5962 = vmatpush3.bf16.msra.mxu0 %v7744_v2  ;;  %v1167_v45 = vrot.slane %v1166_v57, 4 }
 0x21f   : > { %5964 = vmatprep.subr.bf16.mxu0 %v7747_v17  ;;  %v1296_v3 = vsel %vm1088_vm3, %v1221_v42, 0.0 }
 0x220   : > { %6210 = vmatpush3.bf16.msra.mxu1 %v7168_v0  ;;  %v909_v0 = vld [vmem:[%s8907_s5 + $0x348] sm:$0xff]  ;;  %v1168_v23 = vadd.f32 %v1167_v45, %v1166_v57  ;;  %v1135_v57 = vadd.f32 %v1134_v21, %v1133_v7  ;;  %v914_v45 = vld [vmem:[%s8907_s5 + $0x370] sm:$0xff]  ;;  %v964_v21 = vld [vmem:[%s8907_s5 + $0x500] sm:$0xff] }
 0x221   : > { %6244 = vmatprep.subr.bf16.mxu1 %v7178_v18  ;;  %v926_v18 = vld [vmem:[%s8907_s5 + $0x3d0] sm:$0xff]  ;;  %v7812_v16 = vpack.c.bf16 %v909_v0, %v908_v50  ;;  %v1289_v50 = vsel %vm1088_vm3, %v1205_v19, 0.0  ;;  %v980_v0 = vld [vmem:[%s8907_s5 + $0x580] sm:$0xff]  ;;  %v983_v19 = vld [vmem:[%s8907_s5 + $0x598] sm:$0xff] }
 0x222   : > { %5966 = vmatpush3.bf16.msra.mxu0 %v7768_v37  ;;  %v7815_v20 = vpack.c.bf16 %v927_v9, %v926_v18  ;;  %v1169_v11 = vrot.slane %v1168_v23, 2  ;;  %v981_v18 = vld [vmem:[%s8907_s5 + $0x588] sm:$0xff]  ;;  %v1290_v9 = vrot.slane %v1289_v50, 4  ;;  %v1136_v7 = vrot.slane %v1135_v57, 1 }
 0x223   : > { %5968 = vmatprep.subr.bf16.mxu0 %v7773_v38  ;;  %2111 = vmatmul.mubr.f32.vlgmr.msra.gmra.mrb[14].mxu1 %v1267_v8 }
 0x224   : > { %6246 = vmatpush3.bf16.msra.mxu1 %v7186_v26  ;;  %v911_v26 = vld [vmem:[%s8907_s5 + $0x358] sm:$0xff]  ;;  %v1170_v46 = vadd.f32 %v1169_v11, %v1168_v23  ;;  %v982_v11 = vld [vmem:[%s8907_s5 + $0x590] sm:$0xff] }
 0x225   : > { %6248 = vmatprep.subr.bf16.mxu1 %v7196_v34  ;;  %v928_v34 = vld [vmem:[%s8907_s5 + $0x3e0] sm:$0xff]  ;;  %v7832_v58 = vpack.c.bf16 %v911_v26, %v910_v59 }
 0x226   : > { %5970 = vmatpush3.bf16.msra.mxu0 %v7792_v54  ;;  %v7837_v35 = vpack.c.bf16 %v929_v47, %v928_v34  ;;  %v1171_v26 = vrot.slane %v1170_v46, 1  ;;  %v1291_v34 = vadd.f32 %v1290_v9, %v1289_v50  ;;  %v7879_v47 = vpack.c.bf16 %v981_v18, %v980_v0  ;;  %v9006_v50 = vld [vmem:[#allocation7_spill] sm:$0xff] }
 0x227   : > { %5972 = vmatprep.subr.bf16.mxu0 %v7795_v10 }
 0x228   : > { %6250 = vmatpush3.bf16.msra.mxu1 %v7204_v43  ;;  %v913_v43 = vld [vmem:[%s8907_s5 + $0x368] sm:$0xff]  ;;  %v1172_v42 = vadd.f32 %v1171_v26, %v1170_v46 }
 0x229   : > { %6252 = vmatprep.subr.bf16.mxu1 %v7214_v52  ;;  %v930_v52 = vld [vmem:[%s8907_s5 + $0x3f0] sm:$0xff]  ;;  %v7854_v8 = vpack.c.bf16 %v913_v43, %v912_v63  ;;  %v1292_v63 = vrot.slane %v1291_v34, 2  ;;  %v1137_v43 = vadd.f32 %v1136_v7, %v1135_v57  ;;  %v985_v46 = vld [vmem:[%s8907_s5 + $0x5a8] sm:$0xff]  ;;  %v968_v7 = vld [vmem:[%s8907_s5 + $0x520] sm:$0xff] }
 0x22a   : > { %5974 = vmatpush3.bf16.msra.mxu0 %v7812_v16  ;;  %v7858_v14 = vpack.c.bf16 %v931_v36, %v930_v52 }
 0x22b   : > { %5976 = vmatprep.subr.bf16.mxu0 %v7815_v20 }
 0x22c   : > { %6254 = vmatpush3.bf16.msra.mxu1 %v7222_v60  ;;  %v915_v60 = vld [vmem:[%s8907_s5 + $0x378] sm:$0xff] }
 0x22d   : > { %6256 = vmatprep.subr.bf16.mxu1 %v7232_v4  ;;  %v1297_v4 = vrot.slane %v1296_v3, 4  ;;  %v7876_v59 = vpack.c.bf16 %v915_v60, %v914_v45  ;;  %v966_v45 = vld [vmem:[%s8907_s5 + $0x510] sm:$0xff]  ;;  %v984_v60 = vld [vmem:[%s8907_s5 + $0x5a0] sm:$0xff] }
 0x22e   : > { %5978 = vmatpush3.bf16.msra.mxu0 %v7832_v58  ;;  %v7922_v9 = vpack.c.bf16 %v985_v46, %v984_v60  ;;  %v9010_v60 = vld [vmem:[#allocation10_spill] sm:$0xff] }
 0x22f   : > { %5980 = vmatprep.subr.bf16.mxu0 %v7837_v35  ;;  %v1298_v23 = vadd.f32 %v1297_v4, %v1296_v3  ;;  %v7899_v3 = vpack.c.bf16 %v983_v19, %v982_v11  ;;  %v7914_v4 = vld [vmem:[%s6937_s26 + $0x38] sm:$0xff]  ;;  %v1159_v19 = vsel %vm1088_vm3, %v7739_v56, 0.0 }
 0x230   : > { %6258 = vmatpush3.bf16.msra.mxu1 %v7240_v13  ;;  %v965_v13 = vld [vmem:[%s8907_s5 + $0x508] sm:$0xff]  ;;  %v1160_v46 = vrot.slane %v1159_v19, 4 }
 0x231   : > { %6260 = vmatprep.subr.bf16.mxu1 %v7250_v24  ;;  %v1299_v24 = vrot.slane %v1298_v23, 2  ;;  %v7896_v36 = vpack.c.bf16 %v965_v13, %v964_v21  ;;  %v987_v21 = vld [vmem:[%s8907_s5 + $0x5b8] sm:$0xff]  ;;  %v9008_v13 = vld [vmem:[#allocation8_spill] sm:$0xff] }
 0x232   : > { %5982 = vmatpush3.bf16.msra.mxu0 %v7854_v8 }
 0x233   : > { %5984 = vmatprep.subr.bf16.mxu0 %v7858_v14  ;;  %v1300_v52 = vadd.f32 %v1299_v24, %v1298_v23  ;;  %v7932_v23 = vcombine.high %v7914_v4, %v7914_v4  ;;  %v9009_v24 = vld [vmem:[#allocation9_spill] sm:$0xff] }
 0x234   : > { %6262 = vmatpush3.bf16.msra.mxu1 %v7258_v32  ;;  %v967_v32 = vld [vmem:[%s8907_s5 + $0x518] sm:$0xff] }
 0x235   : > { %6264 = vmatprep.subr.bf16.mxu1 %v7275_v53  ;;  %v1301_v57 = vrot.slane %v1300_v52, 1  ;;  %v1293_v53 = vadd.f32 %v1292_v63, %v1291_v34  ;;  %v7919_v18 = vpack.c.bf16 %v967_v32, %v966_v45  ;;  %9007 = vst [vmem:[#allocation7_spill] sm:$0xff] %v7932_v23  ;;  %v986_v34 = vld [vmem:[%s8907_s5 + $0x5b0] sm:$0xff]  ;;  %v988_v32 = vld [vmem:[%s8907_s5 + $0x5c0] sm:$0xff] }
 0x236   : > { %5986 = vmatpush3.bf16.msra.mxu0 %v7876_v59  ;;  %v7948_v63 = vpack.c.bf16 %v987_v21, %v986_v34  ;;  %v990_v34 = vld [vmem:[%s8907_s5 + $0x5d0] sm:$0xff]  ;;  %v991_v21 = vld [vmem:[%s8907_s5 + $0x5d8] sm:$0xff] }
 0x237   : > { %6020 = vmatprep.subr.bf16.mxu0 %v7879_v47  ;;  %v1302_v0 = vadd.f32 %v1301_v57, %v1300_v52  ;;  %v1294_v26 = vrot.slane %v1293_v53, 1  ;;  %v971_v52 = vld [vmem:[%s8907_s5 + $0x538] sm:$0xff]  ;;  %v989_v57 = vld [vmem:[%s8907_s5 + $0x5c8] sm:$0xff] }
 0x238   : > { %6266 = vmatpush3.bf16.msra.mxu1 %v7283_v1  ;;  %v969_v1 = vld [vmem:[%s8907_s5 + $0x528] sm:$0xff] }
 0x239   : > { %1620 = vmatmul.mubr.f32.vlgmr.msra.gmra.mrb[14].mxu0 %v1137_v43  ;;  %6268 = vmatprep.subr.bf16.mxu1 %v9006_v50  ;;  %v7943_v11 = vpack.c.bf16 %v969_v1, %v968_v7  ;;  %v970_v43 = vld [vmem:[%s8907_s5 + $0x530] sm:$0xff]  ;;  %v1295_v45 = vadd.f32 %v1294_v26, %v1293_v53  ;;  %v9011_v50 = vld [vmem:[#allocation11_spill] sm:$0xff]  ;;  %v7970_v53 = vpack.c.bf16 %v989_v57, %v988_v32  ;;  %v972_v1 = vld [vmem:[%s8907_s5 + $0x540] sm:$0xff] }
 0x23a   : > { %6022 = vmatpush3.bf16.msra.mxu0 %v7896_v36  ;;  %1759 = vmatprep.mubr.f32.mxu0 %v1172_v42  ;;  %v1194_v42 = vsel %vm1088_vm3, %v7932_v23, 0.0  ;;  %v973_v26 = vld [vmem:[%s8907_s5 + $0x548] sm:$0xff]  ;;  %v974_v57 = vld [vmem:[%s8907_s5 + $0x550] sm:$0xff] }
 0x23b   : > { %6024 = vmatprep.subr.bf16.mxu0 %v7899_v3  ;;  %2250 = vmatprep.mubr.f32.mxu1 %v1302_v0  ;;  %v7967_v0 = vpack.c.bf16 %v971_v52, %v970_v43  ;;  %v1195_v7 = vrot.slane %v1194_v42, 4  ;;  %9013 = vst [vmem:[#allocation9_spill] sm:$0xff] %v7970_v53  ;;  %v9015_v43 = vld [vmem:[#allocation13_spill] sm:$0xff]  ;;  %v7987_v52 = vpack.c.bf16 %v973_v26, %v972_v1 }
 0x23c   : > { %6270 = vmatpush3.bf16.msra.mxu1 %v9008_v13  ;;  %v9014_v13 = vld [vmem:[#allocation12_spill] sm:$0xff] }
 0x23d   : > { %6272 = vmatprep.subr.bf16.mxu1 %v9009_v24  ;;  %9012 = vst [vmem:[#allocation8_spill] sm:$0xff] %v7967_v0  ;;  %v1161_v24 = vadd.f32 %v1160_v46, %v1159_v19  ;;  %9016 = vst [vmem:[#allocation10_spill] sm:$0xff] %v7987_v52  ;;  %v1196_v32 = vadd.f32 %v1195_v7, %v1194_v42  ;;  %v992_v19 = vld [vmem:[%s8907_s5 + $0x5e0] sm:$0xff]  ;;  %v993_v42 = vld [vmem:[%s8907_s5 + $0x5e8] sm:$0xff] }
 0x23e   : > { %6026 = vmatpush3.bf16.msra.mxu0 %v7919_v18  ;;  %v9018_v46 = vld [vmem:[#allocation14_spill] sm:$0xff]  ;;  %v9019_v7 = vld [vmem:[#allocation15_spill] sm:$0xff] }
 0x23f   : > { %6028 = vmatprep.subr.bf16.mxu0 %v7922_v9  ;;  %v1197_v26 = vrot.slane %v1196_v32, 2 }
 0x240   : > { %6274 = vmatpush3.bf16.msra.mxu1 %v9010_v60  ;;  %v975_v60 = vld [vmem:[%s8907_s5 + $0x558] sm:$0xff] }
 0x241   : > { %6308 = vmatprep.subr.bf16.mxu1 %v9011_v50  ;;  %v1162_v50 = vrot.slane %v1161_v24, 2  ;;  %v8007_v1 = vpack.c.bf16 %v975_v60, %v974_v57  ;;  %v994_v57 = vld [vmem:[%s8907_s5 + $0x5f0] sm:$0xff]  ;;  %v995_v60 = vld [vmem:[%s8907_s5 + $0x5f8] sm:$0xff]  ;;  %v1198_v33 = vadd.f32 %v1197_v26, %v1196_v32  ;;  %v1044_v32 = vld [vmem:[%s8907_s5 + $0x780] sm:$0xff] }
 0x242   : > { %6030 = vmatpush3.bf16.msra.mxu0 %v7943_v11  ;;  %v1045_v26 = vld [vmem:[%s8907_s5 + $0x788] sm:$0xff] }
 0x243   : > { %6032 = vmatprep.subr.bf16.mxu0 %v7948_v63  ;;  %2251 = vmatmul.mubr.f32.vlgmr.msra.gmra.mrb[16].mxu1 %v1295_v45  ;;  %v7990_v45 = vpack.c.bf16 %v991_v21, %v990_v34  ;;  %9020 = vst [vmem:[#allocation12_spill] sm:$0xff] %v8007_v1  ;;  %v9021_v34 = vld [vmem:[#allocation21_spill] sm:$0xff] }
 0x244   : > { %6310 = vmatpush3.bf16.msra.mxu1 %v9014_v13  ;;  %v1207_v21 = vmul.f32 %v9021_v34, %v9021_v34  ;;  %v8012_v13 = vpack.c.bf16 %v993_v42, %v992_v19  ;;  %v1163_v42 = vadd.f32 %v1162_v50, %v1161_v24  ;;  %v9024_v34 = vld [vmem:[#allocation17_spill] sm:$0xff] }
 0x245   : > { %6312 = vmatprep.subr.bf16.mxu1 %v9015_v43  ;;  %9017 = vst [vmem:[#allocation11_spill] sm:$0xff] %v7990_v45  ;;  %v976_v43 = vld [vmem:[%s8907_s5 + $0x560] sm:$0xff]  ;;  %v979_v24 = vld [vmem:[%s8907_s5 + $0x578] sm:$0xff] }
 0x246   : > { %6034 = vmatpush3.bf16.msra.mxu0 %v7967_v0  ;;  %9022 = vst [vmem:[#allocation13_spill] sm:$0xff] %v8012_v13  ;;  %v1223_v19 = vcombine.high %v1207_v21, %v1207_v21  ;;  %v1030_v0 = vld [vmem:[%s8907_s5 + $0x710] sm:$0xff] }
 0x247   : > { %6036 = vmatprep.subr.bf16.mxu0 %v7970_v53  ;;  %v1028_v53 = vld [vmem:[%s8907_s5 + $0x700] sm:$0xff] }
 0x248   : > { %6314 = vmatpush3.bf16.msra.mxu1 %v9018_v46  ;;  %v977_v46 = vld [vmem:[%s8907_s5 + $0x568] sm:$0xff]  ;;  %v1324_v31 = vsel %vm1088_vm3, %v1223_v19, 0.0 }
 0x249   : > { %6316 = vmatprep.subr.bf16.mxu1 %v9019_v7  ;;  %v9023_v7 = vld [vmem:[#allocation16_spill] sm:$0xff]  ;;  %v8029_v23 = vpack.c.bf16 %v977_v46, %v976_v43  ;;  %v1325_v50 = vrot.slane %v1324_v31, 4  ;;  %v9027_v43 = vld [vmem:[#allocation18_spill] sm:$0xff] }
 0x24a   : > { %6038 = vmatpush3.bf16.msra.mxu0 %v7987_v52  ;;  %v978_v52 = vld [vmem:[%s8907_s5 + $0x570] sm:$0xff] }
 0x24b   : > { %6040 = vmatprep.subr.bf16.mxu0 %v7990_v45  ;;  %9025 = vst [vmem:[#allocation14_spill] sm:$0xff] %v8029_v23  ;;  %v8033_v45 = vpack.c.bf16 %v995_v60, %v994_v57  ;;  %v1164_v57 = vrot.slane %v1163_v42, 1  ;;  %v9028_v60 = vld [vmem:[#allocation19_spill] sm:$0xff]  ;;  %v1326_v19 = vadd.f32 %v1325_v50, %v1324_v31  ;;  %v1046_v31 = vld [vmem:[%s8907_s5 + $0x790] sm:$0xff] }
 0x24c   : > { %6318 = vmatpush3.bf16.msra.mxu1 %v9023_v7  ;;  %v1317_v7 = vsel %vm1088_vm3, %v1207_v21, 0.0  ;;  %v1199_v21 = vrot.slane %v1198_v33, 1 }
 0x24d   : > { %6320 = vmatprep.subr.bf16.mxu1 %v9024_v34  ;;  %9026 = vst [vmem:[#allocation15_spill] sm:$0xff] %v8033_v45  ;;  %v1318_v46 = vrot.slane %v1317_v7, 4  ;;  %v8051_v34 = vpack.c.bf16 %v979_v24, %v978_v52  ;;  %v1047_v52 = vld [vmem:[%s8907_s5 + $0x798] sm:$0xff]  ;;  %v9029_v24 = vld [vmem:[#allocation20_spill] sm:$0xff] }
 0x24e   : > { %6042 = vmatpush3.bf16.msra.mxu0 %v8007_v1  ;;  %v8054_v1 = vpack.c.bf16 %v1045_v26, %v1044_v32  ;;  %v9030_v32 = vld [vmem:[#allocation23_spill] sm:$0xff] }
 0x24f   : > { %6044 = vmatprep.subr.bf16.mxu0 %v8012_v13  ;;  %v1319_v13 = vadd.f32 %v1318_v46, %v1317_v7  ;;  %v1165_v7 = vadd.f32 %v1164_v57, %v1163_v42  ;;  %v1031_v42 = vld [vmem:[%s8907_s5 + $0x718] sm:$0xff]  ;;  %v8084_v57 = vmul.f32 %v7484_v39, %v7484_v39 }
 0x250   : > { %6322 = vmatpush3.bf16.msra.mxu1 %v9027_v43  ;;  %v1029_v43 = vld [vmem:[%s8907_s5 + $0x708] sm:$0xff]  ;;  %v8095_v39 = vpack.c.bf16 %v1031_v42, %v1030_v0  ;;  %v1050_v0 = vld [vmem:[%s8907_s5 + $0x7b0] sm:$0xff] }
 0x251   : > { %6324 = vmatprep.subr.bf16.mxu1 %v9028_v60  ;;  %v1327_v60 = vrot.slane %v1326_v19, 2  ;;  %v1320_v50 = vrot.slane %v1319_v13, 2  ;;  %v8071_v46 = vpack.c.bf16 %v1029_v43, %v1028_v53  ;;  %v9032_v43 = vld [vmem:[#allocation24_spill] sm:$0xff] }
 0x252   : > { %6046 = vmatpush3.bf16.msra.mxu0 %v8029_v23  ;;  %v8074_v23 = vpack.c.bf16 %v1047_v52, %v1046_v31  ;;  %9034 = vst [vmem:[#allocation16_spill] sm:$0xff] %v8095_v39  ;;  %v1032_v52 = vld [vmem:[%s8907_s5 + $0x720] sm:$0xff] }
 0x253   : > { %6048 = vmatprep.subr.bf16.mxu0 %v8033_v45  ;;  %v1328_v26 = vadd.f32 %v1327_v60, %v1326_v19  ;;  %v1200_v45 = vadd.f32 %v1199_v21, %v1198_v33  ;;  %v1321_v53 = vadd.f32 %v1320_v50, %v1319_v13  ;;  %v1048_v33 = vld [vmem:[%s8907_s5 + $0x7a0] sm:$0xff]  ;;  %v1049_v21 = vld [vmem:[%s8907_s5 + $0x7a8] sm:$0xff]  ;;  %v9033_v60 = vld [vmem:[#allocation25_spill] sm:$0xff]  ;;  %v1218_v50 = vcombine.high %v8084_v57, %v8084_v57 }
 0x254   : > { %6326 = vmatpush3.bf16.msra.mxu1 %v9029_v24  ;;  %9031 = vst [vmem:[#allocation21_spill] sm:$0xff] %v8074_v23  ;;  %v8098_v13 = vpack.c.bf16 %v1049_v21, %v1048_v33  ;;  %v1033_v24 = vld [vmem:[%s8907_s5 + $0x728] sm:$0xff]  ;;  %v1034_v21 = vld [vmem:[%s8907_s5 + $0x730] sm:$0xff] }
 0x255   : > { %6328 = vmatprep.subr.bf16.mxu1 %v9030_v32  ;;  %v1329_v19 = vrot.slane %v1328_v26, 1  ;;  %v9036_v32 = vld [vmem:[#allocation26_spill] sm:$0xff]  ;;  %v8117_v42 = vpack.c.bf16 %v1033_v24, %v1032_v52  ;;  %v1053_v24 = vld [vmem:[%s8907_s5 + $0x7c8] sm:$0xff] }
 0x256   : > { %6050 = vmatpush3.bf16.msra.mxu0 %v8051_v34  ;;  %9035 = vst [vmem:[#allocation17_spill] sm:$0xff] %v8098_v13  ;;  %v1052_v52 = vld [vmem:[%s8907_s5 + $0x7c0] sm:$0xff] }
 0x257   : > { %6084 = vmatprep.subr.bf16.mxu0 %v8054_v1  ;;  %v1330_v31 = vadd.f32 %v1329_v19, %v1328_v26  ;;  %v9037_v26 = vld [vmem:[#allocation27_spill] sm:$0xff]  ;;  %9038 = vst [vmem:[#allocation18_spill] sm:$0xff] %v8117_v42  ;;  %v1187_v19 = vsel %vm1088_vm3, %v7914_v4, 0.0 }
 0x258   : > { %6330 = vmatpush3.bf16.msra.mxu1 %v9032_v43  ;;  %v1035_v43 = vld [vmem:[%s8907_s5 + $0x738] sm:$0xff] }
 0x259   : > { %1760 = vmatmul.mubr.f32.vlgmr.msra.gmra.mrb[16].mxu0 %v1165_v7  ;;  %6332 = vmatprep.subr.bf16.mxu1 %v9033_v60  ;;  %v1322_v7 = vrot.slane %v1321_v53, 1  ;;  %v1254_v60 = vsel %vm1088_vm3, %v1218_v50, 0.0  ;;  %v1036_v50 = vld [vmem:[%s8907_s5 + $0x740] sm:$0xff] }
 0x25a   : > { %6086 = vmatpush3.bf16.msra.mxu0 %v8071_v46  ;;  %1899 = vmatprep.mubr.f32.mxu0 %v1200_v45  ;;  %v1051_v45 = vld [vmem:[%s8907_s5 + $0x7b8] sm:$0xff] }
 0x25b   : > { %6088 = vmatprep.subr.bf16.mxu0 %v8074_v23  ;;  %2390 = vmatprep.mubr.f32.mxu1 %v1330_v31  ;;  %v8122_v33 = vpack.c.bf16 %v1051_v45, %v1050_v0  ;;  %v1323_v31 = vadd.f32 %v1322_v7, %v1321_v53  ;;  %v9040_v0 = vld [vmem:[#allocation28_spill] sm:$0xff]  ;;  %v1188_v45 = vrot.slane %v1187_v19, 4  ;;  %v8143_v53 = vpack.c.bf16 %v1053_v24, %v1052_v52  ;;  %v1037_v7 = vld [vmem:[%s8907_s5 + $0x748] sm:$0xff]  ;;  %v4811_v23 = vpop.f32.mrb[4].mxu1 }
 0x25c   : > { %6334 = vmatpush3.bf16.msra.mxu1 %v9036_v32  ;;  %v9041_v32 = vmov 0.0|0.0   ;;  %v8160_v24 = vpack.c.bf16 %v1037_v7, %v1036_v50  ;;  %v4812_v7 = vpop.f32.mrb[5].mxu1 }
 0x25d   : > { %6336 = vmatprep.subr.bf16.mxu1 %v9037_v26  ;;  %9039 = vst [vmem:[#allocation19_spill] sm:$0xff] %v8122_v33  ;;  %v8140_v26 = vpack.c.bf16 %v1035_v43, %v1034_v21  ;;  %9043 = vst [vmem:[#allocation23_spill] sm:$0xff] %v8143_v53  ;;  %v1055_v21 = vld [vmem:[%s8907_s5 + $0x7d8] sm:$0xff]  ;;  %v9044_v43 = vmov 0.0   ;;  %v1189_v52 = vadd.f32 %v1188_v45, %v1187_v19  ;;  %v1056_v19 = vld [vmem:[%s8907_s5 + $0x7e0] sm:$0xff] }
 0x25e   : > { %6090 = vmatpush3.bf16.msra.mxu0 %v8095_v39  ;;  %9045 = vst [vmem:[#allocation24_spill] sm:$0xff] %v8160_v24  ;;  %v1039_v39 = vld [vmem:[%s8907_s5 + $0x758] sm:$0xff] }
 0x25f   : > { %6092 = vmatprep.subr.bf16.mxu0 %v8098_v13  ;;  %9042 = vst [vmem:[#allocation20_spill] sm:$0xff] %v8140_v26  ;;  %v1255_v13 = vrot.slane %v1254_v60, 4 }
 0x260   : > { %6338 = vmatpush3.bf16.msra.mxu1 %v9040_v0  ;;  %v1054_v0 = vld [vmem:[%s8907_s5 + $0x7d0] sm:$0xff] }
 0x261   : > { %6371 = vmatprep.subr.bf16.mxu1 %v9041_v32 }
 0x262   : > { %6094 = vmatpush3.bf16.msra.mxu0 %v8117_v42  ;;  %v1038_v42 = vld [vmem:[%s8907_s5 + $0x750] sm:$0xff] }
 0x263   : > { %6096 = vmatprep.subr.bf16.mxu0 %v8122_v33  ;;  %2391 = vmatmul.mubr.f32.vlgmr.msra.gmra.mrb[18].mxu1 %v1323_v31  ;;  %v1256_v33 = vadd.f32 %v1255_v13, %v1254_v60  ;;  %v8163_v31 = vpack.c.bf16 %v1055_v21, %v1054_v0  ;;  %v1057_v13 = vld [vmem:[%s8907_s5 + $0x7e8] sm:$0xff]  ;;  %v1190_v60 = vrot.slane %v1189_v52, 2  ;;  %v8178_v45 = vpack.c.bf16 %v1039_v39, %v1038_v42  ;;  %v1040_v21 = vld [vmem:[%s8907_s5 + $0x760] sm:$0xff]  ;;  %v1058_v39 = vld [vmem:[%s8907_s5 + $0x7f0] sm:$0xff] }
 0x264   : > { %5701 = vmatprep.mubr.msk.f32.mxu1 %vm6608_vm0, %v9044_v43  ;;  %v8181_v0 = vpack.c.bf16 %v1057_v13, %v1056_v19  ;;  %v1041_v43 = vld [vmem:[%s8907_s5 + $0x768] sm:$0xff]  ;;  %v1059_v42 = vld [vmem:[%s8907_s5 + $0x7f8] sm:$0xff] }
 0x265   : > { %9046 = vst [vmem:[#allocation25_spill] sm:$0xff] %v8163_v31  ;;  %v1257_v50 = vrot.slane %v1256_v33, 2  ;;  %v1191_v19 = vadd.f32 %v1190_v60, %v1189_v52  ;;  %v8198_v13 = vpack.c.bf16 %v1041_v43, %v1040_v21 }
 0x266   : > { %6098 = vmatpush3.bf16.msra.mxu0 %v8140_v26 }
 0x267   : > { %6100 = vmatprep.subr.bf16.mxu0 %v8143_v53  ;;  %v8189_v53 = vadd.f32 %v4812_v7, %v4811_v23  ;;  %v1042_v23 = vld [vmem:[%s8907_s5 + $0x770] sm:$0xff]  ;;  %v1043_v7 = vld [vmem:[%s8907_s5 + $0x778] sm:$0xff]  ;;  %v1192_v26 = vrot.slane %v1191_v19, 1 }
 0x268   : > { %v8210_v43 = vpack.c.bf16 %v1043_v7, %v1042_v23 }
 0x269   : > { %9047 = vst [vmem:[#allocation26_spill] sm:$0xff] %v8189_v53  ;;  %v4881_v53 = vpop.f32.mrb[6].mxu1 }
 0x26a   : > { %6102 = vmatpush3.bf16.msra.mxu0 %v8160_v24  ;;  %v8201_v24 = vpack.c.bf16 %v1059_v42, %v1058_v39  ;;  %v4882_v52 = vpop.f32.mrb[7].mxu1  ;;  %v9048_v39 = vld [vmem:[#allocation4_spill] sm:$0xff]  ;;  %v1204_v42 = vmul.f32 %v7568_v48, %v7568_v48 }
 0x26b   : > { %6104 = vmatprep.subr.bf16.mxu0 %v8163_v31  ;;  %v1258_v31 = vadd.f32 %v1257_v50, %v1256_v33  ;;  %v8212_v60 = vadd.f32 %v4882_v52, %v4881_v53  ;;  %v1193_v50 = vadd.f32 %v1192_v26, %v1191_v19  ;;  %v1247_v26 = vsel %vm1088_vm3, %v8084_v57, 0.0 }
 0x26c   : > { %v1220_v23 = vcombine.high %v1204_v42, %v1204_v42 }
 0x26d   : > { %v1259_v33 = vrot.slane %v1258_v31, 1 }
 0x26e   : > { %6106 = vmatpush3.bf16.msra.mxu0 %v8178_v45  ;;  %v1282_v53 = vsel %vm1088_vm3, %v1220_v23, 0.0  ;;  %v9051_v23 = vld [vmem:[#allocation8_spill] sm:$0xff] }
 0x26f   : > { %6108 = vmatprep.subr.bf16.mxu0 %v8181_v0  ;;  %v1260_v21 = vadd.f32 %v1259_v33, %v1258_v31  ;;  %v1248_v31 = vrot.slane %v1247_v26, 4  ;;  %v1283_v48 = vrot.slane %v1282_v53, 4 }
 0x272   : > { %6110 = vmatpush3.bf16.msra.mxu0 %v8198_v13 }
 0x273   : > { %6112 = vmatprep.subr.bf16.mxu0 %v8201_v24 }
 0x276   : > { %6114 = vmatpush3.bf16.msra.mxu0 %v8210_v43 }
 0x277   : > { %6148 = vmatprep.subr.bf16.mxu0 %v9048_v39 }
 0x279   : > { %1900 = vmatmul.mubr.f32.vlgmr.msra.gmra.mrb[18].mxu0 %v1193_v50 }
 0x27a   : > { %6150 = vmatpush3.bf16.msra.mxu0 %v7549_v28  ;;  %2040 = vmatprep.mubr.f32.mxu0 %v1260_v21  ;;  %v1249_v28 = vadd.f32 %v1248_v31, %v1247_v26  ;;  %v8276_v21 = vmul.f32 %v7914_v4, %v7914_v4 }
 0x27b   : > { %6152 = vmatprep.subr.bf16.mxu0 %v7552_v6  ;;  %v1284_v6 = vadd.f32 %v1283_v48, %v1282_v53  ;;  %v9052_v53 = vld [vmem:[#allocation9_spill] sm:$0xff] }
 0x27d   : > { %v1285_v57 = vrot.slane %v1284_v6, 2 }
 0x27e   : > { %6154 = vmatpush3.bf16.msra.mxu0 %v7571_v22  ;;  %v1250_v22 = vrot.slane %v1249_v28, 2 }
 0x27f   : > { %6156 = vmatprep.subr.bf16.mxu0 %v7574_v30  ;;  %v1286_v19 = vadd.f32 %v1285_v57, %v1284_v6  ;;  %v9054_v6 = vld [vmem:[#allocation11_spill] sm:$0xff] }
 0x280   : > { %v1251_v30 = vadd.f32 %v1250_v22, %v1249_v28  ;;  %v1063_v28 = vld [vmem:[%s8907_s5 + $0x898] sm:$0xff] }
 0x282   : > { %6158 = vmatpush3.bf16.msra.mxu0 %v7595_v44  ;;  %v4951_v44 = vpop.f32.mrb[8].mxu1 }
 0x283   : > { %6160 = vmatprep.subr.bf16.mxu0 %v7600_v15  ;;  %v1252_v15 = vrot.slane %v1251_v30, 1  ;;  %v4952_v7 = vpop.f32.mrb[9].mxu1 }
 0x284   : > { %v8235_v52 = vadd.f32 %v4952_v7, %v4951_v44 }
 0x286   : > { %6162 = vmatpush3.bf16.msra.mxu0 %v7617_v25  ;;  %v1287_v25 = vrot.slane %v1286_v19, 1 }
 0x287   : > { %6164 = vmatprep.subr.bf16.mxu0 %v7620_v61  ;;  %v1253_v61 = vadd.f32 %v1252_v15, %v1251_v30  ;;  %v9055_v15 = vld [vmem:[#allocation12_spill] sm:$0xff] }
 0x28a   : > { %6166 = vmatpush3.bf16.msra.mxu0 %v7637_v5  ;;  %v1288_v5 = vadd.f32 %v1287_v25, %v1286_v19 }
 0x28b   : > { %6168 = vmatprep.subr.bf16.mxu0 %v7640_v12  ;;  %v1206_v12 = vmul.f32 %v7739_v56, %v7739_v56 }
 0x28e   : > { %6170 = vmatpush3.bf16.msra.mxu0 %v7657_v41  ;;  %v1222_v41 = vcombine.high %v1206_v12, %v1206_v12 }
 0x28f   : > { %6172 = vmatprep.subr.bf16.mxu0 %v7662_v55  ;;  %v1275_v55 = vsel %vm1088_vm3, %v1204_v42, 0.0 }
 0x292   : > { %6174 = vmatpush3.bf16.msra.mxu0 %v7679_v62  ;;  %v1310_v62 = vsel %vm1088_vm3, %v1222_v41, 0.0 }
 0x293   : > { %6176 = vmatprep.subr.bf16.mxu0 %v7683_v51  ;;  %v1276_v51 = vrot.slane %v1275_v55, 4 }
 0x296   : > { %6178 = vmatpush3.bf16.msra.mxu0 %v7701_v27  ;;  %v1311_v27 = vrot.slane %v1310_v62, 4 }
 0x297   : > { %6212 = vmatprep.subr.bf16.mxu0 %v7704_v40  ;;  %v1277_v40 = vadd.f32 %v1276_v51, %v1275_v55 }
 0x299   : > { %2041 = vmatmul.mubr.f32.vlgmr.msra.gmra.mrb[20].mxu0 %v1253_v61 }
 0x29a   : > { %6214 = vmatpush3.bf16.msra.mxu0 %v7721_v49  ;;  %2180 = vmatprep.mubr.f32.mxu0 %v1288_v5  ;;  %v1312_v49 = vadd.f32 %v1311_v27, %v1310_v62 }
 0x29b   : > { %6216 = vmatprep.subr.bf16.mxu0 %v7724_v29  ;;  %v1278_v29 = vrot.slane %v1277_v40, 2 }
 0x29c   : > { %v1313_v56 = vrot.slane %v1312_v49, 2 }
 0x29e   : > { %6218 = vmatpush3.bf16.msra.mxu0 %v7744_v2  ;;  %v1279_v2 = vadd.f32 %v1278_v29, %v1277_v40  ;;  %v9057_v40 = vld [vmem:[#allocation14_spill] sm:$0xff] }
 0x29f   : > { %6220 = vmatprep.subr.bf16.mxu0 %v7747_v17  ;;  %v1314_v17 = vadd.f32 %v1313_v56, %v1312_v49  ;;  %v6412_v29 = vld [vmem:[%s8905_s3 + $0x40] sm:$0xff]   ;;  %v9058_v56 = vld [vmem:[#allocation15_spill] sm:$0xff] }
 0x2a2   : > { %6222 = vmatpush3.bf16.msra.mxu0 %v7768_v37  ;;  %v5021_v37 = vpop.f32.mrb[10].mxu1 }
 0x2a3   : > { %6224 = vmatprep.subr.bf16.mxu0 %v7773_v38  ;;  %v1280_v38 = vrot.slane %v1279_v2, 1  ;;  %v5022_v33 = vpop.f32.mrb[11].mxu1 }
 0x2a4   : > { %v8257_v50 = vadd.f32 %v5022_v33, %v5021_v37 }
 0x2a6   : > { %6226 = vmatpush3.bf16.msra.mxu0 %v7792_v54  ;;  %v1315_v54 = vrot.slane %v1314_v17, 1 }
 0x2a7   : > { %6228 = vmatprep.subr.bf16.mxu0 %v7795_v10  ;;  %v1060_v10 = vld [vmem:[%s8907_s5 + $0x880] sm:$0xff] }
 0x2aa   : > { %6230 = vmatpush3.bf16.msra.mxu0 %v7812_v16  ;;  %v1061_v16 = vld [vmem:[%s8907_s5 + $0x888] sm:$0xff] }
 0x2ab   : > { %6232 = vmatprep.subr.bf16.mxu0 %v7815_v20  ;;  %v8266_v20 = vpack.c.bf16 %v1061_v16, %v1060_v10 }
 0x2ad   : > { %6374 = vmatpush3.bf16.xpose.msk.msra.mxu1 %vm6772_vm2, %v8266_v20 }
 0x2ae   : > { %6234 = vmatpush3.bf16.msra.mxu0 %v7832_v58  ;;  %v1281_v58 = vadd.f32 %v1280_v38, %v1279_v2  ;;  %6375 = vmatprep.subr.bf16.mxu1 %v9041_v32 }
 0x2af   : > { %6236 = vmatprep.subr.bf16.mxu0 %v7837_v35 }
 0x2b2   : > { %6238 = vmatpush3.bf16.msra.mxu0 %v7854_v8  ;;  %v1316_v8 = vadd.f32 %v1315_v54, %v1314_v17 }
 0x2b3   : > { %6240 = vmatprep.subr.bf16.mxu0 %v7858_v14  ;;  %v1224_v14 = vcombine.high %v8276_v21, %v8276_v21 }
 0x2b6   : > { %6242 = vmatpush3.bf16.msra.mxu0 %v7876_v59  ;;  %v1303_v59 = vsel %vm1088_vm3, %v1206_v12, 0.0  ;;  %v9056_v12 = vld [vmem:[#allocation13_spill] sm:$0xff] }
 0x2b7   : > { %6276 = vmatprep.subr.bf16.mxu0 %v7879_v47  ;;  %v1338_v47 = vsel %vm1088_vm3, %v1224_v14, 0.0  ;;  %v1304_v39 = vrot.slane %v1303_v59, 4 }
 0x2b8   : > { %v1339_v4 = vrot.slane %v1338_v47, 4 }
 0x2b9   : > { %2181 = vmatmul.mubr.f32.vlgmr.msra.gmra.mrb[22].mxu0 %v1281_v58 }
 0x2ba   : > { %6278 = vmatpush3.bf16.msra.mxu0 %v7896_v36  ;;  %2320 = vmatprep.mubr.f32.mxu0 %v1316_v8  ;;  %v9050_v36 = vld [vmem:[#allocation30_spill] sm:$0xff]  ;;  %v1340_v26 = vadd.f32 %v1339_v4, %v1338_v47  ;;  %v9060_v47 = vld [vmem:[#allocation16_spill] sm:$0xff] }
 0x2bb   : > { %6280 = vmatprep.subr.bf16.mxu0 %v7899_v3  ;;  %v717_v42 = vsub.s32 4, %v9050_v36  ;;  %v1305_v3 = vadd.f32 %v1304_v39, %v1303_v59  ;;  %v1331_v39 = vsel %vm1088_vm3, %v8276_v21, 0.0 }
 0x2bc   : > { %v1341_v48 = vrot.slane %v1340_v26, 2  ;;  %v1332_v4 = vrot.slane %v1331_v39, 4 }
 0x2bd   : > { %v1306_v31 = vrot.slane %v1305_v3, 2 }
 0x2be   : > { %6282 = vmatpush3.bf16.msra.mxu0 %v7919_v18  ;;  %v8294_v18 = vld [vmem:[%s8906_s4] sm:$0xff]  ;;  %v1342_v25 = vadd.f32 %v1341_v48, %v1340_v26  ;;  %v9064_v26 = vld [vmem:[#allocation20_spill] sm:$0xff]  ;;  %v9067_v48 = vld [vmem:[#allocation25_spill] sm:$0xff] }
 0x2bf   : > { %6284 = vmatprep.subr.bf16.mxu0 %v7922_v9  ;;  %v718_v9 = vrot.slane %v8294_v18, %v717_v42  ;;  %v1307_v44 = vadd.f32 %v1306_v31, %v1305_v3  ;;  %v9062_v42 = vld [vmem:[#allocation18_spill] sm:$0xff]  ;;  %v9063_v3 = vld [vmem:[#allocation19_spill] sm:$0xff]  ;;  %v9066_v31 = vld [vmem:[#allocation24_spill] sm:$0xff] }
 0x2c0   : > { %v1343_v49 = vrot.slane %v1342_v25, 1 }
 0x2c1   : > { %v1308_v51 = vrot.slane %v1307_v44, 1 }
 0x2c2   : > { %6286 = vmatpush3.bf16.msra.mxu0 %v7943_v11  ;;  %v9053_v11 = vld [vmem:[#allocation10_spill] sm:$0xff]  ;;  %v1344_v10 = vadd.f32 %v1343_v49, %v1342_v25 }
 0x2c3   : > { %6288 = vmatprep.subr.bf16.mxu0 %v7948_v63  ;;  %v1062_v63 = vld [vmem:[%s8907_s5 + $0x890] sm:$0xff]  ;;  %v1309_v38 = vadd.f32 %v1308_v51, %v1307_v44 }
 0x2c4   : > { %v8305_v22 = vpack.c.bf16 %v1063_v28, %v1062_v63 }
 0x2c6   : > { %6290 = vmatpush3.bf16.msra.mxu0 %v9051_v23  ;;  %6378 = vmatpush3.bf16.xpose.msk.msra.mxu1 %vm6772_vm2, %v8305_v22  ;;  %v1333_v23 = vadd.f32 %v1332_v4, %v1331_v39  ;;  %v6415_v4 = vld [vmem:[%s8905_s3 + $0x8] sm:$0xff]  }
 0x2c7   : > { %6292 = vmatprep.subr.bf16.mxu0 %v9052_v53  ;;  %5349 = vmatprep.subr.bf16.mxu1 %v6412_v29  ;;  %v9065_v53 = vld [vmem:[#allocation23_spill] sm:$0xff] }
 0x2ca   : > { %6294 = vmatpush3.bf16.msra.mxu0 %v9053_v11 }
 0x2cb   : > { %6296 = vmatprep.subr.bf16.mxu0 %v9054_v6 }
 0x2cc   : > { %v5687_v57 = vpop.f32.mrb[4].mxu0 }
 0x2cd   : > { %v8307_v30 = vadd.f32 %v5687_v57, %v718_v9  ;;  %v765_v19 = vpop.f32.mrb[5].mxu0 }
 0x2ce   : > { %6298 = vmatpush3.bf16.msra.mxu0 %v9055_v15  ;;  %v5688_v7 = vpop.f32.mrb[6].mxu0  ;;  %v8316_v41 = vadd.f32 %v765_v19, %v718_v9  ;;  %v9068_v19 = vld [vmem:[#allocation26_spill] sm:$0xff] }
 0x2cf   : > { %v8313_v61 = vadd.f32 %v5688_v7, %v718_v9  ;;  %v768_v5 = vpop.f32.mrb[7].mxu0  ;;  %6300 = vmatprep.subr.bf16.mxu0 %v9056_v12 }
 0x2d0   : > { %v8318_v55 = vadd.f32 %v768_v5, %v718_v9 }
 0x2d1   : > { %v4040_v62 = vpack.c.bf16 %v8313_v61, %v8307_v30 }
 0x2d2   : > { %v4039_v27 = vpack.c.bf16 %v8318_v55, %v8316_v41  ;;  %6302 = vmatpush3.bf16.msra.mxu0 %v9057_v40  ;;  %v6479_v41 = vld [vmem:[%s8905_s3 + $0x88] sm:$0xff]   ;;  %v6480_v55 = vld [vmem:[%s8905_s3 + $0xd0] sm:$0xff]  }
 0x2d3   : > { %6304 = vmatprep.subr.bf16.mxu0 %v9058_v56 }
 0x2d4   : > { %v5691_v2 = vpop.f32.mrb[8].mxu0 }
 0x2d5   : > { %v8329_v17 = vadd.f32 %v5691_v2, %v718_v9  ;;  %v781_v37 = vpop.f32.mrb[9].mxu0 }
 0x2d6   : > { %v8331_v33 = vadd.f32 %v781_v37, %v718_v9  ;;  %6306 = vmatpush3.bf16.msra.mxu0 %v8051_v34  ;;  %v5692_v54 = vpop.f32.mrb[10].mxu0  ;;  %v9059_v34 = vld [vmem:[#allocation21_spill] sm:$0xff] }
 0x2d7   : > { %v8334_v16 = vadd.f32 %v5692_v54, %v718_v9  ;;  %v784_v58 = vpop.f32.mrb[11].mxu0  ;;  %6340 = vmatprep.subr.bf16.mxu0 %v8054_v1  ;;  %v9061_v1 = vld [vmem:[#allocation17_spill] sm:$0xff] }
 0x2d8   : > { %v8337_v8 = vadd.f32 %v784_v58, %v718_v9  ;;  %v5091_v9 = vpop.f32.mrb[12].mxu1 }
 0x2d9   : > { %v4042_v14 = vpack.c.bf16 %v8334_v16, %v8329_v17  ;;  %2321 = vmatmul.mubr.f32.vlgmr.msra.gmra.mrb[24].mxu0 %v1309_v38  ;;  %v5092_v11 = vpop.f32.mrb[13].mxu1 }
 0x2da   : > { %v4041_v59 = vpack.c.bf16 %v8337_v8, %v8331_v33  ;;  %6342 = vmatpush3.bf16.msra.mxu0 %v8071_v46  ;;  %2460 = vmatprep.mubr.f32.mxu0 %v1344_v10  ;;  %v1334_v46 = vrot.slane %v1333_v23, 2  ;;  %v8355_v21 = vadd.f32 %v5092_v11, %v5091_v9  ;;  %v6421_v9 = vld [vmem:[%s8905_s3 + $0x20] sm:$0xff]   ;;  %v6423_v11 = vld [vmem:[%s8905_s3 + $0x28] sm:$0xff]  }
 0x2db   : > { %6344 = vmatprep.subr.bf16.mxu0 %v9059_v34 }
 0x2dc   : > { %v1335_v6 = vadd.f32 %v1334_v46, %v1333_v23  ;;  %v6417_v23 = vld [vmem:[%s8905_s3 + $0x10] sm:$0xff]   ;;  %v6420_v46 = vld [vmem:[%s8905_s3 + $0x60] sm:$0xff]  }
 0x2de   : > { %6346 = vmatpush3.bf16.msra.mxu0 %v9060_v47  ;;  %v1336_v15 = vrot.slane %v1335_v6, 1  ;;  %v9070_v47 = vld [vmem:[#allocation3_spill] sm:$0xff] }
 0x2df   : > { %6348 = vmatprep.subr.bf16.mxu0 %v9061_v1  ;;  %v2642_v39 = vpack.c.bf16 %v9070_v47, %v9070_v47  ;;  %v6588_v47 = vld [vmem:[%s6937_s26 + $0x10] sm:$0xff] }
 0x2e0   : > { %v1337_v25 = vadd.f32 %v1336_v15, %v1335_v6  ;;  %v6428_v15 = vld [vmem:[%s8905_s3 + $0x140] sm:$0xff]  }
 0x2e2   : > { %6350 = vmatpush3.bf16.msra.mxu0 %v9062_v42  ;;  %v6416_v42 = vld [vmem:[%s8905_s3 + $0x50] sm:$0xff]  }
 0x2e3   : > { %6352 = vmatprep.subr.bf16.mxu0 %v9063_v3  ;;  %v6476_v3 = vld [vmem:[%s8905_s3 + $0xc0] sm:$0xff]  }
 0x2e6   : > { %6354 = vmatpush3.bf16.msra.mxu0 %v9064_v26  ;;  %v6418_v26 = vld [vmem:[%s8905_s3 + $0x58] sm:$0xff]  }
 0x2e7   : > { %6356 = vmatprep.subr.bf16.mxu0 %v9065_v53  ;;  %v6419_v53 = vld [vmem:[%s8905_s3 + $0x18] sm:$0xff]  }
 0x2ea   : > { %6358 = vmatpush3.bf16.msra.mxu0 %v9066_v31  ;;  %v6422_v31 = vld [vmem:[%s8905_s3 + $0x68] sm:$0xff]  }
 0x2eb   : > { %6360 = vmatprep.subr.bf16.mxu0 %v9067_v48  ;;  %v6424_v48 = vld [vmem:[%s8905_s3 + $0x70] sm:$0xff]  }
 0x2ec   : > { %v4846_v63 = vpop.f32.mrb[12].mxu0 }
 0x2ed   : > { %v4847_v28 = vpop.f32.mrb[13].mxu0 }
 0x2ee   : > { %v4848_v57 = vadd.f32 %v4847_v28, %v4846_v63  ;;  %6362 = vmatpush3.bf16.msra.mxu0 %v8178_v45  ;;  %v9069_v45 = vmov 0.0   ;;  %v6425_v63 = vld [vmem:[%s8905_s3 + $0x30] sm:$0xff]   ;;  %v6426_v28 = vld [vmem:[%s8905_s3 + $0x78] sm:$0xff]  }
 0x2ef   : > { %6364 = vmatprep.subr.bf16.mxu0 %v8181_v0 }
 0x2f0   : > { %v1482_v44 = vadd.f32 %v4848_v57, %v9068_v19  ;;  %v6427_v19 = vld [vmem:[%s8905_s3 + $0x38] sm:$0xff]  }
 0x2f2   : > { %v1552_v7 = vadd.f32 %v8212_v60, %v1482_v44  ;;  %6366 = vmatpush3.bf16.msra.mxu0 %v8198_v13 }
 0x2f3   : > { %6368 = vmatprep.subr.bf16.mxu0 %v8201_v24 }
 0x2f6   : > { %6370 = vmatpush3.bf16.msra.mxu0 %v8210_v43  ;;  %v5161_v5 = vpop.f32.mrb[14].mxu1 }
 0x2f7   : > { %v5162_v12 = vpop.f32.mrb[15].mxu1  ;;  %6379 = vmatprep.subr.bf16.mxu0 %v9041_v32 }
 0x2f8   : > { %v8365_v51 = vadd.f32 %v5162_v12, %v5161_v5  ;;  %v6429_v12 = vld [vmem:[%s8905_s3 + $0x100] sm:$0xff]  }
 0x2f9   : > { %2461 = vmatmul.mubr.f32.vlgmr.msra.gmra.mrb[26].mxu0 %v1337_v25  ;;  %v6587_v25 = vld [vmem:[%s6937_s26] sm:$0xff] }
 0x2fa   : > { %5712 = vmatprep.mubr.msk.f32.mxu0 %vm6608_vm0, %v9069_v45  ;;  %v2641_v5 = vpack.c.bf16 %v6587_v25, %v6587_v25  ;;  %v9071_v45 = vld [vmem:[#allocation5_spill] sm:$0xff]  ;;  %v6460_v25 = vld [vmem:[%s8905_s3 + $0x340] sm:$0xff]  }
 0x2ff   : > { %6382 = vmatpush3.bf16.xpose.msk.msra.mxu0 %vm6772_vm2, %v8266_v20 }
 0x300   : > { %6383 = vmatprep.subr.bf16.mxu0 %v9041_v32 }
 0x307   : > { %6386 = vmatpush3.bf16.xpose.msk.msra.mxu0 %vm6772_vm2, %v8305_v22 }
 0x308   : > { %5371 = vmatprep.subr.bf16.mxu0 %v6476_v3 }
 0x30c   : > { %v4916_v24 = vpop.f32.mrb[14].mxu0 }
 0x30d   : > { %v4917_v0 = vpop.f32.mrb[15].mxu0 }
 0x30e   : > { %v4918_v13 = vadd.f32 %v4917_v0, %v4916_v24  ;;  %v2646_v24 = vpack.c.bf16 %v9071_v45, %v9071_v45 }
 0x310   : > { %v1622_v43 = vadd.f32 %v4918_v13, %v1552_v7  ;;  %v6430_v13 = vld [vmem:[%s8905_s3 + $0x148] sm:$0xff]  }
 0x312   : > { %v1692_v60 = vadd.f32 %v8235_v52, %v1622_v43  ;;  %v6413_v52 = vld [vmem:[%s8905_s3] sm:$0xff]   ;;  %v6432_v43 = vld [vmem:[%s8905_s3 + $0x150] sm:$0xff]  }
 0x316   : > { %v5231_v40 = vpop.f32.mrb[16].mxu1 }
 0x317   : > { %v5232_v49 = vpop.f32.mrb[17].mxu1 }
 0x318   : > { %v8377_v29 = vadd.f32 %v5232_v49, %v5231_v40  ;;  %v6435_v40 = vld [vmem:[%s8905_s3 + $0x118] sm:$0xff]   ;;  %v6436_v49 = vld [vmem:[%s8905_s3 + $0x160] sm:$0xff]  }
 0x32c   : > { %v4986_v56 = vpop.f32.mrb[16].mxu0 }
 0x32d   : > { %v4987_v2 = vpop.f32.mrb[17].mxu0 }
 0x32e   : > { %v4988_v37 = vadd.f32 %v4987_v2, %v4986_v56  ;;  %v6437_v56 = vld [vmem:[%s8905_s3 + $0x120] sm:$0xff]   ;;  %v6438_v2 = vld [vmem:[%s8905_s3 + $0x168] sm:$0xff]  }
 0x330   : > { %v1762_v20 = vadd.f32 %v4988_v37, %v1692_v60  ;;  %v6434_v60 = vld [vmem:[%s8905_s3 + $0x158] sm:$0xff]   ;;  %v6439_v37 = vld [vmem:[%s8905_s3 + $0x128] sm:$0xff]  }
 0x332   : > { %v1832_v32 = vadd.f32 %v8257_v50, %v1762_v20  ;;  %v6414_v50 = vld [vmem:[%s8905_s3 + $0x48] sm:$0xff]   ;;  %v6440_v20 = vld [vmem:[%s8905_s3 + $0x170] sm:$0xff]  }
 0x336   : > { %v5301_v38 = vpop.f32.mrb[18].mxu1 }
 0x337   : > { %v5302_v54 = vpop.f32.mrb[19].mxu1 }
 0x338   : > { %v8380_v35 = vadd.f32 %v5302_v54, %v5301_v38  ;;  %v6442_v38 = vld [vmem:[%s8905_s3 + $0x178] sm:$0xff]  }
 0x34c   : > { %v5056_v22 = vpop.f32.mrb[18].mxu0 }
 0x34d   : > { %v5057_v10 = vpop.f32.mrb[19].mxu0 }
 0x34e   : > { %v5058_v58 = vadd.f32 %v5057_v10, %v5056_v22  ;;  %v6443_v10 = vld [vmem:[%s8905_s3 + $0x138] sm:$0xff]  }
 0x350   : > { %v1902_v34 = vadd.f32 %v5058_v58, %v1832_v32  ;;  %v6441_v32 = vld [vmem:[%s8905_s3 + $0x130] sm:$0xff]  }
 0x352   : > { %v8387_v1 = vmul.f32 0.00390625, %v1902_v34  ;;  %v6444_v34 = vld [vmem:[%s8905_s3 + $0x240] sm:$0xff]  }
 0x354   : > { %5702 = vmatmul.mubr.msk.f32.vlgmr.msra.gmra.mrb[20].mxu1 %vm482_vm1, %v8387_v1 }
 0x355   : > { %5350 = vmatpush3.bf16.msra.mxu1 %v6413_v52  ;;  %3713 = vmatprep.mubr.bf16.mxu1 %v2642_v39  ;;  %v2645_v39 = vpack.c.bf16 %v6588_v47, %v6588_v47  ;;  %v6590_v47 = vld [vmem:[%s6937_s26 + $0x30] sm:$0xff] }
 0x356   : > { %5351 = vmatprep.subr.bf16.mxu1 %v6414_v50  ;;  %v6445_v50 = vld [vmem:[%s8905_s3 + $0x200] sm:$0xff]  }
 0x359   : > { %5352 = vmatpush3.bf16.msra.mxu1 %v6415_v4  ;;  %v9072_v4 = vld [vmem:[#allocation6_spill] sm:$0xff] }
 0x35a   : > { %5353 = vmatprep.subr.bf16.mxu1 %v6416_v42  ;;  %v2650_v42 = vpack.c.bf16 %v9072_v4, %v9072_v4 }
 0x35d   : > { %5354 = vmatpush3.bf16.msra.mxu1 %v6417_v23  ;;  %v6446_v23 = vld [vmem:[%s8905_s3 + $0x248] sm:$0xff]  }
 0x35e   : > { %5355 = vmatprep.subr.bf16.mxu1 %v6418_v26  ;;  %v6447_v26 = vld [vmem:[%s8905_s3 + $0x208] sm:$0xff]  }
 0x361   : > { %5356 = vmatpush3.bf16.msra.mxu1 %v6419_v53  ;;  %v6448_v53 = vld [vmem:[%s8905_s3 + $0x250] sm:$0xff]  }
 0x362   : > { %5357 = vmatprep.subr.bf16.mxu1 %v6420_v46  ;;  %v6450_v46 = vld [vmem:[%s8905_s3 + $0x258] sm:$0xff]  }
 0x365   : > { %5358 = vmatpush3.bf16.msra.mxu1 %v6421_v9  ;;  %v6451_v9 = vld [vmem:[%s8905_s3 + $0x218] sm:$0xff]  }
 0x366   : > { %5359 = vmatprep.subr.bf16.mxu1 %v6422_v31  ;;  %v6452_v31 = vld [vmem:[%s8905_s3 + $0x260] sm:$0xff]  }
 0x369   : > { %5360 = vmatpush3.bf16.msra.mxu1 %v6423_v11  ;;  %v6453_v11 = vld [vmem:[%s8905_s3 + $0x220] sm:$0xff]  }
 0x36a   : > { %5361 = vmatprep.subr.bf16.mxu1 %v6424_v48  ;;  %v6454_v48 = vld [vmem:[%s8905_s3 + $0x268] sm:$0xff]  }
 0x36c   : > { %v5126_v6 = vpop.f32.mrb[20].mxu0 }
 0x36d   : > { %5362 = vmatpush3.bf16.msra.mxu1 %v6425_v63  ;;  %v5127_v57 = vpop.f32.mrb[21].mxu0  ;;  %v6455_v63 = vld [vmem:[%s8905_s3 + $0x228] sm:$0xff]  }
 0x36e   : > { %v5128_v44 = vadd.f32 %v5127_v57, %v5126_v6  ;;  %5363 = vmatprep.subr.bf16.mxu1 %v6426_v28  ;;  %v6456_v28 = vld [vmem:[%s8905_s3 + $0x270] sm:$0xff]   ;;  %v6458_v57 = vld [vmem:[%s8905_s3 + $0x278] sm:$0xff]  }
 0x36f   : > { %v6457_v6 = vld [vmem:[%s8905_s3 + $0x230] sm:$0xff]  }
 0x370   : > { %v2043_v7 = vadd.f32 %v5128_v44, %v8355_v21  ;;  %v6431_v21 = vld [vmem:[%s8905_s3 + $0x108] sm:$0xff]  }
 0x371   : > { %5364 = vmatpush3.bf16.msra.mxu1 %v6427_v19 }
 0x372   : > { %v2113_v0 = vadd.f32 %v8365_v51, %v2043_v7  ;;  %5393 = vmatprep.subr.bf16.mxu1 %v6428_v15  ;;  %v6433_v51 = vld [vmem:[%s8905_s3 + $0x110] sm:$0xff]   ;;  %v6459_v15 = vld [vmem:[%s8905_s3 + $0x238] sm:$0xff]  }
 0x374   : > { %3714 = vmatmul.mubr.bf16.vlgmr.msra.gmra.mrb[24].mxu1 %v2641_v5 }
 0x375   : > { %5394 = vmatpush3.bf16.msra.mxu1 %v6429_v12  ;;  %3793 = vmatprep.mubr.bf16.mxu1 %v2646_v24  ;;  %v6589_v12 = vld [vmem:[%s6937_s26 + $0x20] sm:$0xff] }
 0x376   : > { %5395 = vmatprep.subr.bf16.mxu1 %v6430_v13  ;;  %v2649_v45 = vpack.c.bf16 %v6589_v12, %v6589_v12  ;;  %v6461_v24 = vld [vmem:[%s8905_s3 + $0x300] sm:$0xff]  }
 0x379   : > { %5396 = vmatpush3.bf16.msra.mxu1 %v6431_v21 }
 0x37a   : > { %5397 = vmatprep.subr.bf16.mxu1 %v6432_v43  ;;  %v6462_v43 = vld [vmem:[%s8905_s3 + $0x348] sm:$0xff]  }
 0x37d   : > { %5398 = vmatpush3.bf16.msra.mxu1 %v6433_v51  ;;  %v6463_v51 = vld [vmem:[%s8905_s3 + $0x308] sm:$0xff]  }
 0x37e   : > { %5399 = vmatprep.subr.bf16.mxu1 %v6434_v60  ;;  %v6464_v60 = vld [vmem:[%s8905_s3 + $0x350] sm:$0xff]  }
 0x381   : > { %5400 = vmatpush3.bf16.msra.mxu1 %v6435_v40  ;;  %v6466_v40 = vld [vmem:[%s8905_s3 + $0x358] sm:$0xff]  }
 0x382   : > { %5401 = vmatprep.subr.bf16.mxu1 %v6436_v49  ;;  %v6467_v49 = vld [vmem:[%s8905_s3 + $0x318] sm:$0xff]  }
 0x385   : > { %5402 = vmatpush3.bf16.msra.mxu1 %v6437_v56  ;;  %v6468_v56 = vld [vmem:[%s8905_s3 + $0x360] sm:$0xff]  }
 0x386   : > { %5403 = vmatprep.subr.bf16.mxu1 %v6438_v2  ;;  %v6469_v2 = vld [vmem:[%s8905_s3 + $0x320] sm:$0xff]  }
 0x389   : > { %5404 = vmatpush3.bf16.msra.mxu1 %v6439_v37  ;;  %v6470_v37 = vld [vmem:[%s8905_s3 + $0x368] sm:$0xff]  }
 0x38a   : > { %5405 = vmatprep.subr.bf16.mxu1 %v6440_v20  ;;  %v6471_v20 = vld [vmem:[%s8905_s3 + $0x328] sm:$0xff]  }
 0x38c   : > { %v5196_v54 = vpop.f32.mrb[22].mxu0 }
 0x38d   : > { %5406 = vmatpush3.bf16.msra.mxu1 %v6441_v32  ;;  %v5197_v22 = vpop.f32.mrb[23].mxu0  ;;  %v6472_v32 = vld [vmem:[%s8905_s3 + $0x370] sm:$0xff]  }
 0x38e   : > { %v5198_v58 = vadd.f32 %v5197_v22, %v5196_v54  ;;  %5407 = vmatprep.subr.bf16.mxu1 %v6442_v38  ;;  %v6473_v38 = vld [vmem:[%s8905_s3 + $0x330] sm:$0xff]   ;;  %v6474_v54 = vld [vmem:[%s8905_s3 + $0x378] sm:$0xff]  }
 0x390   : > { %v2183_v52 = vadd.f32 %v5198_v58, %v2113_v0  ;;  %v9073_v0 = vld [vmem:[#allocation22_spill] sm:$0xff]  ;;  %v6475_v58 = vld [vmem:[%s8905_s3 + $0x338] sm:$0xff]  }
 0x391   : > { %5408 = vmatpush3.bf16.msra.mxu1 %v6443_v10  ;;  %v2654_v13 = vpack.c.bf16 %v9073_v0, %v9073_v0  ;;  %v6496_v0 = vld [vmem:[%s8905_s3 + $0x1d0] sm:$0xff]  }
 0x392   : > { %v2253_v3 = vadd.f32 %v8377_v29, %v2183_v52  ;;  %5437 = vmatprep.subr.bf16.mxu1 %v6444_v34  ;;  %v6449_v29 = vld [vmem:[%s8905_s3 + $0x210] sm:$0xff]  }
 0x394   : > { %3794 = vmatmul.mubr.bf16.vlgmr.msra.gmra.mrb[28].mxu1 %v2645_v39  ;;  %v2653_v39 = vpack.c.bf16 %v6590_v47, %v6590_v47 }
 0x395   : > { %5438 = vmatpush3.bf16.msra.mxu1 %v6445_v50  ;;  %3873 = vmatprep.mubr.bf16.mxu1 %v2650_v42  ;;  %v2467_v50 = vmul.f32 %v8387_v1, %v8387_v1  ;;  %v6478_v1 = vld [vmem:[%s8905_s3 + $0xc8] sm:$0xff]  }
 0x396   : > { %5439 = vmatprep.subr.bf16.mxu1 %v6446_v23  ;;  %v6477_v23 = vld [vmem:[%s8905_s3 + $0x80] sm:$0xff]  }
 0x399   : > { %5440 = vmatpush3.bf16.msra.mxu1 %v6447_v26  ;;  %v9074_v26 = vld [vmem:[#allocation29_spill] sm:$0xff] }
 0x39a   : > { %5441 = vmatprep.subr.bf16.mxu1 %v6448_v53  ;;  %v2644_v53 = vpack.c.bf16 %v9074_v26, %v9074_v26  ;;  %v6518_v26 = vld [vmem:[%s8905_s3 + $0x2e8] sm:$0xff]  }
 0x39d   : > { %5442 = vmatpush3.bf16.msra.mxu1 %v6449_v29 }
 0x39e   : > { %5443 = vmatprep.subr.bf16.mxu1 %v6450_v46  ;;  %v6482_v46 = vld [vmem:[%s8905_s3 + $0xd8] sm:$0xff]  }
 0x3a1   : > { %5444 = vmatpush3.bf16.msra.mxu1 %v6451_v9  ;;  %v6483_v9 = vld [vmem:[%s8905_s3 + $0x98] sm:$0xff]  }
 0x3a2   : > { %5445 = vmatprep.subr.bf16.mxu1 %v6452_v31  ;;  %v6484_v31 = vld [vmem:[%s8905_s3 + $0xe0] sm:$0xff]  }
 0x3a5   : > { %5446 = vmatpush3.bf16.msra.mxu1 %v6453_v11  ;;  %v6485_v11 = vld [vmem:[%s8905_s3 + $0xa0] sm:$0xff]  }
 0x3a6   : > { %5447 = vmatprep.subr.bf16.mxu1 %v6454_v48  ;;  %v6486_v48 = vld [vmem:[%s8905_s3 + $0xe8] sm:$0xff]  }
 0x3a9   : > { %5448 = vmatpush3.bf16.msra.mxu1 %v6455_v63  ;;  %v6487_v63 = vld [vmem:[%s8905_s3 + $0xa8] sm:$0xff]  }
 0x3aa   : > { %5449 = vmatprep.subr.bf16.mxu1 %v6456_v28  ;;  %v6488_v28 = vld [vmem:[%s8905_s3 + $0xf0] sm:$0xff]  }
 0x3ac   : > { %v5266_v19 = vpop.f32.mrb[24].mxu0 }
 0x3ad   : > { %5450 = vmatpush3.bf16.msra.mxu1 %v6457_v6  ;;  %v5267_v44 = vpop.f32.mrb[25].mxu0  ;;  %v6489_v6 = vld [vmem:[%s8905_s3 + $0xb0] sm:$0xff]  }
 0x3ae   : > { %v5268_v7 = vadd.f32 %v5267_v44, %v5266_v19  ;;  %5451 = vmatprep.subr.bf16.mxu1 %v6458_v57  ;;  %v6490_v57 = vld [vmem:[%s8905_s3 + $0xf8] sm:$0xff]   ;;  %v6492_v44 = vld [vmem:[%s8905_s3 + $0x1c0] sm:$0xff]  }
 0x3af   : > { %v6491_v19 = vld [vmem:[%s8905_s3 + $0xb8] sm:$0xff]  }
 0x3b0   : > { %v2323_v5 = vadd.f32 %v5268_v7, %v2253_v3 }
 0x3b1   : > { %5452 = vmatpush3.bf16.msra.mxu1 %v6459_v15  ;;  %v6591_v15 = vld [vmem:[%s6937_s26 + $0x8] sm:$0xff] }
 0x3b2   : > { %v2393_v21 = vadd.f32 %v8380_v35, %v2323_v5  ;;  %5481 = vmatprep.subr.bf16.mxu1 %v6460_v25  ;;  %v6465_v35 = vld [vmem:[%s8905_s3 + $0x310] sm:$0xff]   ;;  %v2643_v7 = vpack.c.bf16 %v6591_v15, %v6591_v15  ;;  %v6493_v25 = vld [vmem:[%s8905_s3 + $0x180] sm:$0xff]   ;;  %v9075_v5 = vld [vmem:[#allocation35_spill] sm:$0xff] }
 0x3b3   : > { %v2648_v12 = vpack.c.bf16 %v9075_v5, %v9075_v5  ;;  %v6530_v15 = vld [vmem:[%s8905_s3 + $0x3d8] sm:$0xff]  }
 0x3b4   : > { %3874 = vmatmul.mubr.bf16.vlgmr.msra.gmra.mrb[32].mxu1 %v2649_v45  ;;  %v6494_v45 = vld [vmem:[%s8905_s3 + $0x1c8] sm:$0xff]  }
 0x3b5   : > { %5482 = vmatpush3.bf16.msra.mxu1 %v6461_v24  ;;  %3953 = vmatprep.mubr.bf16.mxu1 %v2654_v13  ;;  %v6495_v24 = vld [vmem:[%s8905_s3 + $0x188] sm:$0xff]   ;;  %v6497_v13 = vld [vmem:[%s8905_s3 + $0x190] sm:$0xff]  }
 0x3b6   : > { %5483 = vmatprep.subr.bf16.mxu1 %v6462_v43  ;;  %v6499_v43 = vld [vmem:[%s8905_s3 + $0x198] sm:$0xff]  }
 0x3b9   : > { %5484 = vmatpush3.bf16.msra.mxu1 %v6463_v51  ;;  %v6500_v51 = vld [vmem:[%s8905_s3 + $0x1e0] sm:$0xff]  }
 0x3ba   : > { %5485 = vmatprep.subr.bf16.mxu1 %v6464_v60  ;;  %v6501_v60 = vld [vmem:[%s8905_s3 + $0x1a0] sm:$0xff]  }
 0x3bd   : > { %5486 = vmatpush3.bf16.msra.mxu1 %v6465_v35  ;;  %v6502_v35 = vld [vmem:[%s8905_s3 + $0x1e8] sm:$0xff]  }
 0x3be   : > { %5487 = vmatprep.subr.bf16.mxu1 %v6466_v40  ;;  %v6503_v40 = vld [vmem:[%s8905_s3 + $0x1a8] sm:$0xff]  }
 0x3c1   : > { %5488 = vmatpush3.bf16.msra.mxu1 %v6467_v49  ;;  %v6504_v49 = vld [vmem:[%s8905_s3 + $0x1f0] sm:$0xff]  }
 0x3c2   : > { %5489 = vmatprep.subr.bf16.mxu1 %v6468_v56  ;;  %v6505_v56 = vld [vmem:[%s8905_s3 + $0x1b0] sm:$0xff]  }
 0x3c5   : > { %5490 = vmatpush3.bf16.msra.mxu1 %v6469_v2  ;;  %v6506_v2 = vld [vmem:[%s8905_s3 + $0x1f8] sm:$0xff]  }
 0x3c6   : > { %5491 = vmatprep.subr.bf16.mxu1 %v6470_v37  ;;  %v6507_v37 = vld [vmem:[%s8905_s3 + $0x1b8] sm:$0xff]  }
 0x3c9   : > { %5492 = vmatpush3.bf16.msra.mxu1 %v6471_v20  ;;  %v6508_v20 = vld [vmem:[%s8905_s3 + $0x2c0] sm:$0xff]  }
 0x3ca   : > { %5493 = vmatprep.subr.bf16.mxu1 %v6472_v32  ;;  %v6592_v32 = vld [vmem:[%s6937_s26 + $0x18] sm:$0xff] }
 0x3cc   : > { %v5336_v22 = vpop.f32.mrb[26].mxu0 }
 0x3cd   : > { %5494 = vmatpush3.bf16.msra.mxu1 %v6473_v38  ;;  %v5337_v10 = vpop.f32.mrb[27].mxu0  ;;  %v2647_v38 = vpack.c.bf16 %v6592_v32, %v6592_v32 }
 0x3ce   : > { %v5338_v34 = vadd.f32 %v5337_v10, %v5336_v22  ;;  %5495 = vmatprep.subr.bf16.mxu1 %v6474_v54  ;;  %v6509_v54 = vld [vmem:[%s8905_s3 + $0x280] sm:$0xff]   ;;  %v9076_v22 = vld [vmem:[#allocation36_spill] sm:$0xff] }
 0x3cf   : > { %v2652_v10 = vpack.c.bf16 %v9076_v22, %v9076_v22 }
 0x3d0   : > { %v2463_v52 = vadd.f32 %v5338_v34, %v2393_v21  ;;  %v6498_v21 = vld [vmem:[%s8905_s3 + $0x1d8] sm:$0xff]   ;;  %v6511_v34 = vld [vmem:[%s8905_s3 + $0x288] sm:$0xff]  }
 0x3d1   : > { %5496 = vmatpush3.bf16.msra.mxu1 %v6475_v58  ;;  %v6510_v58 = vld [vmem:[%s8905_s3 + $0x2c8] sm:$0xff]  }
 0x3d2   : > { %v2466_v4 = vmul.f32 0.00390625, %v2463_v52  ;;  %v6512_v52 = vld [vmem:[%s8905_s3 + $0x2d0] sm:$0xff]  }
 0x3d4   : > { %v2468_v42 = vsub.f32 %v2466_v4, %v2467_v50  ;;  %3954 = vmatmul.mubr.bf16.vlgmr.msra.gmra.mrb[36].mxu1 %v2653_v39  ;;  %v6513_v50 = vld [vmem:[%s8905_s3 + $0x290] sm:$0xff]   ;;  %v6514_v4 = vld [vmem:[%s8905_s3 + $0x2d8] sm:$0xff]  }
 0x3d5   : > { %5717 = vmatprep.mubr.msk.bf16.mxu1 %vm482_vm1, %v4039_v27  ;;  %v6481_v27 = vld [vmem:[%s8905_s3 + $0x90] sm:$0xff]  }
 0x3d6   : > { %v2469_v3 = vadd.f32 1e-06, %v2468_v42  ;;  %v6515_v42 = vld [vmem:[%s8905_s3 + $0x298] sm:$0xff]  }
 0x3d8   : > { %6544 = vrsqrt.f32 %v2469_v3  ;;  %v6516_v3 = vld [vmem:[%s8905_s3 + $0x2e0] sm:$0xff]  }
 0x3e2   : > { %v6545_v29 = vpop.eup %6544 }
 0x3e3   : > { %5713 = vmatmul.mubr.msk.f32.vlgmr.msra.gmra.mrb[28].mxu0 %vm482_vm1, %v6545_v29  ;;  %v6521_v29 = vld [vmem:[%s8905_s3 + $0x2b0] sm:$0xff]  }
 0x3e4   : > { %5372 = vmatpush3.bf16.msra.mxu0 %v6477_v23  ;;  %3753 = vmatprep.mubr.bf16.mxu0 %v2644_v53  ;;  %v6517_v23 = vld [vmem:[%s8905_s3 + $0x2a0] sm:$0xff]   ;;  %v6519_v53 = vld [vmem:[%s8905_s3 + $0x2a8] sm:$0xff]  }
 0x3e5   : > { %5373 = vmatprep.subr.bf16.mxu0 %v6478_v1  ;;  %v6520_v1 = vld [vmem:[%s8905_s3 + $0x2f0] sm:$0xff]  }
 0x3e8   : > { %5374 = vmatpush3.bf16.msra.mxu0 %v6479_v41  ;;  %v6522_v41 = vld [vmem:[%s8905_s3 + $0x2f8] sm:$0xff]  }
 0x3e9   : > { %5375 = vmatprep.subr.bf16.mxu0 %v6480_v55  ;;  %v6523_v55 = vld [vmem:[%s8905_s3 + $0x2b8] sm:$0xff]  }
 0x3ec   : > { %5376 = vmatpush3.bf16.msra.mxu0 %v6481_v27  ;;  %v6524_v27 = vld [vmem:[%s8905_s3 + $0x3c0] sm:$0xff]  }
 0x3ed   : > { %5377 = vmatprep.subr.bf16.mxu0 %v6482_v46  ;;  %v6593_v46 = vld [vmem:[%s6937_s26 + $0x28] sm:$0xff] }
 0x3f0   : > { %5378 = vmatpush3.bf16.msra.mxu0 %v6483_v9  ;;  %v2651_v9 = vpack.c.bf16 %v6593_v46, %v6593_v46  ;;  %v4015_v46 = vsub.s32 3, %v9050_v36 }
 0x3f1   : > { %5379 = vmatprep.subr.bf16.mxu0 %v6484_v31  ;;  %v6525_v31 = vld [vmem:[%s8905_s3 + $0x380] sm:$0xff]  }
 0x3f4   : > { %5380 = vmatpush3.bf16.msra.mxu0 %v6485_v11  ;;  %v9077_v11 = vld [vmem:[#allocation7_spill] sm:$0xff] }
 0x3f5   : > { %5381 = vmatprep.subr.bf16.mxu0 %v6486_v48  ;;  %v2656_v48 = vpack.c.bf16 %v9077_v11, %v9077_v11 }
 0x3f8   : > { %5382 = vmatpush3.bf16.msra.mxu0 %v6487_v63  ;;  %v6526_v63 = vld [vmem:[%s8905_s3 + $0x3c8] sm:$0xff]  }
 0x3f9   : > { %5383 = vmatprep.subr.bf16.mxu0 %v6488_v28  ;;  %v6527_v28 = vld [vmem:[%s8905_s3 + $0x388] sm:$0xff]  }
 0x3fc   : > { %5384 = vmatpush3.bf16.msra.mxu0 %v6489_v6  ;;  %v6528_v6 = vld [vmem:[%s8905_s3 + $0x3d0] sm:$0xff]  }
 0x3fd   : > { %5385 = vmatprep.subr.bf16.mxu0 %v6490_v57 }
 0x400   : > { %5386 = vmatpush3.bf16.msra.mxu0 %v6491_v19  ;;  %v6529_v19 = vld [vmem:[%s8905_s3 + $0x390] sm:$0xff]  }
 0x401   : > { %5415 = vmatprep.subr.bf16.mxu0 %v6492_v44 }
 0x403   : > { %3754 = vmatmul.mubr.bf16.vlgmr.msra.gmra.mrb[32].mxu0 %v2643_v7 }
 0x404   : > { %5416 = vmatpush3.bf16.msra.mxu0 %v6493_v25  ;;  %3833 = vmatprep.mubr.bf16.mxu0 %v2648_v12  ;;  %v6531_v12 = vld [vmem:[%s8905_s3 + $0x398] sm:$0xff]  }
 0x405   : > { %5417 = vmatprep.subr.bf16.mxu0 %v6494_v45  ;;  %v6532_v45 = vld [vmem:[%s8905_s3 + $0x3e0] sm:$0xff]  }
 0x408   : > { %5418 = vmatpush3.bf16.msra.mxu0 %v6495_v24  ;;  %v6533_v24 = vld [vmem:[%s8905_s3 + $0x3a0] sm:$0xff]  }
 0x409   : > { %5419 = vmatprep.subr.bf16.mxu0 %v6496_v0  ;;  %v6534_v0 = vld [vmem:[%s8905_s3 + $0x3e8] sm:$0xff]  }
 0x40c   : > { %5420 = vmatpush3.bf16.msra.mxu0 %v6497_v13  ;;  %v6535_v13 = vld [vmem:[%s8905_s3 + $0x3a8] sm:$0xff]  }
 0x40d   : > { %5421 = vmatprep.subr.bf16.mxu0 %v6498_v21  ;;  %v6536_v21 = vld [vmem:[%s8905_s3 + $0x3f0] sm:$0xff]  }
 0x410   : > { %5422 = vmatpush3.bf16.msra.mxu0 %v6499_v43  ;;  %v6537_v43 = vld [vmem:[%s8905_s3 + $0x3b0] sm:$0xff]  }
 0x411   : > { %5423 = vmatprep.subr.bf16.mxu0 %v6500_v51  ;;  %v6538_v51 = vld [vmem:[%s8905_s3 + $0x3f8] sm:$0xff]  }
 0x414   : > { %5424 = vmatpush3.bf16.msra.mxu0 %v6501_v60  ;;  %v6539_v60 = vld [vmem:[%s8905_s3 + $0x3b8] sm:$0xff]  }
 0x415   : > { %5425 = vmatprep.subr.bf16.mxu0 %v6502_v35  ;;  %v6594_v35 = vld [vmem:[%s6937_s26 + $0x38] sm:$0xff] }
 0x418   : > { %5426 = vmatpush3.bf16.msra.mxu0 %v6503_v40  ;;  %v2655_v40 = vpack.c.bf16 %v6594_v35, %v6594_v35 }
 0x419   : > { %5427 = vmatprep.subr.bf16.mxu0 %v6504_v49 }
 0x41c   : > { %5428 = vmatpush3.bf16.msra.mxu0 %v6505_v56 }
 0x41d   : > { %5429 = vmatprep.subr.bf16.mxu0 %v6506_v2 }
 0x420   : > { %5430 = vmatpush3.bf16.msra.mxu0 %v6507_v37 }
 0x421   : > { %5459 = vmatprep.subr.bf16.mxu0 %v6508_v20 }
 0x423   : > { %3834 = vmatmul.mubr.bf16.vlgmr.msra.gmra.mrb[36].mxu0 %v2647_v38 }
 0x424   : > { %5460 = vmatpush3.bf16.msra.mxu0 %v6509_v54  ;;  %3913 = vmatprep.mubr.bf16.mxu0 %v2652_v10 }
 0x425   : > { %5461 = vmatprep.subr.bf16.mxu0 %v6510_v58 }
 0x427   : > { %v8717_v47 = vpop.f32.mrb[20].mxu1 }
 0x428   : > { %5462 = vmatpush3.bf16.msra.mxu0 %v6511_v34  ;;  %v5703_v39 = vpop.f32.mrb[21].mxu1 }
 0x429   : > { %5463 = vmatprep.subr.bf16.mxu0 %v6512_v52 }
 0x42c   : > { %5464 = vmatpush3.bf16.msra.mxu0 %v6513_v50 }
 0x42d   : > { %5465 = vmatprep.subr.bf16.mxu0 %v6514_v4 }
 0x430   : > { %5466 = vmatpush3.bf16.msra.mxu0 %v6515_v42 }
 0x431   : > { %5467 = vmatprep.subr.bf16.mxu0 %v6516_v3 }
 0x434   : > { %5468 = vmatpush3.bf16.msra.mxu0 %v6517_v23 }
 0x435   : > { %5469 = vmatprep.subr.bf16.mxu0 %v6518_v26 }
 0x438   : > { %5470 = vmatpush3.bf16.msra.mxu0 %v6519_v53  ;;  %v8808_v53 = vld [vmem:[%s8906_s4 + $0x8] sm:$0xff] }
 0x439   : > { %5471 = vmatprep.subr.bf16.mxu0 %v6520_v1 }
 0x43c   : > { %5472 = vmatpush3.bf16.msra.mxu0 %v6521_v29 }
 0x43d   : > { %5473 = vmatprep.subr.bf16.mxu0 %v6522_v41  ;;  %v4024_v41 = vrot.slane %v8808_v53, 5 }
 0x440   : > { %5474 = vmatpush3.bf16.msra.mxu0 %v6523_v55 }
 0x441   : > { %5503 = vmatprep.subr.bf16.mxu0 %v6524_v27  ;;  %v4027_v27 = vrot.slane %v8294_v18, 3 }
 0x443   : > { %3914 = vmatmul.mubr.bf16.vlgmr.msra.gmra.mrb[40].mxu0 %v2651_v9 }
 0x444   : > { %5504 = vmatpush3.bf16.msra.mxu0 %v6525_v31  ;;  %3993 = vmatprep.mubr.bf16.mxu0 %v2656_v48 }
 0x445   : > { %5505 = vmatprep.subr.bf16.mxu0 %v6526_v63 }
 0x447   : > { %v5365_v57 = vpop.f32.mrb[24].mxu1 }
 0x448   : > { %5506 = vmatpush3.bf16.msra.mxu0 %v6527_v28  ;;  %v5366_v44 = vpop.f32.mrb[25].mxu1 }
 0x449   : > { %5507 = vmatprep.subr.bf16.mxu0 %v6528_v6  ;;  %v5367_v7 = vadd.f32 %v5366_v44, %v5365_v57  ;;  %v5368_v25 = vpop.f32.mrb[26].mxu1 }
 0x44a   : > { %v5369_v5 = vpop.f32.mrb[27].mxu1 }
 0x44c   : > { %5508 = vmatpush3.bf16.msra.mxu0 %v6529_v19 }
 0x44d   : > { %5509 = vmatprep.subr.bf16.mxu0 %v6530_v15 }
 0x450   : > { %5510 = vmatpush3.bf16.msra.mxu0 %v6531_v12 }
 0x451   : > { %5511 = vmatprep.subr.bf16.mxu0 %v6532_v45 }
 0x454   : > { %5512 = vmatpush3.bf16.msra.mxu0 %v6533_v24 }
 0x455   : > { %5513 = vmatprep.subr.bf16.mxu0 %v6534_v0 }
 0x458   : > { %5514 = vmatpush3.bf16.msra.mxu0 %v6535_v13 }
 0x459   : > { %5515 = vmatprep.subr.bf16.mxu0 %v6536_v21 }
 0x45c   : > { %5516 = vmatpush3.bf16.msra.mxu0 %v6537_v43 }
 0x45d   : > { %5517 = vmatprep.subr.bf16.mxu0 %v6538_v51 }
 0x460   : > { %5518 = vmatpush3.bf16.msra.mxu0 %v6539_v60 }
 0x463   : > { %3994 = vmatmul.mubr.bf16.vlgmr.msra.gmra.mrb[44].mxu0 %v2655_v40  ;;  %v4007_v40 = vrot.slane %v8294_v18, 4 }
 0x467   : > { %v5409_v49 = vpop.f32.mrb[28].mxu1 }
 0x468   : > { %v5410_v56 = vpop.f32.mrb[29].mxu1 }
 0x469   : > { %v5411_v2 = vadd.f32 %v5410_v56, %v5409_v49  ;;  %v5412_v37 = vpop.f32.mrb[30].mxu1  ;;  %v4003_v56 = vsub.s32 2, %v9050_v36 }
 0x46a   : > { %v5413_v20 = vpop.f32.mrb[31].mxu1 }
 0x487   : > { %v5453_v32 = vpop.f32.mrb[32].mxu1 }
 0x488   : > { %v5454_v38 = vpop.f32.mrb[33].mxu1 }
 0x489   : > { %v5455_v54 = vadd.f32 %v5454_v38, %v5453_v32  ;;  %v5456_v22 = vpop.f32.mrb[34].mxu1 }
 0x48a   : > { %v5457_v10 = vpop.f32.mrb[35].mxu1 }
 0x4a7   : > { %v5497_v58 = vpop.f32.mrb[36].mxu1 }
 0x4a8   : > { %v5498_v34 = vpop.f32.mrb[37].mxu1 }
 0x4a9   : > { %v5499_v52 = vadd.f32 %v5498_v34, %v5497_v58  ;;  %v5500_v39 = vpop.f32.mrb[38].mxu1 }
 0x4aa   : > { %v5501_v50 = vpop.f32.mrb[39].mxu1 }
 0x4b6   : > { %v2625_v4 = vpop.f32.mrb[28].mxu0 }
 0x4b7   : > { %v2630_v42 = vrot.slane %v2625_v4, 6  ;;  %v5714_v3 = vpop.f32.mrb[29].mxu0 }
 0x4b9   : > { %v2632_v23 = vmul.f32 %v8294_v18, %v2630_v42 }
 0x4bb   : > { %v2634_v26 = vrot.slane %v2632_v23, 2  ;;  %v4004_v22 = vrot.slane %v2632_v23, %v4003_v56 }
 0x4bd   : > { %v2636_v1 = vmul.f32 %v2634_v26, %v8717_v47 }
 0x4bf   : > { %v2638_v29 = vrot.slane %v2636_v1, 5 }
 0x4c1   : > { %v2640_v55 = vsub.f32 %v8294_v18, %v2638_v29 }
 0x4c3   : > { %v4026_v9 = vmul.f32 %v4024_v41, %v2640_v55  ;;  %v4009_v49 = vmul.f32 %v4007_v40, %v2640_v55 }
 0x4c5   : > { %v4029_v31 = vadd.f32 %v4027_v27, %v4026_v9 }
 0x4c7   : > { %v8815_v11 = vrot.slane %v4029_v31, %v4015_v46 }
 0x4d6   : > { %v5387_v48 = vpop.f32.mrb[32].mxu0 }
 0x4d7   : > { %v5388_v63 = vpop.f32.mrb[33].mxu0 }
 0x4d8   : > { %v5389_v28 = vadd.f32 %v5388_v63, %v5387_v48  ;;  %v5390_v6 = vpop.f32.mrb[34].mxu0 }
 0x4d9   : > { %v5391_v57 = vpop.f32.mrb[35].mxu0 }
 0x4da   : > { %v3756_v19 = vadd.f32 %v5389_v28, %v5367_v7  ;;  %v4010_v7 = vrot.slane %v8294_v18, 2 }
 0x4dc   : > { %v3796_v47 = vadd.f32 %v5411_v2, %v3756_v19  ;;  %v4012_v32 = vadd.f32 %v4010_v7, %v4009_v49 }
 0x4de   : > { %v4016_v34 = vrot.slane %v4012_v32, %v4015_v46 }
 0x4f6   : > { %v5431_v44 = vpop.f32.mrb[36].mxu0 }
 0x4f7   : > { %v5432_v15 = vpop.f32.mrb[37].mxu0 }
 0x4f8   : > { %v5433_v25 = vadd.f32 %v5432_v15, %v5431_v44  ;;  %v5434_v5 = vpop.f32.mrb[38].mxu0 }
 0x4f9   : > { %v5435_v12 = vpop.f32.mrb[39].mxu0 }
 0x4fa   : > { %v3836_v45 = vadd.f32 %v5433_v25, %v3796_v47 }
 0x4fc   : > { %v3876_v24 = vadd.f32 %v5455_v54, %v3836_v45 }
 0x516   : > { %v5475_v0 = vpop.f32.mrb[40].mxu0 }
 0x517   : > { %v5476_v13 = vpop.f32.mrb[41].mxu0 }
 0x518   : > { %v5477_v21 = vadd.f32 %v5476_v13, %v5475_v0  ;;  %v5478_v43 = vpop.f32.mrb[42].mxu0 }
 0x519   : > { %v5479_v51 = vpop.f32.mrb[43].mxu0 }
 0x51a   : > { %v3916_v60 = vadd.f32 %v5477_v21, %v3876_v24 }
 0x51c   : > { %v3956_v35 = vadd.f32 %v5499_v52, %v3916_v60 }
 0x536   : > { %v5519_v2 = vpop.f32.mrb[44].mxu0 }
 0x537   : > { %v5520_v37 = vpop.f32.mrb[45].mxu0 }
 0x538   : > { %v5521_v20 = vadd.f32 %v5520_v37, %v5519_v2  ;;  %v5522_v38 = vpop.f32.mrb[46].mxu0 }
 0x539   : > { %v5523_v54 = vpop.f32.mrb[47].mxu0 }
 0x53a   : > { %v8820_v10 = vadd.f32 %v5521_v20, %v3956_v35 }
 0x53c   : > { %v4005_v58 = vmul.f32 %v4004_v22, %v8820_v10 }
 0x53e   : > { %v4017_v52 = vadd.f32 %v4016_v34, %v4005_v58 }
 0x540   : > { %v4043_v39 = vpack.c.bf16 %v4017_v52, %v4017_v52 }
 0x542   : > { %6387 = vmatprep.subr.msk.bf16.mxu1 %vm482_vm1, %v4043_v39  ;;  %v4057_v18 = vsel %vm482_vm1, %v4043_v39, 0 }
 0x543   : > { %5716 = vmatpush3.bf16.xpose.msra.mxu1 %v4057_v18 }
 0x54a   : > { %5718 = vmatmul.mubr.msk.bf16.vlgmr.msra.gmra.mrb[40].mxu1 %vm482_vm1, %v4040_v62 }
 0x54b   : > { %5721 = vmatprep.mubr.msk.bf16.mxu1 %vm482_vm1, %v4041_v59 }
 0x552   : > { %5722 = vmatmul.mubr.msk.bf16.gmra.mrb[44].mxu1 %vm482_vm1, %v4042_v14 }
 0x61d   : > { %v5719_v50 = vpop.f32.mrb[40].mxu1 }
 0x61e   : > { %v4126_v4 = vmul.f32 0.17677669, %v5719_v50  ;;  %v4093_v42 = vpop.f32.mrb[41].mxu1 }
 0x61f   : > { %v4124_v3 = vmul.f32 0.17677669, %v4093_v42  ;;  %v5720_v23 = vpop.f32.mrb[42].mxu1 }
 0x620   : > { %v4127_v26 = vmul.f32 0.17677669, %v5720_v23  ;;  %v4096_v30 = vpop.f32.mrb[43].mxu1  ;;  %v4139_v61 = vsel %vm4132_vm4, %v4126_v4, -inf }
 0x621   : > { %v4125_v62 = vmul.f32 0.17677669, %v4096_v30  ;;  %4140 = vmax.xlane.f32.xlu1 %v4139_v61  ;;  %v4133_v33 = vsel %vm4132_vm4, %v4124_v3, -inf }
 0x622   : > { %4134 = vmax.xlane.f32.xlu0 %v4133_v33  ;;  %v4142_v8 = vsel %vm4132_vm4, %v4127_v26, -inf }
 0x623   : > { %v4136_v16 = vsel %vm4132_vm4, %v4125_v62, -inf }
 0x625   : > { %4143 = vmax.xlane.f32.xlu1 %v4142_v8  ;;  %v5723_v17 = vpop.f32.mrb[44].mxu1 }
 0x626   : > { %4137 = vmax.xlane.f32.xlu0 %v4136_v16  ;;  %v4109_v14 = vpop.f32.mrb[45].mxu1  ;;  %v4130_v41 = vmul.f32 0.17677669, %v5723_v17 }
 0x627   : > { %v4128_v59 = vmul.f32 0.17677669, %v4109_v14  ;;  %v5724_v1 = vpop.f32.mrb[46].mxu1 }
 0x628   : > { %v4112_v29 = vpop.f32.mrb[47].mxu1  ;;  %v4131_v46 = vmul.f32 0.17677669, %v5724_v1  ;;  %v4151_v31 = vsel %vm4132_vm4, %v4130_v41, -inf }
 0x629   : > { %v4129_v55 = vmul.f32 0.17677669, %v4112_v29  ;;  %v4145_v27 = vsel %vm4132_vm4, %v4128_v59, -inf }
 0x62a   : > { %4146 = vmax.xlane.f32.xlu0 %v4145_v27  ;;  %v4154_v48 = vsel %vm4132_vm4, %v4131_v46, -inf }
 0x62b   : > { %v4148_v9 = vsel %vm4132_vm4, %v4129_v55, -inf }
 0x62c   : > { %4149 = vmax.xlane.f32.xlu1 %v4148_v9 }
 0x62e   : > { %4152 = vmax.xlane.f32.xlu0 %v4151_v31 }
 0x630   : > { %4155 = vmax.xlane.f32.xlu1 %v4154_v48 }
 0x641   : > { %4035 = vrot.lane.b32.xlu1 %v8815_v11, %s6610_s29 }
 0x644   : > { %4019 = vrot.lane.b32.xlu0 %v4004_v22, %s6610_s29 }
 0x6ae   : > { %v4141_v63 = vpop.xlane.xlu1 %4140 }
 0x6af   : > { %v4159_v28 = vsub.f32 %v4126_v4, %v4141_v63  ;;  %v4135_v6 = vpop.xlane.xlu0 %4134 }
 0x6b0   : > { %v4157_v57 = vsub.f32 %v4124_v3, %v4135_v6 }
 0x6b1   : > { %v4169_v19 = vmul.f32 1.442695, %v4159_v28 }
 0x6b2   : > { %v4165_v47 = vmul.f32 1.442695, %v4157_v57  ;;  %v4144_v44 = vpop.xlane.xlu1 %4143 }
 0x6b3   : > { %6546 = vpow2.f32 %v4169_v19  ;;  %v4160_v15 = vsub.f32 %v4127_v26, %v4144_v44  ;;  %v4138_v25 = vpop.xlane.xlu0 %4137 }
 0x6b4   : > { %6548 = vpow2.f32 %v4165_v47  ;;  %v4158_v5 = vsub.f32 %v4125_v62, %v4138_v25  ;;  %v6540_v62 = vld [vmem:[%s8904_s2 + $0x10] sm:$0xff]  }
 0x6b5   : > { %v4171_v12 = vmul.f32 1.442695, %v4160_v15  ;;  %5735 = vmatprep.subr.bf16.mxu1 %v6540_v62 }
 0x6b6   : > { %v4167_v45 = vmul.f32 1.442695, %v4158_v5  ;;  %5736 = vmatpush3.bf16.msra.mxu1 %v6540_v62 }
 0x6b7   : > { %6550 = vpow2.f32 %v4171_v12  ;;  %v4147_v24 = vpop.xlane.xlu0 %4146 }
 0x6b8   : > { %6552 = vpow2.f32 %v4167_v45  ;;  %v4161_v0 = vsub.f32 %v4128_v59, %v4147_v24 }
 0x6b9   : > { %v4150_v11 = vpop.xlane.xlu1 %4149 }
 0x6ba   : > { %v4162_v13 = vsub.f32 %v4129_v55, %v4150_v11  ;;  %v4173_v35 = vmul.f32 1.442695, %v4161_v0  ;;  %v6541_v11 = vld [vmem:[%s8904_s2 + $0x18] sm:$0xff]  }
 0x6bb   : > { %v4153_v21 = vpop.xlane.xlu0 %4152  ;;  %5737 = vmatprep.subr.bf16.mxu1 %v6541_v11 }
 0x6bc   : > { %v4175_v43 = vmul.f32 1.442695, %v4162_v13  ;;  %v4163_v51 = vsub.f32 %v4130_v41, %v4153_v21  ;;  %5738 = vmatpush3.bf16.msra.mxu1 %v6541_v11 }
 0x6bd   : > { %v8846_v60 = vpop.eup %6546  ;;  %v4156_v40 = vpop.xlane.xlu1 %4155 }
 0x6be   : > { %v6549_v49 = vpop.eup %6548  ;;  %6554 = vpow2.f32 %v4175_v43  ;;  %v4177_v7 = vmul.f32 1.442695, %v4163_v51  ;;  %v4164_v56 = vsub.f32 %v4131_v46, %v4156_v40  ;;  %v4187_v2 = vsel %vm4132_vm4, %v8846_v60, 0.0 }
 0x6bf   : > { %4188 = vadd.xlane.f32.xlu0 %v4187_v2  ;;  %v4181_v37 = vsel %vm4132_vm4, %v6549_v49, 0.0  ;;  %v4020_v3 = vpop.permute.xlu0 %4019 }
 0x6c0   : > { %6556 = vpow2.f32 %v4177_v7  ;;  %v4179_v20 = vmul.f32 1.442695, %v4164_v56  ;;  %4182 = vadd.xlane.f32.xlu1 %v4181_v37  ;;  %v4022_v23 = vmul.f32 %v4020_v3, %v8820_v10 }
 0x6c1   : > { %v6551_v32 = vpop.eup %6550  ;;  %6558 = vpow2.f32 %v4173_v35  ;;  %v4036_v26 = vpop.permute.xlu1 %4035 }
 0x6c2   : > { %v6553_v38 = vpop.eup %6552  ;;  %6560 = vpow2.f32 %v4179_v20  ;;  %v4190_v54 = vsel %vm4132_vm4, %v6551_v32, 0.0  ;;  %v4038_v30 = vadd.f32 %v4036_v26, %v4022_v23  ;;  %v9078_v20 = vsub.s32 1, %v9050_v36 }
 0x6c3   : > { %v4184_v22 = vsel %vm4132_vm4, %v6553_v38, 0.0 }
 0x6c4   : > { %4185 = vadd.xlane.f32.xlu0 %v4184_v22  ;;  %4191 = vadd.xlane.f32.xlu1 %v4190_v54  ;;  %v4225_v61 = vpack.c.bf16 %v4038_v30, %v4038_v30  ;;  %v6595_v54 = vld [vmem:[%s6708_s19 + $0x10] sm:$0xff] }
 0x6c8   : > { %v6555_v58 = vpop.eup %6554 }
 0x6c9   : > { %v4196_v34 = vsel %vm4132_vm4, %v6555_v58, 0.0 }
 0x6ca   : > { %v6557_v52 = vpop.eup %6556  ;;  %4197 = vadd.xlane.f32.xlu1 %v4196_v34  ;;  %v6596_v34 = vld [vmem:[%s6708_s19] sm:$0xff] }
 0x6cb   : > { %v6559_v39 = vpop.eup %6558  ;;  %v4199_v18 = vsel %vm4132_vm4, %v6557_v52, 0.0 }
 0x6cc   : > { %v6561_v50 = vpop.eup %6560  ;;  %4200 = vadd.xlane.f32.xlu0 %v4199_v18  ;;  %v4193_v42 = vsel %vm4132_vm4, %v6559_v39, 0.0  ;;  %v6597_v18 = vld [vmem:[%s6708_s19 + $0x18] sm:$0xff] }
 0x6cd   : > { %v4202_v4 = vsel %vm4132_vm4, %v6561_v50, 0.0 }
 0x6ce   : > { %4203 = vadd.xlane.f32.xlu1 %v4202_v4 }
 0x6d0   : > { %4194 = vadd.xlane.f32.xlu0 %v4193_v42  ;;  %v6598_v42 = vld [vmem:[%s6708_s19 + $0x8] sm:$0xff] }
 0x6e6   : > { %4227 = vrot.lane.b32.xlu0 %v4225_v61, %s6611_s30  ;;  %v9079_v61 = vld [vmem:[#allocation33_spill] sm:$0xff] }
 0x74c   : > { %v4189_v33 = vpop.xlane.xlu0 %4188 }
 0x74d   : > { %v4183_v8 = vpop.xlane.xlu1 %4182 }
 0x74e   : > { %6562 = vrcp.f32 %v4183_v8  ;;  %v9080_v8 = vld [vmem:[#allocation31_spill] sm:$0xff] }
 0x751   : > { %v4186_v17 = vpop.xlane.xlu0 %4185  ;;  %v4192_v16 = vpop.xlane.xlu1 %4191 }
 0x752   : > { %6564 = vrcp.f32 %v4186_v17 }
 0x753   : > { %6566 = vrcp.f32 %v4192_v16 }
 0x754   : > { %6568 = vrcp.f32 %v4189_v33 }
 0x757   : > { %v4198_v10 = vpop.xlane.xlu1 %4197 }
 0x758   : > { %v6563_v59 = vpop.eup %6562  ;;  %6570 = vrcp.f32 %v4198_v10 }
 0x759   : > { %v4201_v14 = vpop.xlane.xlu0 %4200  ;;  %v4213_v27 = vmul.f32 %v6563_v59, %v6549_v49 }
 0x75b   : > { %v4204_v1 = vpop.xlane.xlu1 %4203 }
 0x75c   : > { %v6565_v29 = vpop.eup %6564  ;;  %6572 = vrcp.f32 %v4204_v1 }
 0x75d   : > { %v6567_v41 = vpop.eup %6566  ;;  %6574 = vrcp.f32 %v4201_v14  ;;  %v4195_v55 = vpop.xlane.xlu0 %4194  ;;  %v4214_v46 = vmul.f32 %v6565_v29, %v6553_v38  ;;  %v9081_v14 = vld [vmem:[#allocation34_spill] sm:$0xff] }
 0x75e   : > { %6576 = vrcp.f32 %v4195_v55  ;;  %v6569_v9 = vpop.eup %6568  ;;  %v4216_v48 = vmul.f32 %v6567_v41, %v6551_v32  ;;  %v4418_v32 = vrot.slane %v8808_v53, %v9078_v20  ;;  %v9082_v41 = vld [vmem:[#allocation32_spill] sm:$0xff] }
 0x75f   : > { %v4221_v31 = vpack.c.bf16 %v4214_v46, %v4213_v27  ;;  %v4215_v28 = vmul.f32 %v6569_v9, %v8846_v60 }
 0x761   : > { %v4228_v63 = vpop.permute.xlu0 %4227  ;;  %5727 = vmatprep.mubr.msk.bf16.mxu0 %vm4132_vm4, %v4221_v31  ;;  %v4222_v57 = vpack.c.bf16 %v4216_v48, %v4215_v28 }
 0x762   : > { %v4243_v6 = vsel %vm4241_vm5, %v4228_v63, 0  ;;  %6388 = vmatprep.subr.msk.bf16.mxu0 %vm4241_vm5, %v4228_v63  ;;  %v6571_v19 = vpop.eup %6570 }
 0x763   : > { %5726 = vmatpush3.bf16.msra.mxu0 %v4243_v6  ;;  %v4218_v12 = vmul.f32 %v6571_v19, %v6555_v58 }
 0x766   : > { %v6573_v47 = vpop.eup %6572  ;;  %5728 = vmatmul.mubr.msk.bf16.vlgmr.msra.gmra.mrb[48].mxu0 %vm4132_vm4, %v4222_v57 }
 0x767   : > { %v6575_v44 = vpop.eup %6574  ;;  %v4220_v25 = vmul.f32 %v6573_v47, %v6561_v50 }
 0x768   : > { %v6577_v15 = vpop.eup %6576  ;;  %v4219_v45 = vmul.f32 %v6575_v44, %v6557_v52 }
 0x769   : > { %v4217_v5 = vmul.f32 %v6577_v15, %v6559_v39 }
 0x76a   : > { %v4224_v0 = vpack.c.bf16 %v4220_v25, %v4219_v45 }
 0x76b   : > { %v4223_v24 = vpack.c.bf16 %v4218_v12, %v4217_v5 }
 0x76d   : > { %5731 = vmatprep.mubr.msk.bf16.mxu0 %vm4132_vm4, %v4223_v24 }
 0x76e   : > { %5732 = vmatmul.mubr.msk.bf16.gmra.mrb[52].mxu0 %vm4132_vm4, %v4224_v0 }
 0x839   : > { %v5729_v13 = vpop.f32.mrb[48].mxu0 }
 0x83a   : > { %v4279_v21 = vpop.f32.mrb[49].mxu0 }
 0x83b   : > { %v5730_v43 = vpop.f32.mrb[50].mxu0 }
 0x83c   : > { %v4315_v51 = vpack.c.bf16 %v5730_v43, %v5729_v13  ;;  %v4282_v60 = vpop.f32.mrb[51].mxu0 }
 0x83d   : > { %v4314_v35 = vpack.c.bf16 %v4282_v60, %v4279_v21 }
 0x83f   : > { %5739 = vmatprep.mubr.msk.bf16.mxu1 %vm482_vm1, %v4314_v35 }
 0x840   : > { %5740 = vmatmul.mubr.msk.bf16.vlgmr.msra.gmra.mrb[48].mxu1 %vm482_vm1, %v4315_v51 }
 0x841   : > { %v5733_v40 = vpop.f32.mrb[52].mxu0 }
 0x842   : > { %v4295_v49 = vpop.f32.mrb[53].mxu0 }
 0x843   : > { %v5734_v7 = vpop.f32.mrb[54].mxu0 }
 0x844   : > { %v4317_v56 = vpack.c.bf16 %v5734_v7, %v5733_v40  ;;  %v4298_v2 = vpop.f32.mrb[55].mxu0 }
 0x845   : > { %v4316_v37 = vpack.c.bf16 %v4298_v2, %v4295_v49 }
 0x847   : > { %5743 = vmatprep.mubr.msk.bf16.mxu1 %vm482_vm1, %v4316_v37 }
 0x848   : > { %5744 = vmatmul.mubr.msk.bf16.gmra.mrb[52].mxu1 %vm482_vm1, %v4317_v56 }
 0x913   : > { %v5741_v38 = vpop.f32.mrb[48].mxu1 }
 0x914   : > { %v4409_v22 = vadd.f32 %v6595_v54, %v5741_v38  ;;  %v4376_v58 = vpop.f32.mrb[49].mxu1 }
 0x915   : > { %v4407_v52 = vadd.f32 %v6596_v34, %v4376_v58  ;;  %v5742_v39 = vpop.f32.mrb[50].mxu1 }
 0x916   : > { %v4421_v36 = vadd.f32 %v4418_v32, %v4409_v22  ;;  %v4410_v53 = vadd.f32 %v6597_v18, %v5742_v39  ;;  %v4379_v50 = vpop.f32.mrb[51].mxu1 }
 0x917   : > { %v4419_v4 = vadd.f32 %v4418_v32, %v4407_v52  ;;  %v4408_v3 = vadd.f32 %v6598_v42, %v4379_v50 }
 0x918   : > { %4429 = vst [vmem:[%s8882_s13 + $0x10] sm:$0xff] %v4421_v36  ;;  %v4422_v23 = vadd.f32 %v4418_v32, %v4410_v53 }
 0x919   : > { %4427 = vst [vmem:[%s8882_s13] sm:$0xff] %v4419_v4  ;;  %v4420_v26 = vadd.f32 %v4418_v32, %v4408_v3 }
 0x91a   : > { %4430 = vst [vmem:[%s8882_s13 + $0x18] sm:$0xff] %v4422_v23 }
 0x91b   : > { %4428 = vst [vmem:[%s8882_s13 + $0x8] sm:$0xff] %v4420_v26  ;;  %v5745_v30 = vpop.f32.mrb[52].mxu1 }
 0x91c   : > { %v4413_v62 = vadd.f32 %v9079_v61, %v5745_v30  ;;  %v4392_v33 = vpop.f32.mrb[53].mxu1 }
 0x91d   : > { %v4411_v17 = vadd.f32 %v9080_v8, %v4392_v33  ;;  %v5746_v16 = vpop.f32.mrb[54].mxu1 }
 0x91e   : > { %v4425_v10 = vadd.f32 %v4418_v32, %v4413_v62  ;;  %v4414_v59 = vadd.f32 %v9081_v14, %v5746_v16  ;;  %v4395_v1 = vpop.f32.mrb[55].mxu1 }
 0x91f   : > { %v4423_v29 = vadd.f32 %v4418_v32, %v4411_v17  ;;  %v4412_v55 = vadd.f32 %v9082_v41, %v4395_v1 }
 0x920   : > { %4433 = vst [vmem:[%s8882_s13 + $0x30] sm:$0xff] %v4425_v10  ;;  %v4426_v27 = vadd.f32 %v4418_v32, %v4414_v59 }
 0x921   : > { %4431 = vst [vmem:[%s8882_s13 + $0x20] sm:$0xff] %v4423_v29  ;;  %v4424_v46 = vadd.f32 %v4418_v32, %v4412_v55 }
 0x922   : > { %4434 = vst [vmem:[%s8882_s13 + $0x38] sm:$0xff] %v4426_v27 }
 0x923   : > { %4432 = vst [vmem:[%s8882_s13 + $0x28] sm:$0xff] %v4424_v46 }
 0x924 PF: > { %s16_s21 = sadd.s32 1, %s6605_s21  }
 0x925   : > { %p13_p5 = scmp.ge.s32.totalorder %s16_s21, 4  }
 0x927   :  { %15 = sbr.rel (!%p13_p5) target bundleno = 1 (0x1), region = 77 }

</bundles_post_ra>
